<compile_context>
chip_gen: v6e
topology: v6e:2x2x1
jax: 0.10.0
libtpu: 0.0.40
codegen_flags: <defaults>
</compile_context>

<pallas_src>
import functools
import math

import jax
import jax.numpy as jnp
from jax.experimental import pallas as pl
from jax.experimental.pallas import tpu as pltpu

NEG_INF = -1e9                       # finite "minus infinity" for additive masks
LN_EPS = 1e-5                        # nn.Transformer default layer_norm_eps
VMEM_LIMIT = 48 * 1024 * 1024        # explicit scoped-VMEM budget (safe on v5e/v6e/v7x)


# ----------------------------------------------------------------------------
# small in-kernel helpers (traced inside Pallas kernels)
# ----------------------------------------------------------------------------
def _bf16_dot(a_f32, w_bf16):
    # activation cast to bf16, weight already bf16, f32 MXU accumulation
    return jnp.dot(a_f32.astype(jnp.bfloat16), w_bf16,
                   preferred_element_type=jnp.float32)


def _layernorm(h, gamma, beta, eps):
    mu = jnp.mean(h, axis=-1, keepdims=True)
    var = jnp.mean(jnp.square(h - mu), axis=-1, keepdims=True)
    return (h - mu) * jax.lax.rsqrt(var + eps) * gamma + beta


def _heads_softmax_ctx(q, k_ref, v_cols, bias, attn_s, nhead, hd):
    """Per-head scores + softmax + context; each head's context is stored into
    the (tq, D) VMEM buffer `attn_s` (static column slices) so per-head
    temporaries die immediately."""
    for h in range(nhead):
        qh = q[:, h * hd:(h + 1) * hd].astype(jnp.bfloat16)
        kh = k_ref[:, v_cols[0] + h * hd:v_cols[0] + (h + 1) * hd].astype(jnp.bfloat16)
        vh = k_ref[:, v_cols[1] + h * hd:v_cols[1] + (h + 1) * hd].astype(jnp.bfloat16)
        s = jax.lax.dot_general(qh, kh, (((1,), (1,)), ((), ())),
                                preferred_element_type=jnp.float32)
        if bias is not None:
            s = s + bias
        s = s - jnp.max(s, axis=-1, keepdims=True)
        p = jnp.exp(s)
        p = p / jnp.sum(p, axis=-1, keepdims=True)
        attn_s[:, h * hd:(h + 1) * hd] = jnp.dot(
            p.astype(jnp.bfloat16), vh, preferred_element_type=jnp.float32)


# ----------------------------------------------------------------------------
# Pallas kernels
# ----------------------------------------------------------------------------
def _self_attn_kernel(*refs, nhead, eps, has_mask):
    """Fused self-attention sub-layer (one q-tile of one batch element):
       LN(x + OutProj(MHA(x, x, x)))
       Scale is pre-baked into the Q columns of wqkv."""
    if has_mask:
        (x_ref, kpm_ref, mask_ref, wqkv_ref, bqkv_ref, wo_ref, bo_ref,
         g_ref, be_ref, o_ref, qkv_s, attn_s) = refs
    else:
        (x_ref, kpm_ref, wqkv_ref, bqkv_ref, wo_ref, bo_ref,
         g_ref, be_ref, o_ref, qkv_s, attn_s) = refs
        mask_ref = None

    qi = pl.program_id(1)
    D = x_ref.shape[2]
    tq = o_ref.shape[1]
    hd = D // nhead

    # Q|K|V projection for the whole sequence, once per batch element; the
    # VMEM scratch persists across the sequential q-tile axis.
    @pl.when(qi == 0)
    def _():
        qkv_s[...] = _bf16_dot(x_ref[0], wqkv_ref[...]) + bqkv_ref[...]

    q_start = pl.multiple_of(qi * tq, tq)
    xq = x_ref[0, pl.ds(q_start, tq), :]                 # residual (tq, D) f32
    q = qkv_s[pl.ds(q_start, tq), 0:D]                   # (tq, D), already scaled

    bias = kpm_ref[0]                                    # (1, Sk) key-padding row
    if has_mask:
        bias = mask_ref[...] + bias                      # (tq, Sk)

    _heads_softmax_ctx(q, qkv_s, (D, 2 * D), bias, attn_s, nhead, hd)

    proj = _bf16_dot(attn_s[...], wo_ref[...]) + bo_ref[...]
    o_ref[0] = _layernorm(xq + proj, g_ref[...], be_ref[...], eps)


def _cross_attn_kernel(xq_ref, xkv_ref, wq_ref, bq_ref, wkv_ref, bkv_ref,
                       wo_ref, bo_ref, g_ref, be_ref, o_ref, kv_s, attn_s,
                       *, nhead, eps):
    """Fused cross-attention sub-layer: LN(x_q + OutProj(MHA(x_q, mem, mem))).
       No attn / key-padding masks (matches reference forward: memory_mask and
       memory_key_padding_mask are None).  Scale pre-baked into wq."""
    qi = pl.program_id(1)
    D = xq_ref.shape[2]
    hd = D // nhead

    @pl.when(qi == 0)
    def _():
        kv_s[...] = _bf16_dot(xkv_ref[0], wkv_ref[...]) + bkv_ref[...]

    xq = xq_ref[0]                                       # (tq, D) f32
    q = _bf16_dot(xq, wq_ref[...]) + bq_ref[...]         # (tq, D), already scaled

    _heads_softmax_ctx(q, kv_s, (0, D), None, attn_s, nhead, hd)

    proj = _bf16_dot(attn_s[...], wo_ref[...]) + bo_ref[...]
    o_ref[0] = _layernorm(xq + proj, g_ref[...], be_ref[...], eps)


def _ffn_block_kernel(x_ref, w1_ref, b1_ref, w2_ref, b2_ref, g_ref, be_ref,
                      o_ref, *, eps):
    """Fused feed-forward sub-layer: LN(x + W2 relu(W1 x + b1) + b2)"""
    x = x_ref[...]                                       # (tm, D) f32
    h = jnp.maximum(_bf16_dot(x, w1_ref[...]) + b1_ref[...], 0.0)
    y = _bf16_dot(h, w2_ref[...]) + b2_ref[...]
    o_ref[...] = _layernorm(x + y, g_ref[...], be_ref[...], eps)


def _layernorm_kernel(x_ref, g_ref, be_ref, o_ref, *, eps):
    o_ref[...] = _layernorm(x_ref[...], g_ref[...], be_ref[...], eps)


def _linear_kernel(x_ref, w_ref, b_ref, o_ref):
    o_ref[...] = _bf16_dot(x_ref[...], w_ref[...]) + b_ref[...]


# ----------------------------------------------------------------------------
# Pallas wrappers
# ----------------------------------------------------------------------------
def _pick_tile(n, target=512):
    """Full extent when small, else the largest aligned divisor <= target."""
    if n <= target:
        return n
    for t in (1024, 512, 256, 128, 64, 32, 16, 8):
        if t <= target and n % t == 0:
            return t
    return n


def _cparams(sem):
    return pltpu.CompilerParams(dimension_semantics=sem,
                                vmem_limit_bytes=VMEM_LIMIT)


def fused_self_attention(x, p, kpm, attn_mask, gamma, beta, *, nhead):
    """One pallas_call: fused QKV proj + all-head attn + out proj + add + LN."""
    B, S, D = x.shape
    tq = _pick_tile(S, 512)
    nq = S // tq
    has_mask = attn_mask is not None
    kern = functools.partial(_self_attn_kernel, nhead=nhead, eps=LN_EPS,
                             has_mask=has_mask)
    c2 = lambda b, q: (0, 0)

    in_specs = [
        pl.BlockSpec((1, S, D), lambda b, q: (b, 0, 0)),   # x: resident per batch
        pl.BlockSpec((1, 1, S), lambda b, q: (b, 0, 0)),   # key-padding row
    ]
    inputs = [x, kpm]
    if has_mask:
        in_specs.append(pl.BlockSpec((tq, S), lambda b, q: (q, 0)))
        inputs.append(attn_mask)
    in_specs += [
        pl.BlockSpec((D, 3 * D), c2),   # wqkv (bf16, resident)
        pl.BlockSpec((1, 3 * D), c2),   # bqkv
        pl.BlockSpec((D, D), c2),       # wo (bf16)
        pl.BlockSpec((1, D), c2),       # bo
        pl.BlockSpec((1, D), c2),       # LN gamma
        pl.BlockSpec((1, D), c2),       # LN beta
    ]
    inputs += [p["wqkv"], p["bqkv"], p["wo"], p["bo"],
               gamma.reshape(1, D), beta.reshape(1, D)]

    return pl.pallas_call(
        kern,
        grid=(B, nq),
        out_shape=jax.ShapeDtypeStruct((B, S, D), jnp.float32),
        in_specs=in_specs,
        out_specs=pl.BlockSpec((1, tq, D), lambda b, q: (b, q, 0)),
        scratch_shapes=[pltpu.VMEM((S, 3 * D), jnp.float32),   # Q|K|V projection
                        pltpu.VMEM((tq, D), jnp.float32)],     # per-head ctx buffer
        compiler_params=_cparams(("parallel", "arbitrary")),
    )(*inputs)


def fused_cross_attention(x_q, memory, p, gamma, beta, *, nhead):
    B, Sq, D = x_q.shape
    Sk = memory.shape[1]
    tq = _pick_tile(Sq, 512)
    nq = Sq // tq
    kern = functools.partial(_cross_attn_kernel, nhead=nhead, eps=LN_EPS)
    c2 = lambda b, q: (0, 0)
    return pl.pallas_call(
        kern,
        grid=(B, nq),
        out_shape=jax.ShapeDtypeStruct((B, Sq, D), jnp.float32),
        in_specs=[
            pl.BlockSpec((1, tq, D), lambda b, q: (b, q, 0)),   # x_q tile
            pl.BlockSpec((1, Sk, D), lambda b, q: (b, 0, 0)),   # memory (resident)
            pl.BlockSpec((D, D), c2), pl.BlockSpec((1, D), c2),         # wq/bq
            pl.BlockSpec((D, 2 * D), c2), pl.BlockSpec((1, 2 * D), c2), # wkv/bkv
            pl.BlockSpec((D, D), c2), pl.BlockSpec((1, D), c2),         # wo/bo
            pl.BlockSpec((1, D), c2), pl.BlockSpec((1, D), c2),         # LN
        ],
        out_specs=pl.BlockSpec((1, tq, D), lambda b, q: (b, q, 0)),
        scratch_shapes=[pltpu.VMEM((Sk, 2 * D), jnp.float32),
                        pltpu.VMEM((tq, D), jnp.float32)],
        compiler_params=_cparams(("parallel", "arbitrary")),
    )(x_q, memory, p["wq"], p["bq"], p["wkv"], p["bkv"], p["wo"], p["bo"],
      gamma.reshape(1, D), beta.reshape(1, D))


def fused_ffn_block(x, w1, b1, w2, b2, gamma, beta):
    B, S, D = x.shape
    dff = w1.shape[1]
    x2 = x.reshape(B * S, D)
    M = B * S
    tm = _pick_tile(M, 512)
    kern = functools.partial(_ffn_block_kernel, eps=LN_EPS)
    c2 = lambda i: (0, 0)
    out = pl.pallas_call(
        kern,
        grid=(M // tm,),
        out_shape=jax.ShapeDtypeStruct((M, D), jnp.float32),
        in_specs=[
            pl.BlockSpec((tm, D), lambda i: (i, 0)),
            pl.BlockSpec((D, dff), c2),    # w1 (bf16, resident)
            pl.BlockSpec((1, dff), c2),
            pl.BlockSpec((dff, D), c2),    # w2 (bf16, resident)
            pl.BlockSpec((1, D), c2),
            pl.BlockSpec((1, D), c2),
            pl.BlockSpec((1, D), c2),
        ],
        out_specs=pl.BlockSpec((tm, D), lambda i: (i, 0)),
        compiler_params=_cparams(("parallel",)),
    )(x2, w1, b1, w2, b2, gamma.reshape(1, D), beta.reshape(1, D))
    return out.reshape(B, S, D)


def pallas_layernorm(x, gamma, beta):
    shp = x.shape
    D = shp[-1]
    x2 = x.reshape(-1, D)
    M = x2.shape[0]
    tm = _pick_tile(M, 512)
    kern = functools.partial(_layernorm_kernel, eps=LN_EPS)
    c2 = lambda i: (0, 0)
    out = pl.pallas_call(
        kern,
        grid=(M // tm,),
        out_shape=jax.ShapeDtypeStruct((M, D), jnp.float32),
        in_specs=[
            pl.BlockSpec((tm, D), lambda i: (i, 0)),
            pl.BlockSpec((1, D), c2),
            pl.BlockSpec((1, D), c2),
        ],
        out_specs=pl.BlockSpec((tm, D), lambda i: (i, 0)),
        compiler_params=_cparams(("parallel",)),
    )(x2, gamma.reshape(1, D), beta.reshape(1, D))
    return out.reshape(shp)


def pallas_linear(x2d, w_bf16, b_f32):
    """Prediction head: tiled over rows AND the vocab dimension."""
    M, K = x2d.shape
    N = w_bf16.shape[1]
    tm = _pick_tile(M, 512)
    tn = _pick_tile(N, 2048)
    return pl.pallas_call(
        _linear_kernel,
        grid=(M // tm, N // tn),
        out_shape=jax.ShapeDtypeStruct((M, N), jnp.float32),
        in_specs=[
            pl.BlockSpec((tm, K), lambda i, j: (i, 0)),
            pl.BlockSpec((K, tn), lambda i, j: (0, j)),   # bf16 weight tile
            pl.BlockSpec((1, tn), lambda i, j: (0, j)),
        ],
        out_specs=pl.BlockSpec((tm, tn), lambda i, j: (i, j)),
        compiler_params=_cparams(("parallel", "parallel")),
    )(x2d, w_bf16, b_f32)


# ----------------------------------------------------------------------------
# Full forward (glue: embeddings / mask prep in JAX, compute in Pallas)
# ----------------------------------------------------------------------------
def seq2seq_transformer_forward(
    params, enc_inp, dec_inp, tgt_mask, enc_pad_mask, dec_pad_mask, *, nhead
):
    B, S = enc_inp.shape
    T = dec_inp.shape[1]
    pe = params["pos_embedding"]

    # embeddings + positional encoding (dropout == identity in eval mode)
    src = jnp.take(params["enc_emb"], enc_inp, axis=0) + pe[None, :S, :]
    tgt = jnp.take(params["dec_emb"], dec_inp, axis=0) + pe[None, :T, :]

    # key-padding rows, finite additive form (no (S,S) materialization)
    src_kpm = jnp.where(enc_pad_mask, NEG_INF, 0.0).astype(jnp.float32).reshape(B, 1, S)
    tgt_kpm = jnp.where(dec_pad_mask, NEG_INF, 0.0).astype(jnp.float32).reshape(B, 1, T)

    # user-supplied target mask, -inf -> large finite negative
    tgt_add = jnp.nan_to_num(tgt_mask.astype(jnp.float32),
                             neginf=NEG_INF, posinf=-NEG_INF)              # (T,T)

    # ------------------ encoder (post-norm layers) ------------------
    x = src
    for lp in params["enc_layers"]:
        x = fused_self_attention(x, lp["self_attn"], src_kpm, None,
                                 *lp["ln1"], nhead=nhead)
        x = fused_ffn_block(x, lp["w1"], lp["b1"], lp["w2"], lp["b2"], *lp["ln2"])
    memory = pallas_layernorm(x, *params["enc_norm"])

    # ------------------ decoder (post-norm layers) ------------------
    y = tgt
    for lp in params["dec_layers"]:
        y = fused_self_attention(y, lp["self_attn"], tgt_kpm, tgt_add,
                                 *lp["ln1"], nhead=nhead)
        y = fused_cross_attention(y, memory, lp["cross_attn"], *lp["ln2"],
                                  nhead=nhead)
        y = fused_ffn_block(y, lp["w1"], lp["b1"], lp["w2"], lp["b2"], *lp["ln3"])
    out = pallas_layernorm(y, *params["dec_norm"])

    # ------------------ prediction head ------------------
    wp, bp = params["predict"]
    D = out.shape[-1]
    logits = pallas_linear(out.reshape(B * T, D), wp, bp).reshape(B, T, -1)
    return logits


# ----------------------------------------------------------------------------
# Parameter init (synthetic, f32) + one-time kernel-friendly preprocessing
# ----------------------------------------------------------------------------
def make_pos_embedding(d_model, maxlen=5000):
    den = jnp.exp(
        jnp.arange(0, d_model, 2, dtype=jnp.float32) * (math.log(10000.0) / d_model)
    )
    pos = jnp.arange(0, maxlen, dtype=jnp.float32).reshape(maxlen, 1)
    pe = jnp.zeros((maxlen, d_model), jnp.float32)
    pe = pe.at[:, 0::2].set(jnp.sin(pos * den))
    pe = pe.at[:, 1::2].set(jnp.cos(pos * den))
    return pe


def init_params(key, d_model, nhead, n_enc, n_dec, dff, enc_voc, dec_voc):
    keys = iter(jax.random.split(key, 256))

    def lin(fan_in, fan_out):
        w = jax.random.normal(next(keys), (fan_in, fan_out), jnp.float32) * 0.02
        b = jnp.zeros((fan_out,), jnp.float32)
        return w, b

    def attn():
        wq, bq = lin(d_model, d_model)
        wkv, bkv = lin(d_model, 2 * d_model)   # fused K|V projection
        wo, bo = lin(d_model, d_model)
        return dict(wq=wq, bq=bq, wkv=wkv, bkv=bkv, wo=wo, bo=bo)

    def ln():
        return jnp.ones((d_model,), jnp.float32), jnp.zeros((d_model,), jnp.float32)

    enc_layers = []
    for _ in range(n_enc):
        w1, b1 = lin(d_model, dff)
        w2, b2 = lin(dff, d_model)
        enc_layers.append(
            dict(self_attn=attn(), w1=w1, b1=b1, w2=w2, b2=b2, ln1=ln(), ln2=ln())
        )
    dec_layers = []
    for _ in range(n_dec):
        w1, b1 = lin(d_model, dff)
        w2, b2 = lin(dff, d_model)
        dec_layers.append(
            dict(self_attn=attn(), cross_attn=attn(),
                 w1=w1, b1=b1, w2=w2, b2=b2, ln1=ln(), ln2=ln(), ln3=ln())
        )
    enc_emb = jax.random.normal(next(keys), (enc_voc, d_model), jnp.float32) * 0.02
    dec_emb = jax.random.normal(next(keys), (dec_voc, d_model), jnp.float32) * 0.02
    return dict(
        enc_layers=enc_layers,
        dec_layers=dec_layers,
        enc_emb=enc_emb,
        dec_emb=dec_emb,
        predict=lin(d_model, dec_voc),
        enc_norm=ln(),
        dec_norm=ln(),
        pos_embedding=make_pos_embedding(d_model),
    )


def prepare_params(raw, nhead):
    """One-time preprocessing (outside jit): fuse Q|K|V weights for
    self-attention, bake the 1/sqrt(head_dim) score scale into the Q
    projection, pre-cast all matmul weights to bf16, reshape biases."""
    d_model = raw["enc_emb"].shape[1]
    scale = 1.0 / math.sqrt(d_model // nhead)
    bf16 = lambda w: w.astype(jnp.bfloat16)

    def self_attn(a):
        return dict(
            wqkv=bf16(jnp.concatenate([a["wq"] * scale, a["wkv"]], axis=1)),
            bqkv=jnp.concatenate([a["bq"] * scale, a["bkv"]]).reshape(1, -1),
            wo=bf16(a["wo"]), bo=a["bo"].reshape(1, -1))

    def cross_attn(a):
        return dict(
            wq=bf16(a["wq"] * scale), bq=(a["bq"] * scale).reshape(1, -1),
            wkv=bf16(a["wkv"]), bkv=a["bkv"].reshape(1, -1),
            wo=bf16(a["wo"]), bo=a["bo"].reshape(1, -1))

    def enc_layer(lp):
        return dict(self_attn=self_attn(lp["self_attn"]),
                    w1=bf16(lp["w1"]), b1=lp["b1"].reshape(1, -1),
                    w2=bf16(lp["w2"]), b2=lp["b2"].reshape(1, -1),
                    ln1=lp["ln1"], ln2=lp["ln2"])

    def dec_layer(lp):
        return dict(self_attn=self_attn(lp["self_attn"]),
                    cross_attn=cross_attn(lp["cross_attn"]),
                    w1=bf16(lp["w1"]), b1=lp["b1"].reshape(1, -1),
                    w2=bf16(lp["w2"]), b2=lp["b2"].reshape(1, -1),
                    ln1=lp["ln1"], ln2=lp["ln2"], ln3=lp["ln3"])

    wp, bp = raw["predict"]
    return dict(
        enc_layers=[enc_layer(l) for l in raw["enc_layers"]],
        dec_layers=[dec_layer(l) for l in raw["dec_layers"]],
        enc_emb=raw["enc_emb"],
        dec_emb=raw["dec_emb"],
        predict=(bf16(wp), bp.reshape(1, -1)),
        enc_norm=raw["enc_norm"],
        dec_norm=raw["dec_norm"],
        pos_embedding=raw["pos_embedding"],
    )


# ----------------------------------------------------------------------------
# Demo
# ----------------------------------------------------------------------------
if __name__ == "__main__":
    d_model, nhead = 32, 4
    num_enc_layers, num_dec_layers = 2, 2
    dim_forward = 64
    enc_voc_size, dec_voc_size = 64, 64
    B, S, T = 2, 8, 8

    key = jax.random.PRNGKey(0)
    pkey, k_enc, k_dec = jax.random.split(key, 3)
    raw_params = init_params(
        pkey, d_model, nhead, num_enc_layers, num_dec_layers, dim_forward,
        enc_voc_size, dec_voc_size,
    )
    params = prepare_params(raw_params, nhead)   # one-time bf16 cast / fusion

    enc_inp = jax.random.randint(k_enc, (B, S), 0, enc_voc_size)
    dec_inp = jax.random.randint(k_dec, (B, T), 0, dec_voc_size)

    # causal float mask (as from nn.Transformer.generate_square_subsequent_mask)
    tgt_mask = jnp.where(
        jnp.triu(jnp.ones((T, T), dtype=bool), k=1), -jnp.inf, 0.0
    ).astype(jnp.float32)
    # bool padding masks, True == padded
    enc_pad_mask = jnp.zeros((B, S), dtype=bool).at[0, -2:].set(True).at[1, -1:].set(True)
    dec_pad_mask = jnp.zeros((B, T), dtype=bool).at[0, -1:].set(True).at[1, -2:].set(True)

    fwd = jax.jit(functools.partial(seq2seq_transformer_forward, nhead=nhead))
    logits = fwd(params, enc_inp, dec_inp, tgt_mask, enc_pad_mask, dec_pad_mask)
    jax.block_until_ready(logits)

    assert logits.shape == (B, T, dec_voc_size), logits.shape
    assert bool(jnp.all(jnp.isfinite(logits)))
    print("KERNEL_OK")
</pallas_src>

<mosaic_0001>
module attributes {stable_mosaic.version = 11 : i64} {
  func.func @_self_attn_kernel(%arg0: i32, %arg1: i32, %arg2: memref<1x8x32xf32, #tpu.memory_space<vmem>>, %arg3: memref<1x1x8xf32, #tpu.memory_space<vmem>>, %arg4: memref<32x96xbf16, #tpu.memory_space<vmem>>, %arg5: memref<1x96xf32, #tpu.memory_space<vmem>>, %arg6: memref<32x32xbf16, #tpu.memory_space<vmem>>, %arg7: memref<1x32xf32, #tpu.memory_space<vmem>>, %arg8: memref<1x32xf32, #tpu.memory_space<vmem>>, %arg9: memref<1x32xf32, #tpu.memory_space<vmem>>, %arg10: memref<1x8x32xf32, #tpu.memory_space<vmem>>, %arg11: memref<8x96xf32, #tpu.memory_space<vmem>>, %arg12: memref<8x32xf32, #tpu.memory_space<vmem>>) attributes {dimension_semantics = [#tpu.dimension_semantics<parallel>, #tpu.dimension_semantics<arbitrary>], iteration_bounds = array<i64: 2, 1>, scalar_prefetch = 0 : i64, scratch_operands = 2 : i64, tpu.core_type = #tpu.core_type<tc>, window_params = [{transform_indices = @transform_0, window_bounds = array<i64: 1, 8, 32>}, {transform_indices = @transform_1, window_bounds = array<i64: 1, 1, 8>}, {pipeline_mode = #tpu.pipeline_mode<synchronous>, transform_indices = @transform_2, window_bounds = array<i64: 32, 96>}, {pipeline_mode = #tpu.pipeline_mode<synchronous>, transform_indices = @transform_3, window_bounds = array<i64: 1, 96>}, {pipeline_mode = #tpu.pipeline_mode<synchronous>, transform_indices = @transform_4, window_bounds = array<i64: 32, 32>}, {pipeline_mode = #tpu.pipeline_mode<synchronous>, transform_indices = @transform_5, window_bounds = array<i64: 1, 32>}, {pipeline_mode = #tpu.pipeline_mode<synchronous>, transform_indices = @transform_6, window_bounds = array<i64: 1, 32>}, {pipeline_mode = #tpu.pipeline_mode<synchronous>, transform_indices = @transform_7, window_bounds = array<i64: 1, 32>}, {transform_indices = @transform_8, window_bounds = array<i64: 1, 8, 32>}]} {
    %c0_i32 = arith.constant 0 : i32
    %0 = arith.cmpi eq, %arg1, %c0_i32 : i32
    %1 = arith.extui %0 : i1 to i32
    %c0_i32_0 = arith.constant 0 : i32
    %2 = arith.cmpi ne, %1, %c0_i32_0 : i32
    scf.if %2 {
      %c0_53 = arith.constant 0 : index
      %c0_54 = arith.constant 0 : index
      %c0_55 = arith.constant 0 : index
      %131 = vector.load %arg2[%c0_53, %c0_54, %c0_55] : memref<1x8x32xf32, #tpu.memory_space<vmem>>, vector<1x8x32xf32>
      %132 = vector.shape_cast %131 : vector<1x8x32xf32> to vector<8x32xf32>
      %c0_56 = arith.constant 0 : index
      %c0_57 = arith.constant 0 : index
      %133 = vector.load %arg4[%c0_56, %c0_57] : memref<32x96xbf16, #tpu.memory_space<vmem>>, vector<32x96xbf16>
      %134 = arith.truncf %132 : vector<8x32xf32> to vector<8x32xbf16>
      %cst_58 = arith.constant dense<0.000000e+00> : vector<8x96xf32>
      %135 = tpu.matmul %134, %133, %cst_58 {dimension_numbers = #tpu.dot_dimension_numbers<[1], [0], [0], [1], [0, 0, 1, 1], [], []>} : vector<8x32xbf16>, vector<32x96xbf16>, vector<8x96xf32> -> vector<8x96xf32>
      %c0_59 = arith.constant 0 : index
      %c0_60 = arith.constant 0 : index
      %136 = vector.load %arg5[%c0_59, %c0_60] : memref<1x96xf32, #tpu.memory_space<vmem>>, vector<1x96xf32>
      %137 = vector.broadcast %136 : vector<1x96xf32> to vector<8x96xf32>
      %138 = arith.addf %135, %137 : vector<8x96xf32>
      %c0_61 = arith.constant 0 : index
      %c0_62 = arith.constant 0 : index
      %139 = vector.load %arg11[%c0_61, %c0_62] : memref<8x96xf32, #tpu.memory_space<vmem>>, vector<8x96xf32>
      tpu.vector_store %arg11[%c0_61, %c0_62], %138 {strides = array<i32>} : memref<8x96xf32, #tpu.memory_space<vmem>>, vector<8x96xf32>,
    } else {
    }
    %c8_i32 = arith.constant 8 : i32
    %3 = arith.muli %arg1, %c8_i32 : i32
    %4 = tpu.assume_multiple %3, 8 : i32
    %c0 = arith.constant 0 : index
    %5 = arith.index_cast %4 : i32 to index
    %c0_1 = arith.constant 0 : index
    %6 = vector.load %arg2[%c0, %5, %c0_1] : memref<1x8x32xf32, #tpu.memory_space<vmem>>, vector<1x8x32xf32>
    %7 = vector.shape_cast %6 : vector<1x8x32xf32> to vector<8x32xf32>
    %8 = arith.index_cast %4 : i32 to index
    %c0_2 = arith.constant 0 : index
    %9 = vector.load %arg11[%8, %c0_2] : memref<8x96xf32, #tpu.memory_space<vmem>>, vector<8x32xf32>
    %c0_3 = arith.constant 0 : index
    %c0_4 = arith.constant 0 : index
    %c0_5 = arith.constant 0 : index
    %10 = vector.load %arg3[%c0_3, %c0_4, %c0_5] : memref<1x1x8xf32, #tpu.memory_space<vmem>>, vector<1x1x8xf32>
    %11 = vector.shape_cast %10 : vector<1x1x8xf32> to vector<1x8xf32>
    %12 = vector.extract_strided_slice %9 {offsets = [0, 0], sizes = [8, 8], strides = [1, 1]} : vector<8x32xf32> to vector<8x8xf32>
    %13 = arith.truncf %12 : vector<8x8xf32> to vector<8x8xbf16>
    %c0_6 = arith.constant 0 : index
    %c32 = arith.constant 32 : index
    %14 = vector.load %arg11[%c0_6, %c32] : memref<8x96xf32, #tpu.memory_space<vmem>>, vector<8x8xf32>
    %15 = arith.truncf %14 : vector<8x8xf32> to vector<8x8xbf16>
    %c0_7 = arith.constant 0 : index
    %c64 = arith.constant 64 : index
    %16 = vector.load %arg11[%c0_7, %c64] : memref<8x96xf32, #tpu.memory_space<vmem>>, vector<8x8xf32>
    %17 = arith.truncf %16 : vector<8x8xf32> to vector<8x8xbf16>
    %cst = arith.constant dense<0.000000e+00> : vector<8x8xf32>
    %18 = tpu.matmul %13, %15, %cst {dimension_numbers = #tpu.dot_dimension_numbers<[1], [1], [0], [0], [0, 0, 1, 0], [], []>} : vector<8x8xbf16>, vector<8x8xbf16>, vector<8x8xf32> -> vector<8x8xf32>
    %19 = vector.broadcast %11 : vector<1x8xf32> to vector<8x8xf32>
    %20 = arith.addf %18, %19 : vector<8x8xf32>
    %cst_8 = arith.constant dense<0xFF800000> : vector<8xf32>
    %21 = vector.multi_reduction <maximumf>, %20, %cst_8 [1] : vector<8x8xf32> to vector<8xf32>
    %22 = vector.shape_cast %21 : vector<8xf32> to vector<8x1xf32>
    %23 = vector.broadcast %22 : vector<8x1xf32> to vector<8x8xf32>
    %24 = arith.subf %20, %23 : vector<8x8xf32>
    %25 = math.exp %24 : vector<8x8xf32>
    %cst_9 = arith.constant dense<0.000000e+00> : vector<8xf32>
    %26 = vector.multi_reduction <add>, %25, %cst_9 [1] : vector<8x8xf32> to vector<8xf32>
    %27 = vector.shape_cast %26 : vector<8xf32> to vector<8x1xf32>
    %28 = vector.broadcast %27 : vector<8x1xf32> to vector<8x8xf32>
    %29 = arith.divf %25, %28 : vector<8x8xf32>
    %30 = arith.truncf %29 : vector<8x8xf32> to vector<8x8xbf16>
    %cst_10 = arith.constant dense<0.000000e+00> : vector<8x8xf32>
    %31 = tpu.matmul %30, %17, %cst_10 {dimension_numbers = #tpu.dot_dimension_numbers<[1], [0], [0], [1], [0, 0, 1, 1], [], []>} : vector<8x8xbf16>, vector<8x8xbf16>, vector<8x8xf32> -> vector<8x8xf32>
    %c0_11 = arith.constant 0 : index
    %c0_12 = arith.constant 0 : index
    %32 = vector.load %arg12[%c0_11, %c0_12] : memref<8x32xf32, #tpu.memory_space<vmem>>, vector<8x8xf32>
    tpu.vector_store %arg12[%c0_11, %c0_12], %31 {strides = array<i32>} : memref<8x32xf32, #tpu.memory_space<vmem>>, vector<8x8xf32>,
    %33 = vector.extract_strided_slice %9 {offsets = [0, 8], sizes = [8, 8], strides = [1, 1]} : vector<8x32xf32> to vector<8x8xf32>
    %34 = arith.truncf %33 : vector<8x8xf32> to vector<8x8xbf16>
    %c0_13 = arith.constant 0 : index
    %c40 = arith.constant 40 : index
    %35 = vector.load %arg11[%c0_13, %c40] : memref<8x96xf32, #tpu.memory_space<vmem>>, vector<8x8xf32>
    %36 = arith.truncf %35 : vector<8x8xf32> to vector<8x8xbf16>
    %c0_14 = arith.constant 0 : index
    %c72 = arith.constant 72 : index
    %37 = vector.load %arg11[%c0_14, %c72] : memref<8x96xf32, #tpu.memory_space<vmem>>, vector<8x8xf32>
    %38 = arith.truncf %37 : vector<8x8xf32> to vector<8x8xbf16>
    %cst_15 = arith.constant dense<0.000000e+00> : vector<8x8xf32>
    %39 = tpu.matmul %34, %36, %cst_15 {dimension_numbers = #tpu.dot_dimension_numbers<[1], [1], [0], [0], [0, 0, 1, 0], [], []>} : vector<8x8xbf16>, vector<8x8xbf16>, vector<8x8xf32> -> vector<8x8xf32>
    %40 = vector.broadcast %11 : vector<1x8xf32> to vector<8x8xf32>
    %41 = arith.addf %39, %40 : vector<8x8xf32>
    %cst_16 = arith.constant dense<0xFF800000> : vector<8xf32>
    %42 = vector.multi_reduction <maximumf>, %41, %cst_16 [1] : vector<8x8xf32> to vector<8xf32>
    %43 = vector.shape_cast %42 : vector<8xf32> to vector<8x1xf32>
    %44 = vector.broadcast %43 : vector<8x1xf32> to vector<8x8xf32>
    %45 = arith.subf %41, %44 : vector<8x8xf32>
    %46 = math.exp %45 : vector<8x8xf32>
    %cst_17 = arith.constant dense<0.000000e+00> : vector<8xf32>
    %47 = vector.multi_reduction <add>, %46, %cst_17 [1] : vector<8x8xf32> to vector<8xf32>
    %48 = vector.shape_cast %47 : vector<8xf32> to vector<8x1xf32>
    %49 = vector.broadcast %48 : vector<8x1xf32> to vector<8x8xf32>
    %50 = arith.divf %46, %49 : vector<8x8xf32>
    %51 = arith.truncf %50 : vector<8x8xf32> to vector<8x8xbf16>
    %cst_18 = arith.constant dense<0.000000e+00> : vector<8x8xf32>
    %52 = tpu.matmul %51, %38, %cst_18 {dimension_numbers = #tpu.dot_dimension_numbers<[1], [0], [0], [1], [0, 0, 1, 1], [], []>} : vector<8x8xbf16>, vector<8x8xbf16>, vector<8x8xf32> -> vector<8x8xf32>
    %c0_19 = arith.constant 0 : index
    %c8 = arith.constant 8 : index
    %53 = vector.load %arg12[%c0_19, %c8] : memref<8x32xf32, #tpu.memory_space<vmem>>, vector<8x8xf32>
    tpu.vector_store %arg12[%c0_19, %c8], %52 {strides = array<i32>} : memref<8x32xf32, #tpu.memory_space<vmem>>, vector<8x8xf32>,
    %54 = vector.extract_strided_slice %9 {offsets = [0, 16], sizes = [8, 8], strides = [1, 1]} : vector<8x32xf32> to vector<8x8xf32>
    %55 = arith.truncf %54 : vector<8x8xf32> to vector<8x8xbf16>
    %c0_20 = arith.constant 0 : index
    %c48 = arith.constant 48 : index
    %56 = vector.load %arg11[%c0_20, %c48] : memref<8x96xf32, #tpu.memory_space<vmem>>, vector<8x8xf32>
    %57 = arith.truncf %56 : vector<8x8xf32> to vector<8x8xbf16>
    %c0_21 = arith.constant 0 : index
    %c80 = arith.constant 80 : index
    %58 = vector.load %arg11[%c0_21, %c80] : memref<8x96xf32, #tpu.memory_space<vmem>>, vector<8x8xf32>
    %59 = arith.truncf %58 : vector<8x8xf32> to vector<8x8xbf16>
    %cst_22 = arith.constant dense<0.000000e+00> : vector<8x8xf32>
    %60 = tpu.matmul %55, %57, %cst_22 {dimension_numbers = #tpu.dot_dimension_numbers<[1], [1], [0], [0], [0, 0, 1, 0], [], []>} : vector<8x8xbf16>, vector<8x8xbf16>, vector<8x8xf32> -> vector<8x8xf32>
    %61 = vector.broadcast %11 : vector<1x8xf32> to vector<8x8xf32>
    %62 = arith.addf %60, %61 : vector<8x8xf32>
    %cst_23 = arith.constant dense<0xFF800000> : vector<8xf32>
    %63 = vector.multi_reduction <maximumf>, %62, %cst_23 [1] : vector<8x8xf32> to vector<8xf32>
    %64 = vector.shape_cast %63 : vector<8xf32> to vector<8x1xf32>
    %65 = vector.broadcast %64 : vector<8x1xf32> to vector<8x8xf32>
    %66 = arith.subf %62, %65 : vector<8x8xf32>
    %67 = math.exp %66 : vector<8x8xf32>
    %cst_24 = arith.constant dense<0.000000e+00> : vector<8xf32>
    %68 = vector.multi_reduction <add>, %67, %cst_24 [1] : vector<8x8xf32> to vector<8xf32>
    %69 = vector.shape_cast %68 : vector<8xf32> to vector<8x1xf32>
    %70 = vector.broadcast %69 : vector<8x1xf32> to vector<8x8xf32>
    %71 = arith.divf %67, %70 : vector<8x8xf32>
    %72 = arith.truncf %71 : vector<8x8xf32> to vector<8x8xbf16>
    %cst_25 = arith.constant dense<0.000000e+00> : vector<8x8xf32>
    %73 = tpu.matmul %72, %59, %cst_25 {dimension_numbers = #tpu.dot_dimension_numbers<[1], [0], [0], [1], [0, 0, 1, 1], [], []>} : vector<8x8xbf16>, vector<8x8xbf16>, vector<8x8xf32> -> vector<8x8xf32>
    %c0_26 = arith.constant 0 : index
    %c16 = arith.constant 16 : index
    %74 = vector.load %arg12[%c0_26, %c16] : memref<8x32xf32, #tpu.memory_space<vmem>>, vector<8x8xf32>
    tpu.vector_store %arg12[%c0_26, %c16], %73 {strides = array<i32>} : memref<8x32xf32, #tpu.memory_space<vmem>>, vector<8x8xf32>,
    %75 = vector.extract_strided_slice %9 {offsets = [0, 24], sizes = [8, 8], strides = [1, 1]} : vector<8x32xf32> to vector<8x8xf32>
    %76 = arith.truncf %75 : vector<8x8xf32> to vector<8x8xbf16>
    %c0_27 = arith.constant 0 : index
    %c56 = arith.constant 56 : index
    %77 = vector.load %arg11[%c0_27, %c56] : memref<8x96xf32, #tpu.memory_space<vmem>>, vector<8x8xf32>
    %78 = arith.truncf %77 : vector<8x8xf32> to vector<8x8xbf16>
    %c0_28 = arith.constant 0 : index
    %c88 = arith.constant 88 : index
    %79 = vector.load %arg11[%c0_28, %c88] : memref<8x96xf32, #tpu.memory_space<vmem>>, vector<8x8xf32>
    %80 = arith.truncf %79 : vector<8x8xf32> to vector<8x8xbf16>
    %cst_29 = arith.constant dense<0.000000e+00> : vector<8x8xf32>
    %81 = tpu.matmul %76, %78, %cst_29 {dimension_numbers = #tpu.dot_dimension_numbers<[1], [1], [0], [0], [0, 0, 1, 0], [], []>} : vector<8x8xbf16>, vector<8x8xbf16>, vector<8x8xf32> -> vector<8x8xf32>
    %82 = vector.broadcast %11 : vector<1x8xf32> to vector<8x8xf32>
    %83 = arith.addf %81, %82 : vector<8x8xf32>
    %cst_30 = arith.constant dense<0xFF800000> : vector<8xf32>
    %84 = vector.multi_reduction <maximumf>, %83, %cst_30 [1] : vector<8x8xf32> to vector<8xf32>
    %85 = vector.shape_cast %84 : vector<8xf32> to vector<8x1xf32>
    %86 = vector.broadcast %85 : vector<8x1xf32> to vector<8x8xf32>
    %87 = arith.subf %83, %86 : vector<8x8xf32>
    %88 = math.exp %87 : vector<8x8xf32>
    %cst_31 = arith.constant dense<0.000000e+00> : vector<8xf32>
    %89 = vector.multi_reduction <add>, %88, %cst_31 [1] : vector<8x8xf32> to vector<8xf32>
    %90 = vector.shape_cast %89 : vector<8xf32> to vector<8x1xf32>
    %91 = vector.broadcast %90 : vector<8x1xf32> to vector<8x8xf32>
    %92 = arith.divf %88, %91 : vector<8x8xf32>
    %93 = arith.truncf %92 : vector<8x8xf32> to vector<8x8xbf16>
    %cst_32 = arith.constant dense<0.000000e+00> : vector<8x8xf32>
    %94 = tpu.matmul %93, %80, %cst_32 {dimension_numbers = #tpu.dot_dimension_numbers<[1], [0], [0], [1], [0, 0, 1, 1], [], []>} : vector<8x8xbf16>, vector<8x8xbf16>, vector<8x8xf32> -> vector<8x8xf32>
    %c0_33 = arith.constant 0 : index
    %c24 = arith.constant 24 : index
    %95 = vector.load %arg12[%c0_33, %c24] : memref<8x32xf32, #tpu.memory_space<vmem>>, vector<8x8xf32>
    tpu.vector_store %arg12[%c0_33, %c24], %94 {strides = array<i32>} : memref<8x32xf32, #tpu.memory_space<vmem>>, vector<8x8xf32>,
    %c0_34 = arith.constant 0 : index
    %c0_35 = arith.constant 0 : index
    %96 = vector.load %arg12[%c0_34, %c0_35] : memref<8x32xf32, #tpu.memory_space<vmem>>, vector<8x32xf32>
    %c0_36 = arith.constant 0 : index
    %c0_37 = arith.constant 0 : index
    %97 = vector.load %arg6[%c0_36, %c0_37] : memref<32x32xbf16, #tpu.memory_space<vmem>>, vector<32x32xbf16>
    %98 = arith.truncf %96 : vector<8x32xf32> to vector<8x32xbf16>
    %cst_38 = arith.constant dense<0.000000e+00> : vector<8x32xf32>
    %99 = tpu.matmul %98, %97, %cst_38 {dimension_numbers = #tpu.dot_dimension_numbers<[1], [0], [0], [1], [0, 0, 1, 1], [], []>} : vector<8x32xbf16>, vector<32x32xbf16>, vector<8x32xf32> -> vector<8x32xf32>
    %c0_39 = arith.constant 0 : index
    %c0_40 = arith.constant 0 : index
    %100 = vector.load %arg7[%c0_39, %c0_40] : memref<1x32xf32, #tpu.memory_space<vmem>>, vector<1x32xf32>
    %101 = vector.broadcast %100 : vector<1x32xf32> to vector<8x32xf32>
    %102 = arith.addf %99, %101 : vector<8x32xf32>
    %103 = arith.addf %7, %102 : vector<8x32xf32>
    %c0_41 = arith.constant 0 : index
    %c0_42 = arith.constant 0 : index
    %104 = vector.load %arg8[%c0_41, %c0_42] : memref<1x32xf32, #tpu.memory_space<vmem>>, vector<1x32xf32>
    %c0_43 = arith.constant 0 : index
    %c0_44 = arith.constant 0 : index
    %105 = vector.load %arg9[%c0_43, %c0_44] : memref<1x32xf32, #tpu.memory_space<vmem>>, vector<1x32xf32>
    %cst_45 = arith.constant dense<0.000000e+00> : vector<8xf32>
    %106 = vector.multi_reduction <add>, %103, %cst_45 [1] : vector<8x32xf32> to vector<8xf32>
    %107 = vector.shape_cast %106 : vector<8xf32> to vector<8x1xf32>
    %cst_46 = arith.constant 3.200000e+01 : f32
    %108 = vector.broadcast %cst_46 : f32 to vector<8x1xf32>
    %109 = arith.divf %107, %108 : vector<8x1xf32>
    %110 = vector.broadcast %109 : vector<8x1xf32> to vector<8x32xf32>
    %111 = arith.subf %103, %110 : vector<8x32xf32>
    %112 = arith.mulf %111, %111 : vector<8x32xf32>
    %cst_47 = arith.constant dense<0.000000e+00> : vector<8xf32>
    %113 = vector.multi_reduction <add>, %112, %cst_47 [1] : vector<8x32xf32> to vector<8xf32>
    %114 = vector.shape_cast %113 : vector<8xf32> to vector<8x1xf32>
    %cst_48 = arith.constant 3.200000e+01 : f32
    %115 = vector.broadcast %cst_48 : f32 to vector<8x1xf32>
    %116 = arith.divf %114, %115 : vector<8x1xf32>
    %117 = vector.broadcast %109 : vector<8x1xf32> to vector<8x32xf32>
    %118 = arith.subf %103, %117 : vector<8x32xf32>
    %cst_49 = arith.constant 9.99999974E-6 : f32
    %119 = vector.broadcast %cst_49 : f32 to vector<8x1xf32>
    %120 = arith.addf %116, %119 : vector<8x1xf32>
    %121 = math.rsqrt %120 : vector<8x1xf32>
    %122 = vector.broadcast %121 : vector<8x1xf32> to vector<8x32xf32>
    %123 = arith.mulf %118, %122 : vector<8x32xf32>
    %124 = vector.broadcast %104 : vector<1x32xf32> to vector<8x32xf32>
    %125 = arith.mulf %123, %124 : vector<8x32xf32>
    %126 = vector.broadcast %105 : vector<1x32xf32> to vector<8x32xf32>
    %127 = arith.addf %125, %126 : vector<8x32xf32>
    %c0_50 = arith.constant 0 : index
    %c0_51 = arith.constant 0 : index
    %c0_52 = arith.constant 0 : index
    %128 = vector.load %arg10[%c0_50, %c0_51, %c0_52] : memref<1x8x32xf32, #tpu.memory_space<vmem>>, vector<1x8x32xf32>
    %129 = vector.shape_cast %128 : vector<1x8x32xf32> to vector<8x32xf32>
    %130 = vector.shape_cast %127 : vector<8x32xf32> to vector<1x8x32xf32>
    tpu.vector_store %arg10[%c0_50, %c0_51, %c0_52], %130 {strides = array<i32>} : memref<1x8x32xf32, #tpu.memory_space<vmem>>, vector<1x8x32xf32>,
    return
  }
  func.func @transform_0(%arg0: i32, %arg1: i32) -> (i32, i32, i32) {
    %c0_i32 = arith.constant 0 : i32
    %c0_i32_0 = arith.constant 0 : i32
    %c0_i32_1 = arith.constant 0 : i32
    return %arg0, %c0_i32, %c0_i32_0 : i32, i32, i32
  }
  func.func @transform_1(%arg0: i32, %arg1: i32) -> (i32, i32, i32) {
    %c0_i32 = arith.constant 0 : i32
    %c0_i32_0 = arith.constant 0 : i32
    %c0_i32_1 = arith.constant 0 : i32
    return %arg0, %c0_i32, %c0_i32_0 : i32, i32, i32
  }
  func.func @transform_2(%arg0: i32, %arg1: i32) -> (i32, i32) {
    %c0_i32 = arith.constant 0 : i32
    %c0_i32_0 = arith.constant 0 : i32
    %c0_i32_1 = arith.constant 0 : i32
    return %c0_i32, %c0_i32_0 : i32, i32
  }
  func.func @transform_3(%arg0: i32, %arg1: i32) -> (i32, i32) {
    %c0_i32 = arith.constant 0 : i32
    %c0_i32_0 = arith.constant 0 : i32
    %c0_i32_1 = arith.constant 0 : i32
    return %c0_i32, %c0_i32_0 : i32, i32
  }
  func.func @transform_4(%arg0: i32, %arg1: i32) -> (i32, i32) {
    %c0_i32 = arith.constant 0 : i32
    %c0_i32_0 = arith.constant 0 : i32
    %c0_i32_1 = arith.constant 0 : i32
    return %c0_i32, %c0_i32_0 : i32, i32
  }
  func.func @transform_5(%arg0: i32, %arg1: i32) -> (i32, i32) {
    %c0_i32 = arith.constant 0 : i32
    %c0_i32_0 = arith.constant 0 : i32
    %c0_i32_1 = arith.constant 0 : i32
    return %c0_i32, %c0_i32_0 : i32, i32
  }
  func.func @transform_6(%arg0: i32, %arg1: i32) -> (i32, i32) {
    %c0_i32 = arith.constant 0 : i32
    %c0_i32_0 = arith.constant 0 : i32
    %c0_i32_1 = arith.constant 0 : i32
    return %c0_i32, %c0_i32_0 : i32, i32
  }
  func.func @transform_7(%arg0: i32, %arg1: i32) -> (i32, i32) {
    %c0_i32 = arith.constant 0 : i32
    %c0_i32_0 = arith.constant 0 : i32
    %c0_i32_1 = arith.constant 0 : i32
    return %c0_i32, %c0_i32_0 : i32, i32
  }
  func.func @transform_8(%arg0: i32, %arg1: i32) -> (i32, i32, i32) {
    %c0_i32 = arith.constant 0 : i32
    %c0_i32_0 = arith.constant 0 : i32
    return %arg0, %arg1, %c0_i32 : i32, i32, i32
  }
}

module attributes {stable_mosaic.version = 11 : i64} {
  func.func @_layernorm_kernel(%arg0: i32, %arg1: memref<16x32xf32, #tpu.memory_space<vmem>>, %arg2: memref<1x32xf32, #tpu.memory_space<vmem>>, %arg3: memref<1x32xf32, #tpu.memory_space<vmem>>, %arg4: memref<16x32xf32, #tpu.memory_space<vmem>>) attributes {dimension_semantics = [#tpu.dimension_semantics<parallel>], iteration_bounds = array<i64: 1>, scalar_prefetch = 0 : i64, scratch_operands = 0 : i64, tpu.core_type = #tpu.core_type<tc>, window_params = [{transform_indices = @transform_0, window_bounds = array<i64: 16, 32>}, {pipeline_mode = #tpu.pipeline_mode<synchronous>, transform_indices = @transform_1, window_bounds = array<i64: 1, 32>}, {pipeline_mode = #tpu.pipeline_mode<synchronous>, transform_indices = @transform_2, window_bounds = array<i64: 1, 32>}, {transform_indices = @transform_3, window_bounds = array<i64: 16, 32>}]} {
    %c0 = arith.constant 0 : index
    %c0_0 = arith.constant 0 : index
    %0 = vector.load %arg1[%c0, %c0_0] : memref<16x32xf32, #tpu.memory_space<vmem>>, vector<16x32xf32>
    %c0_1 = arith.constant 0 : index
    %c0_2 = arith.constant 0 : index
    %1 = vector.load %arg2[%c0_1, %c0_2] : memref<1x32xf32, #tpu.memory_space<vmem>>, vector<1x32xf32>
    %c0_3 = arith.constant 0 : index
    %c0_4 = arith.constant 0 : index
    %2 = vector.load %arg3[%c0_3, %c0_4] : memref<1x32xf32, #tpu.memory_space<vmem>>, vector<1x32xf32>
    %cst = arith.constant dense<0.000000e+00> : vector<16xf32>
    %3 = vector.multi_reduction <add>, %0, %cst [1] : vector<16x32xf32> to vector<16xf32>
    %4 = vector.shape_cast %3 : vector<16xf32> to vector<16x1xf32>
    %cst_5 = arith.constant 3.200000e+01 : f32
    %5 = vector.broadcast %cst_5 : f32 to vector<16x1xf32>
    %6 = arith.divf %4, %5 : vector<16x1xf32>
    %7 = vector.broadcast %6 : vector<16x1xf32> to vector<16x32xf32>
    %8 = arith.subf %0, %7 : vector<16x32xf32>
    %9 = arith.mulf %8, %8 : vector<16x32xf32>
    %cst_6 = arith.constant dense<0.000000e+00> : vector<16xf32>
    %10 = vector.multi_reduction <add>, %9, %cst_6 [1] : vector<16x32xf32> to vector<16xf32>
    %11 = vector.shape_cast %10 : vector<16xf32> to vector<16x1xf32>
    %cst_7 = arith.constant 3.200000e+01 : f32
    %12 = vector.broadcast %cst_7 : f32 to vector<16x1xf32>
    %13 = arith.divf %11, %12 : vector<16x1xf32>
    %14 = vector.broadcast %6 : vector<16x1xf32> to vector<16x32xf32>
    %15 = arith.subf %0, %14 : vector<16x32xf32>
    %cst_8 = arith.constant 9.99999974E-6 : f32
    %16 = vector.broadcast %cst_8 : f32 to vector<16x1xf32>
    %17 = arith.addf %13, %16 : vector<16x1xf32>
    %18 = math.rsqrt %17 : vector<16x1xf32>
    %19 = vector.broadcast %18 : vector<16x1xf32> to vector<16x32xf32>
    %20 = arith.mulf %15, %19 : vector<16x32xf32>
    %21 = vector.broadcast %1 : vector<1x32xf32> to vector<16x32xf32>
    %22 = arith.mulf %20, %21 : vector<16x32xf32>
    %23 = vector.broadcast %2 : vector<1x32xf32> to vector<16x32xf32>
    %24 = arith.addf %22, %23 : vector<16x32xf32>
    %c0_9 = arith.constant 0 : index
    %c0_10 = arith.constant 0 : index
    %25 = vector.load %arg4[%c0_9, %c0_10] : memref<16x32xf32, #tpu.memory_space<vmem>>, vector<16x32xf32>
    tpu.vector_store %arg4[%c0_9, %c0_10], %24 {strides = array<i32>} : memref<16x32xf32, #tpu.memory_space<vmem>>, vector<16x32xf32>,
    return
  }
  func.func @transform_0(%arg0: i32) -> (i32, i32) {
    %c0_i32 = arith.constant 0 : i32
    %c0_i32_0 = arith.constant 0 : i32
    return %arg0, %c0_i32 : i32, i32
  }
  func.func @transform_1(%arg0: i32) -> (i32, i32) {
    %c0_i32 = arith.constant 0 : i32
    %c0_i32_0 = arith.constant 0 : i32
    %c0_i32_1 = arith.constant 0 : i32
    return %c0_i32, %c0_i32_0 : i32, i32
  }
  func.func @transform_2(%arg0: i32) -> (i32, i32) {
    %c0_i32 = arith.constant 0 : i32
    %c0_i32_0 = arith.constant 0 : i32
    %c0_i32_1 = arith.constant 0 : i32
    return %c0_i32, %c0_i32_0 : i32, i32
  }
  func.func @transform_3(%arg0: i32) -> (i32, i32) {
    %c0_i32 = arith.constant 0 : i32
    %c0_i32_0 = arith.constant 0 : i32
    return %arg0, %c0_i32 : i32, i32
  }
}

module attributes {stable_mosaic.version = 11 : i64} {
  func.func @_ffn_block_kernel(%arg0: i32, %arg1: memref<16x32xf32, #tpu.memory_space<vmem>>, %arg2: memref<32x64xbf16, #tpu.memory_space<vmem>>, %arg3: memref<1x64xf32, #tpu.memory_space<vmem>>, %arg4: memref<64x32xbf16, #tpu.memory_space<vmem>>, %arg5: memref<1x32xf32, #tpu.memory_space<vmem>>, %arg6: memref<1x32xf32, #tpu.memory_space<vmem>>, %arg7: memref<1x32xf32, #tpu.memory_space<vmem>>, %arg8: memref<16x32xf32, #tpu.memory_space<vmem>>) attributes {dimension_semantics = [#tpu.dimension_semantics<parallel>], iteration_bounds = array<i64: 1>, scalar_prefetch = 0 : i64, scratch_operands = 0 : i64, tpu.core_type = #tpu.core_type<tc>, window_params = [{transform_indices = @transform_0, window_bounds = array<i64: 16, 32>}, {pipeline_mode = #tpu.pipeline_mode<synchronous>, transform_indices = @transform_1, window_bounds = array<i64: 32, 64>}, {pipeline_mode = #tpu.pipeline_mode<synchronous>, transform_indices = @transform_2, window_bounds = array<i64: 1, 64>}, {pipeline_mode = #tpu.pipeline_mode<synchronous>, transform_indices = @transform_3, window_bounds = array<i64: 64, 32>}, {pipeline_mode = #tpu.pipeline_mode<synchronous>, transform_indices = @transform_4, window_bounds = array<i64: 1, 32>}, {pipeline_mode = #tpu.pipeline_mode<synchronous>, transform_indices = @transform_5, window_bounds = array<i64: 1, 32>}, {pipeline_mode = #tpu.pipeline_mode<synchronous>, transform_indices = @transform_6, window_bounds = array<i64: 1, 32>}, {transform_indices = @transform_7, window_bounds = array<i64: 16, 32>}]} {
    %c0 = arith.constant 0 : index
    %c0_0 = arith.constant 0 : index
    %0 = vector.load %arg1[%c0, %c0_0] : memref<16x32xf32, #tpu.memory_space<vmem>>, vector<16x32xf32>
    %c0_1 = arith.constant 0 : index
    %c0_2 = arith.constant 0 : index
    %1 = vector.load %arg2[%c0_1, %c0_2] : memref<32x64xbf16, #tpu.memory_space<vmem>>, vector<32x64xbf16>
    %2 = arith.truncf %0 : vector<16x32xf32> to vector<16x32xbf16>
    %cst = arith.constant dense<0.000000e+00> : vector<16x64xf32>
    %3 = tpu.matmul %2, %1, %cst {dimension_numbers = #tpu.dot_dimension_numbers<[1], [0], [0], [1], [0, 0, 1, 1], [], []>} : vector<16x32xbf16>, vector<32x64xbf16>, vector<16x64xf32> -> vector<16x64xf32>
    %c0_3 = arith.constant 0 : index
    %c0_4 = arith.constant 0 : index
    %4 = vector.load %arg3[%c0_3, %c0_4] : memref<1x64xf32, #tpu.memory_space<vmem>>, vector<1x64xf32>
    %5 = vector.broadcast %4 : vector<1x64xf32> to vector<16x64xf32>
    %6 = arith.addf %3, %5 : vector<16x64xf32>
    %cst_5 = arith.constant 0.000000e+00 : f32
    %7 = vector.broadcast %cst_5 : f32 to vector<16x64xf32>
    %8 = arith.maximumf %6, %7 : vector<16x64xf32>
    %c0_6 = arith.constant 0 : index
    %c0_7 = arith.constant 0 : index
    %9 = vector.load %arg4[%c0_6, %c0_7] : memref<64x32xbf16, #tpu.memory_space<vmem>>, vector<64x32xbf16>
    %10 = arith.truncf %8 : vector<16x64xf32> to vector<16x64xbf16>
    %cst_8 = arith.constant dense<0.000000e+00> : vector<16x32xf32>
    %11 = tpu.matmul %10, %9, %cst_8 {dimension_numbers = #tpu.dot_dimension_numbers<[1], [0], [0], [1], [0, 0, 1, 1], [], []>} : vector<16x64xbf16>, vector<64x32xbf16>, vector<16x32xf32> -> vector<16x32xf32>
    %c0_9 = arith.constant 0 : index
    %c0_10 = arith.constant 0 : index
    %12 = vector.load %arg5[%c0_9, %c0_10] : memref<1x32xf32, #tpu.memory_space<vmem>>, vector<1x32xf32>
    %13 = vector.broadcast %12 : vector<1x32xf32> to vector<16x32xf32>
    %14 = arith.addf %11, %13 : vector<16x32xf32>
    %15 = arith.addf %0, %14 : vector<16x32xf32>
    %c0_11 = arith.constant 0 : index
    %c0_12 = arith.constant 0 : index
    %16 = vector.load %arg6[%c0_11, %c0_12] : memref<1x32xf32, #tpu.memory_space<vmem>>, vector<1x32xf32>
    %c0_13 = arith.constant 0 : index
    %c0_14 = arith.constant 0 : index
    %17 = vector.load %arg7[%c0_13, %c0_14] : memref<1x32xf32, #tpu.memory_space<vmem>>, vector<1x32xf32>
    %cst_15 = arith.constant dense<0.000000e+00> : vector<16xf32>
    %18 = vector.multi_reduction <add>, %15, %cst_15 [1] : vector<16x32xf32> to vector<16xf32>
    %19 = vector.shape_cast %18 : vector<16xf32> to vector<16x1xf32>
    %cst_16 = arith.constant 3.200000e+01 : f32
    %20 = vector.broadcast %cst_16 : f32 to vector<16x1xf32>
    %21 = arith.divf %19, %20 : vector<16x1xf32>
    %22 = vector.broadcast %21 : vector<16x1xf32> to vector<16x32xf32>
    %23 = arith.subf %15, %22 : vector<16x32xf32>
    %24 = arith.mulf %23, %23 : vector<16x32xf32>
    %cst_17 = arith.constant dense<0.000000e+00> : vector<16xf32>
    %25 = vector.multi_reduction <add>, %24, %cst_17 [1] : vector<16x32xf32> to vector<16xf32>
    %26 = vector.shape_cast %25 : vector<16xf32> to vector<16x1xf32>
    %cst_18 = arith.constant 3.200000e+01 : f32
    %27 = vector.broadcast %cst_18 : f32 to vector<16x1xf32>
    %28 = arith.divf %26, %27 : vector<16x1xf32>
    %29 = vector.broadcast %21 : vector<16x1xf32> to vector<16x32xf32>
    %30 = arith.subf %15, %29 : vector<16x32xf32>
    %cst_19 = arith.constant 9.99999974E-6 : f32
    %31 = vector.broadcast %cst_19 : f32 to vector<16x1xf32>
    %32 = arith.addf %28, %31 : vector<16x1xf32>
    %33 = math.rsqrt %32 : vector<16x1xf32>
    %34 = vector.broadcast %33 : vector<16x1xf32> to vector<16x32xf32>
    %35 = arith.mulf %30, %34 : vector<16x32xf32>
    %36 = vector.broadcast %16 : vector<1x32xf32> to vector<16x32xf32>
    %37 = arith.mulf %35, %36 : vector<16x32xf32>
    %38 = vector.broadcast %17 : vector<1x32xf32> to vector<16x32xf32>
    %39 = arith.addf %37, %38 : vector<16x32xf32>
    %c0_20 = arith.constant 0 : index
    %c0_21 = arith.constant 0 : index
    %40 = vector.load %arg8[%c0_20, %c0_21] : memref<16x32xf32, #tpu.memory_space<vmem>>, vector<16x32xf32>
    tpu.vector_store %arg8[%c0_20, %c0_21], %39 {strides = array<i32>} : memref<16x32xf32, #tpu.memory_space<vmem>>, vector<16x32xf32>,
    return
  }
  func.func @transform_0(%arg0: i32) -> (i32, i32) {
    %c0_i32 = arith.constant 0 : i32
    %c0_i32_0 = arith.constant 0 : i32
    return %arg0, %c0_i32 : i32, i32
  }
  func.func @transform_1(%arg0: i32) -> (i32, i32) {
    %c0_i32 = arith.constant 0 : i32
    %c0_i32_0 = arith.constant 0 : i32
    %c0_i32_1 = arith.constant 0 : i32
    return %c0_i32, %c0_i32_0 : i32, i32
  }
  func.func @transform_2(%arg0: i32) -> (i32, i32) {
    %c0_i32 = arith.constant 0 : i32
    %c0_i32_0 = arith.constant 0 : i32
    %c0_i32_1 = arith.constant 0 : i32
    return %c0_i32, %c0_i32_0 : i32, i32
  }
  func.func @transform_3(%arg0: i32) -> (i32, i32) {
    %c0_i32 = arith.constant 0 : i32
    %c0_i32_0 = arith.constant 0 : i32
    %c0_i32_1 = arith.constant 0 : i32
    return %c0_i32, %c0_i32_0 : i32, i32
  }
  func.func @transform_4(%arg0: i32) -> (i32, i32) {
    %c0_i32 = arith.constant 0 : i32
    %c0_i32_0 = arith.constant 0 : i32
    %c0_i32_1 = arith.constant 0 : i32
    return %c0_i32, %c0_i32_0 : i32, i32
  }
  func.func @transform_5(%arg0: i32) -> (i32, i32) {
    %c0_i32 = arith.constant 0 : i32
    %c0_i32_0 = arith.constant 0 : i32
    %c0_i32_1 = arith.constant 0 : i32
    return %c0_i32, %c0_i32_0 : i32, i32
  }
  func.func @transform_6(%arg0: i32) -> (i32, i32) {
    %c0_i32 = arith.constant 0 : i32
    %c0_i32_0 = arith.constant 0 : i32
    %c0_i32_1 = arith.constant 0 : i32
    return %c0_i32, %c0_i32_0 : i32, i32
  }
  func.func @transform_7(%arg0: i32) -> (i32, i32) {
    %c0_i32 = arith.constant 0 : i32
    %c0_i32_0 = arith.constant 0 : i32
    return %arg0, %c0_i32 : i32, i32
  }
}

module attributes {stable_mosaic.version = 11 : i64} {
  func.func @_self_attn_kernel(%arg0: i32, %arg1: i32, %arg2: memref<1x8x32xf32, #tpu.memory_space<vmem>>, %arg3: memref<1x1x8xf32, #tpu.memory_space<vmem>>, %arg4: memref<8x8xf32, #tpu.memory_space<vmem>>, %arg5: memref<32x96xbf16, #tpu.memory_space<vmem>>, %arg6: memref<1x96xf32, #tpu.memory_space<vmem>>, %arg7: memref<32x32xbf16, #tpu.memory_space<vmem>>, %arg8: memref<1x32xf32, #tpu.memory_space<vmem>>, %arg9: memref<1x32xf32, #tpu.memory_space<vmem>>, %arg10: memref<1x32xf32, #tpu.memory_space<vmem>>, %arg11: memref<1x8x32xf32, #tpu.memory_space<vmem>>, %arg12: memref<8x96xf32, #tpu.memory_space<vmem>>, %arg13: memref<8x32xf32, #tpu.memory_space<vmem>>) attributes {dimension_semantics = [#tpu.dimension_semantics<parallel>, #tpu.dimension_semantics<arbitrary>], iteration_bounds = array<i64: 2, 1>, scalar_prefetch = 0 : i64, scratch_operands = 2 : i64, tpu.core_type = #tpu.core_type<tc>, window_params = [{transform_indices = @transform_0, window_bounds = array<i64: 1, 8, 32>}, {transform_indices = @transform_1, window_bounds = array<i64: 1, 1, 8>}, {transform_indices = @transform_2, window_bounds = array<i64: 8, 8>}, {pipeline_mode = #tpu.pipeline_mode<synchronous>, transform_indices = @transform_3, window_bounds = array<i64: 32, 96>}, {pipeline_mode = #tpu.pipeline_mode<synchronous>, transform_indices = @transform_4, window_bounds = array<i64: 1, 96>}, {pipeline_mode = #tpu.pipeline_mode<synchronous>, transform_indices = @transform_5, window_bounds = array<i64: 32, 32>}, {pipeline_mode = #tpu.pipeline_mode<synchronous>, transform_indices = @transform_6, window_bounds = array<i64: 1, 32>}, {pipeline_mode = #tpu.pipeline_mode<synchronous>, transform_indices = @transform_7, window_bounds = array<i64: 1, 32>}, {pipeline_mode = #tpu.pipeline_mode<synchronous>, transform_indices = @transform_8, window_bounds = array<i64: 1, 32>}, {transform_indices = @transform_9, window_bounds = array<i64: 1, 8, 32>}]} {
    %c0_i32 = arith.constant 0 : i32
    %0 = arith.cmpi eq, %arg1, %c0_i32 : i32
    %1 = arith.extui %0 : i1 to i32
    %c0_i32_0 = arith.constant 0 : i32
    %2 = arith.cmpi ne, %1, %c0_i32_0 : i32
    scf.if %2 {
      %c0_55 = arith.constant 0 : index
      %c0_56 = arith.constant 0 : index
      %c0_57 = arith.constant 0 : index
      %130 = vector.load %arg2[%c0_55, %c0_56, %c0_57] : memref<1x8x32xf32, #tpu.memory_space<vmem>>, vector<1x8x32xf32>
      %131 = vector.shape_cast %130 : vector<1x8x32xf32> to vector<8x32xf32>
      %c0_58 = arith.constant 0 : index
      %c0_59 = arith.constant 0 : index
      %132 = vector.load %arg5[%c0_58, %c0_59] : memref<32x96xbf16, #tpu.memory_space<vmem>>, vector<32x96xbf16>
      %133 = arith.truncf %131 : vector<8x32xf32> to vector<8x32xbf16>
      %cst_60 = arith.constant dense<0.000000e+00> : vector<8x96xf32>
      %134 = tpu.matmul %133, %132, %cst_60 {dimension_numbers = #tpu.dot_dimension_numbers<[1], [0], [0], [1], [0, 0, 1, 1], [], []>} : vector<8x32xbf16>, vector<32x96xbf16>, vector<8x96xf32> -> vector<8x96xf32>
      %c0_61 = arith.constant 0 : index
      %c0_62 = arith.constant 0 : index
      %135 = vector.load %arg6[%c0_61, %c0_62] : memref<1x96xf32, #tpu.memory_space<vmem>>, vector<1x96xf32>
      %136 = vector.broadcast %135 : vector<1x96xf32> to vector<8x96xf32>
      %137 = arith.addf %134, %136 : vector<8x96xf32>
      %c0_63 = arith.constant 0 : index
      %c0_64 = arith.constant 0 : index
      %138 = vector.load %arg12[%c0_63, %c0_64] : memref<8x96xf32, #tpu.memory_space<vmem>>, vector<8x96xf32>
      tpu.vector_store %arg12[%c0_63, %c0_64], %137 {strides = array<i32>} : memref<8x96xf32, #tpu.memory_space<vmem>>, vector<8x96xf32>,
    } else {
    }
    %c8_i32 = arith.constant 8 : i32
    %3 = arith.muli %arg1, %c8_i32 : i32
    %4 = tpu.assume_multiple %3, 8 : i32
    %c0 = arith.constant 0 : index
    %5 = arith.index_cast %4 : i32 to index
    %c0_1 = arith.constant 0 : index
    %6 = vector.load %arg2[%c0, %5, %c0_1] : memref<1x8x32xf32, #tpu.memory_space<vmem>>, vector<1x8x32xf32>
    %7 = vector.shape_cast %6 : vector<1x8x32xf32> to vector<8x32xf32>
    %8 = arith.index_cast %4 : i32 to index
    %c0_2 = arith.constant 0 : index
    %9 = vector.load %arg12[%8, %c0_2] : memref<8x96xf32, #tpu.memory_space<vmem>>, vector<8x32xf32>
    %c0_3 = arith.constant 0 : index
    %c0_4 = arith.constant 0 : index
    %c0_5 = arith.constant 0 : index
    %10 = vector.load %arg3[%c0_3, %c0_4, %c0_5] : memref<1x1x8xf32, #tpu.memory_space<vmem>>, vector<1x1x8xf32>
    %11 = vector.shape_cast %10 : vector<1x1x8xf32> to vector<1x8xf32>
    %c0_6 = arith.constant 0 : index
    %c0_7 = arith.constant 0 : index
    %12 = vector.load %arg4[%c0_6, %c0_7] : memref<8x8xf32, #tpu.memory_space<vmem>>, vector<8x8xf32>
    %13 = vector.broadcast %11 : vector<1x8xf32> to vector<8x8xf32>
    %14 = arith.addf %12, %13 : vector<8x8xf32>
    %15 = vector.extract_strided_slice %9 {offsets = [0, 0], sizes = [8, 8], strides = [1, 1]} : vector<8x32xf32> to vector<8x8xf32>
    %16 = arith.truncf %15 : vector<8x8xf32> to vector<8x8xbf16>
    %c0_8 = arith.constant 0 : index
    %c32 = arith.constant 32 : index
    %17 = vector.load %arg12[%c0_8, %c32] : memref<8x96xf32, #tpu.memory_space<vmem>>, vector<8x8xf32>
    %18 = arith.truncf %17 : vector<8x8xf32> to vector<8x8xbf16>
    %c0_9 = arith.constant 0 : index
    %c64 = arith.constant 64 : index
    %19 = vector.load %arg12[%c0_9, %c64] : memref<8x96xf32, #tpu.memory_space<vmem>>, vector<8x8xf32>
    %20 = arith.truncf %19 : vector<8x8xf32> to vector<8x8xbf16>
    %cst = arith.constant dense<0.000000e+00> : vector<8x8xf32>
    %21 = tpu.matmul %16, %18, %cst {dimension_numbers = #tpu.dot_dimension_numbers<[1], [1], [0], [0], [0, 0, 1, 0], [], []>} : vector<8x8xbf16>, vector<8x8xbf16>, vector<8x8xf32> -> vector<8x8xf32>
    %22 = arith.addf %21, %14 : vector<8x8xf32>
    %cst_10 = arith.constant dense<0xFF800000> : vector<8xf32>
    %23 = vector.multi_reduction <maximumf>, %22, %cst_10 [1] : vector<8x8xf32> to vector<8xf32>
    %24 = vector.shape_cast %23 : vector<8xf32> to vector<8x1xf32>
    %25 = vector.broadcast %24 : vector<8x1xf32> to vector<8x8xf32>
    %26 = arith.subf %22, %25 : vector<8x8xf32>
    %27 = math.exp %26 : vector<8x8xf32>
    %cst_11 = arith.constant dense<0.000000e+00> : vector<8xf32>
    %28 = vector.multi_reduction <add>, %27, %cst_11 [1] : vector<8x8xf32> to vector<8xf32>
    %29 = vector.shape_cast %28 : vector<8xf32> to vector<8x1xf32>
    %30 = vector.broadcast %29 : vector<8x1xf32> to vector<8x8xf32>
    %31 = arith.divf %27, %30 : vector<8x8xf32>
    %32 = arith.truncf %31 : vector<8x8xf32> to vector<8x8xbf16>
    %cst_12 = arith.constant dense<0.000000e+00> : vector<8x8xf32>
    %33 = tpu.matmul %32, %20, %cst_12 {dimension_numbers = #tpu.dot_dimension_numbers<[1], [0], [0], [1], [0, 0, 1, 1], [], []>} : vector<8x8xbf16>, vector<8x8xbf16>, vector<8x8xf32> -> vector<8x8xf32>
    %c0_13 = arith.constant 0 : index
    %c0_14 = arith.constant 0 : index
    %34 = vector.load %arg13[%c0_13, %c0_14] : memref<8x32xf32, #tpu.memory_space<vmem>>, vector<8x8xf32>
    tpu.vector_store %arg13[%c0_13, %c0_14], %33 {strides = array<i32>} : memref<8x32xf32, #tpu.memory_space<vmem>>, vector<8x8xf32>,
    %35 = vector.extract_strided_slice %9 {offsets = [0, 8], sizes = [8, 8], strides = [1, 1]} : vector<8x32xf32> to vector<8x8xf32>
    %36 = arith.truncf %35 : vector<8x8xf32> to vector<8x8xbf16>
    %c0_15 = arith.constant 0 : index
    %c40 = arith.constant 40 : index
    %37 = vector.load %arg12[%c0_15, %c40] : memref<8x96xf32, #tpu.memory_space<vmem>>, vector<8x8xf32>
    %38 = arith.truncf %37 : vector<8x8xf32> to vector<8x8xbf16>
    %c0_16 = arith.constant 0 : index
    %c72 = arith.constant 72 : index
    %39 = vector.load %arg12[%c0_16, %c72] : memref<8x96xf32, #tpu.memory_space<vmem>>, vector<8x8xf32>
    %40 = arith.truncf %39 : vector<8x8xf32> to vector<8x8xbf16>
    %cst_17 = arith.constant dense<0.000000e+00> : vector<8x8xf32>
    %41 = tpu.matmul %36, %38, %cst_17 {dimension_numbers = #tpu.dot_dimension_numbers<[1], [1], [0], [0], [0, 0, 1, 0], [], []>} : vector<8x8xbf16>, vector<8x8xbf16>, vector<8x8xf32> -> vector<8x8xf32>
    %42 = arith.addf %41, %14 : vector<8x8xf32>
    %cst_18 = arith.constant dense<0xFF800000> : vector<8xf32>
    %43 = vector.multi_reduction <maximumf>, %42, %cst_18 [1] : vector<8x8xf32> to vector<8xf32>
    %44 = vector.shape_cast %43 : vector<8xf32> to vector<8x1xf32>
    %45 = vector.broadcast %44 : vector<8x1xf32> to vector<8x8xf32>
    %46 = arith.subf %42, %45 : vector<8x8xf32>
    %47 = math.exp %46 : vector<8x8xf32>
    %cst_19 = arith.constant dense<0.000000e+00> : vector<8xf32>
    %48 = vector.multi_reduction <add>, %47, %cst_19 [1] : vector<8x8xf32> to vector<8xf32>
    %49 = vector.shape_cast %48 : vector<8xf32> to vector<8x1xf32>
    %50 = vector.broadcast %49 : vector<8x1xf32> to vector<8x8xf32>
    %51 = arith.divf %47, %50 : vector<8x8xf32>
    %52 = arith.truncf %51 : vector<8x8xf32> to vector<8x8xbf16>
    %cst_20 = arith.constant dense<0.000000e+00> : vector<8x8xf32>
    %53 = tpu.matmul %52, %40, %cst_20 {dimension_numbers = #tpu.dot_dimension_numbers<[1], [0], [0], [1], [0, 0, 1, 1], [], []>} : vector<8x8xbf16>, vector<8x8xbf16>, vector<8x8xf32> -> vector<8x8xf32>
    %c0_21 = arith.constant 0 : index
    %c8 = arith.constant 8 : index
    %54 = vector.load %arg13[%c0_21, %c8] : memref<8x32xf32, #tpu.memory_space<vmem>>, vector<8x8xf32>
    tpu.vector_store %arg13[%c0_21, %c8], %53 {strides = array<i32>} : memref<8x32xf32, #tpu.memory_space<vmem>>, vector<8x8xf32>,
    %55 = vector.extract_strided_slice %9 {offsets = [0, 16], sizes = [8, 8], strides = [1, 1]} : vector<8x32xf32> to vector<8x8xf32>
    %56 = arith.truncf %55 : vector<8x8xf32> to vector<8x8xbf16>
    %c0_22 = arith.constant 0 : index
    %c48 = arith.constant 48 : index
    %57 = vector.load %arg12[%c0_22, %c48] : memref<8x96xf32, #tpu.memory_space<vmem>>, vector<8x8xf32>
    %58 = arith.truncf %57 : vector<8x8xf32> to vector<8x8xbf16>
    %c0_23 = arith.constant 0 : index
    %c80 = arith.constant 80 : index
    %59 = vector.load %arg12[%c0_23, %c80] : memref<8x96xf32, #tpu.memory_space<vmem>>, vector<8x8xf32>
    %60 = arith.truncf %59 : vector<8x8xf32> to vector<8x8xbf16>
    %cst_24 = arith.constant dense<0.000000e+00> : vector<8x8xf32>
    %61 = tpu.matmul %56, %58, %cst_24 {dimension_numbers = #tpu.dot_dimension_numbers<[1], [1], [0], [0], [0, 0, 1, 0], [], []>} : vector<8x8xbf16>, vector<8x8xbf16>, vector<8x8xf32> -> vector<8x8xf32>
    %62 = arith.addf %61, %14 : vector<8x8xf32>
    %cst_25 = arith.constant dense<0xFF800000> : vector<8xf32>
    %63 = vector.multi_reduction <maximumf>, %62, %cst_25 [1] : vector<8x8xf32> to vector<8xf32>
    %64 = vector.shape_cast %63 : vector<8xf32> to vector<8x1xf32>
    %65 = vector.broadcast %64 : vector<8x1xf32> to vector<8x8xf32>
    %66 = arith.subf %62, %65 : vector<8x8xf32>
    %67 = math.exp %66 : vector<8x8xf32>
    %cst_26 = arith.constant dense<0.000000e+00> : vector<8xf32>
    %68 = vector.multi_reduction <add>, %67, %cst_26 [1] : vector<8x8xf32> to vector<8xf32>
    %69 = vector.shape_cast %68 : vector<8xf32> to vector<8x1xf32>
    %70 = vector.broadcast %69 : vector<8x1xf32> to vector<8x8xf32>
    %71 = arith.divf %67, %70 : vector<8x8xf32>
    %72 = arith.truncf %71 : vector<8x8xf32> to vector<8x8xbf16>
    %cst_27 = arith.constant dense<0.000000e+00> : vector<8x8xf32>
    %73 = tpu.matmul %72, %60, %cst_27 {dimension_numbers = #tpu.dot_dimension_numbers<[1], [0], [0], [1], [0, 0, 1, 1], [], []>} : vector<8x8xbf16>, vector<8x8xbf16>, vector<8x8xf32> -> vector<8x8xf32>
    %c0_28 = arith.constant 0 : index
    %c16 = arith.constant 16 : index
    %74 = vector.load %arg13[%c0_28, %c16] : memref<8x32xf32, #tpu.memory_space<vmem>>, vector<8x8xf32>
    tpu.vector_store %arg13[%c0_28, %c16], %73 {strides = array<i32>} : memref<8x32xf32, #tpu.memory_space<vmem>>, vector<8x8xf32>,
    %75 = vector.extract_strided_slice %9 {offsets = [0, 24], sizes = [8, 8], strides = [1, 1]} : vector<8x32xf32> to vector<8x8xf32>
    %76 = arith.truncf %75 : vector<8x8xf32> to vector<8x8xbf16>
    %c0_29 = arith.constant 0 : index
    %c56 = arith.constant 56 : index
    %77 = vector.load %arg12[%c0_29, %c56] : memref<8x96xf32, #tpu.memory_space<vmem>>, vector<8x8xf32>
    %78 = arith.truncf %77 : vector<8x8xf32> to vector<8x8xbf16>
    %c0_30 = arith.constant 0 : index
    %c88 = arith.constant 88 : index
    %79 = vector.load %arg12[%c0_30, %c88] : memref<8x96xf32, #tpu.memory_space<vmem>>, vector<8x8xf32>
    %80 = arith.truncf %79 : vector<8x8xf32> to vector<8x8xbf16>
    %cst_31 = arith.constant dense<0.000000e+00> : vector<8x8xf32>
    %81 = tpu.matmul %76, %78, %cst_31 {dimension_numbers = #tpu.dot_dimension_numbers<[1], [1], [0], [0], [0, 0, 1, 0], [], []>} : vector<8x8xbf16>, vector<8x8xbf16>, vector<8x8xf32> -> vector<8x8xf32>
    %82 = arith.addf %81, %14 : vector<8x8xf32>
    %cst_32 = arith.constant dense<0xFF800000> : vector<8xf32>
    %83 = vector.multi_reduction <maximumf>, %82, %cst_32 [1] : vector<8x8xf32> to vector<8xf32>
    %84 = vector.shape_cast %83 : vector<8xf32> to vector<8x1xf32>
    %85 = vector.broadcast %84 : vector<8x1xf32> to vector<8x8xf32>
    %86 = arith.subf %82, %85 : vector<8x8xf32>
    %87 = math.exp %86 : vector<8x8xf32>
    %cst_33 = arith.constant dense<0.000000e+00> : vector<8xf32>
    %88 = vector.multi_reduction <add>, %87, %cst_33 [1] : vector<8x8xf32> to vector<8xf32>
    %89 = vector.shape_cast %88 : vector<8xf32> to vector<8x1xf32>
    %90 = vector.broadcast %89 : vector<8x1xf32> to vector<8x8xf32>
    %91 = arith.divf %87, %90 : vector<8x8xf32>
    %92 = arith.truncf %91 : vector<8x8xf32> to vector<8x8xbf16>
    %cst_34 = arith.constant dense<0.000000e+00> : vector<8x8xf32>
    %93 = tpu.matmul %92, %80, %cst_34 {dimension_numbers = #tpu.dot_dimension_numbers<[1], [0], [0], [1], [0, 0, 1, 1], [], []>} : vector<8x8xbf16>, vector<8x8xbf16>, vector<8x8xf32> -> vector<8x8xf32>
    %c0_35 = arith.constant 0 : index
    %c24 = arith.constant 24 : index
    %94 = vector.load %arg13[%c0_35, %c24] : memref<8x32xf32, #tpu.memory_space<vmem>>, vector<8x8xf32>
    tpu.vector_store %arg13[%c0_35, %c24], %93 {strides = array<i32>} : memref<8x32xf32, #tpu.memory_space<vmem>>, vector<8x8xf32>,
    %c0_36 = arith.constant 0 : index
    %c0_37 = arith.constant 0 : index
    %95 = vector.load %arg13[%c0_36, %c0_37] : memref<8x32xf32, #tpu.memory_space<vmem>>, vector<8x32xf32>
    %c0_38 = arith.constant 0 : index
    %c0_39 = arith.constant 0 : index
    %96 = vector.load %arg7[%c0_38, %c0_39] : memref<32x32xbf16, #tpu.memory_space<vmem>>, vector<32x32xbf16>
    %97 = arith.truncf %95 : vector<8x32xf32> to vector<8x32xbf16>
    %cst_40 = arith.constant dense<0.000000e+00> : vector<8x32xf32>
    %98 = tpu.matmul %97, %96, %cst_40 {dimension_numbers = #tpu.dot_dimension_numbers<[1], [0], [0], [1], [0, 0, 1, 1], [], []>} : vector<8x32xbf16>, vector<32x32xbf16>, vector<8x32xf32> -> vector<8x32xf32>
    %c0_41 = arith.constant 0 : index
    %c0_42 = arith.constant 0 : index
    %99 = vector.load %arg8[%c0_41, %c0_42] : memref<1x32xf32, #tpu.memory_space<vmem>>, vector<1x32xf32>
    %100 = vector.broadcast %99 : vector<1x32xf32> to vector<8x32xf32>
    %101 = arith.addf %98, %100 : vector<8x32xf32>
    %102 = arith.addf %7, %101 : vector<8x32xf32>
    %c0_43 = arith.constant 0 : index
    %c0_44 = arith.constant 0 : index
    %103 = vector.load %arg9[%c0_43, %c0_44] : memref<1x32xf32, #tpu.memory_space<vmem>>, vector<1x32xf32>
    %c0_45 = arith.constant 0 : index
    %c0_46 = arith.constant 0 : index
    %104 = vector.load %arg10[%c0_45, %c0_46] : memref<1x32xf32, #tpu.memory_space<vmem>>, vector<1x32xf32>
    %cst_47 = arith.constant dense<0.000000e+00> : vector<8xf32>
    %105 = vector.multi_reduction <add>, %102, %cst_47 [1] : vector<8x32xf32> to vector<8xf32>
    %106 = vector.shape_cast %105 : vector<8xf32> to vector<8x1xf32>
    %cst_48 = arith.constant 3.200000e+01 : f32
    %107 = vector.broadcast %cst_48 : f32 to vector<8x1xf32>
    %108 = arith.divf %106, %107 : vector<8x1xf32>
    %109 = vector.broadcast %108 : vector<8x1xf32> to vector<8x32xf32>
    %110 = arith.subf %102, %109 : vector<8x32xf32>
    %111 = arith.mulf %110, %110 : vector<8x32xf32>
    %cst_49 = arith.constant dense<0.000000e+00> : vector<8xf32>
    %112 = vector.multi_reduction <add>, %111, %cst_49 [1] : vector<8x32xf32> to vector<8xf32>
    %113 = vector.shape_cast %112 : vector<8xf32> to vector<8x1xf32>
    %cst_50 = arith.constant 3.200000e+01 : f32
    %114 = vector.broadcast %cst_50 : f32 to vector<8x1xf32>
    %115 = arith.divf %113, %114 : vector<8x1xf32>
    %116 = vector.broadcast %108 : vector<8x1xf32> to vector<8x32xf32>
    %117 = arith.subf %102, %116 : vector<8x32xf32>
    %cst_51 = arith.constant 9.99999974E-6 : f32
    %118 = vector.broadcast %cst_51 : f32 to vector<8x1xf32>
    %119 = arith.addf %115, %118 : vector<8x1xf32>
    %120 = math.rsqrt %119 : vector<8x1xf32>
    %121 = vector.broadcast %120 : vector<8x1xf32> to vector<8x32xf32>
    %122 = arith.mulf %117, %121 : vector<8x32xf32>
    %123 = vector.broadcast %103 : vector<1x32xf32> to vector<8x32xf32>
    %124 = arith.mulf %122, %123 : vector<8x32xf32>
    %125 = vector.broadcast %104 : vector<1x32xf32> to vector<8x32xf32>
    %126 = arith.addf %124, %125 : vector<8x32xf32>
    %c0_52 = arith.constant 0 : index
    %c0_53 = arith.constant 0 : index
    %c0_54 = arith.constant 0 : index
    %127 = vector.load %arg11[%c0_52, %c0_53, %c0_54] : memref<1x8x32xf32, #tpu.memory_space<vmem>>, vector<1x8x32xf32>
    %128 = vector.shape_cast %127 : vector<1x8x32xf32> to vector<8x32xf32>
    %129 = vector.shape_cast %126 : vector<8x32xf32> to vector<1x8x32xf32>
    tpu.vector_store %arg11[%c0_52, %c0_53, %c0_54], %129 {strides = array<i32>} : memref<1x8x32xf32, #tpu.memory_space<vmem>>, vector<1x8x32xf32>,
    return
  }
  func.func @transform_0(%arg0: i32, %arg1: i32) -> (i32, i32, i32) {
    %c0_i32 = arith.constant 0 : i32
    %c0_i32_0 = arith.constant 0 : i32
    %c0_i32_1 = arith.constant 0 : i32
    return %arg0, %c0_i32, %c0_i32_0 : i32, i32, i32
  }
  func.func @transform_1(%arg0: i32, %arg1: i32) -> (i32, i32, i32) {
    %c0_i32 = arith.constant 0 : i32
    %c0_i32_0 = arith.constant 0 : i32
    %c0_i32_1 = arith.constant 0 : i32
    return %arg0, %c0_i32, %c0_i32_0 : i32, i32, i32
  }
  func.func @transform_2(%arg0: i32, %arg1: i32) -> (i32, i32) {
    %c0_i32 = arith.constant 0 : i32
    %c0_i32_0 = arith.constant 0 : i32
    return %arg1, %c0_i32 : i32, i32
  }
  func.func @transform_3(%arg0: i32, %arg1: i32) -> (i32, i32) {
    %c0_i32 = arith.constant 0 : i32
    %c0_i32_0 = arith.constant 0 : i32
    %c0_i32_1 = arith.constant 0 : i32
    return %c0_i32, %c0_i32_0 : i32, i32
  }
  func.func @transform_4(%arg0: i32, %arg1: i32) -> (i32, i32) {
    %c0_i32 = arith.constant 0 : i32
    %c0_i32_0 = arith.constant 0 : i32
    %c0_i32_1 = arith.constant 0 : i32
    return %c0_i32, %c0_i32_0 : i32, i32
  }
  func.func @transform_5(%arg0: i32, %arg1: i32) -> (i32, i32) {
    %c0_i32 = arith.constant 0 : i32
    %c0_i32_0 = arith.constant 0 : i32
    %c0_i32_1 = arith.constant 0 : i32
    return %c0_i32, %c0_i32_0 : i32, i32
  }
  func.func @transform_6(%arg0: i32, %arg1: i32) -> (i32, i32) {
    %c0_i32 = arith.constant 0 : i32
    %c0_i32_0 = arith.constant 0 : i32
    %c0_i32_1 = arith.constant 0 : i32
    return %c0_i32, %c0_i32_0 : i32, i32
  }
  func.func @transform_7(%arg0: i32, %arg1: i32) -> (i32, i32) {
    %c0_i32 = arith.constant 0 : i32
    %c0_i32_0 = arith.constant 0 : i32
    %c0_i32_1 = arith.constant 0 : i32
    return %c0_i32, %c0_i32_0 : i32, i32
  }
  func.func @transform_8(%arg0: i32, %arg1: i32) -> (i32, i32) {
    %c0_i32 = arith.constant 0 : i32
    %c0_i32_0 = arith.constant 0 : i32
    %c0_i32_1 = arith.constant 0 : i32
    return %c0_i32, %c0_i32_0 : i32, i32
  }
  func.func @transform_9(%arg0: i32, %arg1: i32) -> (i32, i32, i32) {
    %c0_i32 = arith.constant 0 : i32
    %c0_i32_0 = arith.constant 0 : i32
    return %arg0, %arg1, %c0_i32 : i32, i32, i32
  }
}

module attributes {stable_mosaic.version = 11 : i64} {
  func.func @_linear_kernel(%arg0: i32, %arg1: i32, %arg2: memref<16x32xf32, #tpu.memory_space<vmem>>, %arg3: memref<32x64xbf16, #tpu.memory_space<vmem>>, %arg4: memref<1x64xf32, #tpu.memory_space<vmem>>, %arg5: memref<16x64xf32, #tpu.memory_space<vmem>>) attributes {dimension_semantics = [#tpu.dimension_semantics<parallel>, #tpu.dimension_semantics<parallel>], iteration_bounds = array<i64: 1, 1>, scalar_prefetch = 0 : i64, scratch_operands = 0 : i64, tpu.core_type = #tpu.core_type<tc>, window_params = [{transform_indices = @transform_0, window_bounds = array<i64: 16, 32>}, {transform_indices = @transform_1, window_bounds = array<i64: 32, 64>}, {transform_indices = @transform_2, window_bounds = array<i64: 1, 64>}, {transform_indices = @transform_3, window_bounds = array<i64: 16, 64>}]} {
    %c0 = arith.constant 0 : index
    %c0_0 = arith.constant 0 : index
    %0 = vector.load %arg2[%c0, %c0_0] : memref<16x32xf32, #tpu.memory_space<vmem>>, vector<16x32xf32>
    %c0_1 = arith.constant 0 : index
    %c0_2 = arith.constant 0 : index
    %1 = vector.load %arg3[%c0_1, %c0_2] : memref<32x64xbf16, #tpu.memory_space<vmem>>, vector<32x64xbf16>
    %2 = arith.truncf %0 : vector<16x32xf32> to vector<16x32xbf16>
    %cst = arith.constant dense<0.000000e+00> : vector<16x64xf32>
    %3 = tpu.matmul %2, %1, %cst {dimension_numbers = #tpu.dot_dimension_numbers<[1], [0], [0], [1], [0, 0, 1, 1], [], []>} : vector<16x32xbf16>, vector<32x64xbf16>, vector<16x64xf32> -> vector<16x64xf32>
    %c0_3 = arith.constant 0 : index
    %c0_4 = arith.constant 0 : index
    %4 = vector.load %arg4[%c0_3, %c0_4] : memref<1x64xf32, #tpu.memory_space<vmem>>, vector<1x64xf32>
    %5 = vector.broadcast %4 : vector<1x64xf32> to vector<16x64xf32>
    %6 = arith.addf %3, %5 : vector<16x64xf32>
    %c0_5 = arith.constant 0 : index
    %c0_6 = arith.constant 0 : index
    %7 = vector.load %arg5[%c0_5, %c0_6] : memref<16x64xf32, #tpu.memory_space<vmem>>, vector<16x64xf32>
    tpu.vector_store %arg5[%c0_5, %c0_6], %6 {strides = array<i32>} : memref<16x64xf32, #tpu.memory_space<vmem>>, vector<16x64xf32>,
    return
  }
  func.func @transform_0(%arg0: i32, %arg1: i32) -> (i32, i32) {
    %c0_i32 = arith.constant 0 : i32
    %c0_i32_0 = arith.constant 0 : i32
    return %arg0, %c0_i32 : i32, i32
  }
  func.func @transform_1(%arg0: i32, %arg1: i32) -> (i32, i32) {
    %c0_i32 = arith.constant 0 : i32
    %c0_i32_0 = arith.constant 0 : i32
    return %c0_i32, %arg1 : i32, i32
  }
  func.func @transform_2(%arg0: i32, %arg1: i32) -> (i32, i32) {
    %c0_i32 = arith.constant 0 : i32
    %c0_i32_0 = arith.constant 0 : i32
    return %c0_i32, %arg1 : i32, i32
  }
  func.func @transform_3(%arg0: i32, %arg1: i32) -> (i32, i32) {
    %c0_i32 = arith.constant 0 : i32
    return %arg0, %arg1 : i32, i32
  }
}

module attributes {stable_mosaic.version = 11 : i64} {
  func.func @_cross_attn_kernel(%arg0: i32, %arg1: i32, %arg2: memref<1x8x32xf32, #tpu.memory_space<vmem>>, %arg3: memref<1x8x32xf32, #tpu.memory_space<vmem>>, %arg4: memref<32x32xbf16, #tpu.memory_space<vmem>>, %arg5: memref<1x32xf32, #tpu.memory_space<vmem>>, %arg6: memref<32x64xbf16, #tpu.memory_space<vmem>>, %arg7: memref<1x64xf32, #tpu.memory_space<vmem>>, %arg8: memref<32x32xbf16, #tpu.memory_space<vmem>>, %arg9: memref<1x32xf32, #tpu.memory_space<vmem>>, %arg10: memref<1x32xf32, #tpu.memory_space<vmem>>, %arg11: memref<1x32xf32, #tpu.memory_space<vmem>>, %arg12: memref<1x8x32xf32, #tpu.memory_space<vmem>>, %arg13: memref<8x64xf32, #tpu.memory_space<vmem>>, %arg14: memref<8x32xf32, #tpu.memory_space<vmem>>) attributes {dimension_semantics = [#tpu.dimension_semantics<parallel>, #tpu.dimension_semantics<arbitrary>], iteration_bounds = array<i64: 2, 1>, scalar_prefetch = 0 : i64, scratch_operands = 2 : i64, tpu.core_type = #tpu.core_type<tc>, window_params = [{transform_indices = @transform_0, window_bounds = array<i64: 1, 8, 32>}, {transform_indices = @transform_1, window_bounds = array<i64: 1, 8, 32>}, {pipeline_mode = #tpu.pipeline_mode<synchronous>, transform_indices = @transform_2, window_bounds = array<i64: 32, 32>}, {pipeline_mode = #tpu.pipeline_mode<synchronous>, transform_indices = @transform_3, window_bounds = array<i64: 1, 32>}, {pipeline_mode = #tpu.pipeline_mode<synchronous>, transform_indices = @transform_4, window_bounds = array<i64: 32, 64>}, {pipeline_mode = #tpu.pipeline_mode<synchronous>, transform_indices = @transform_5, window_bounds = array<i64: 1, 64>}, {pipeline_mode = #tpu.pipeline_mode<synchronous>, transform_indices = @transform_6, window_bounds = array<i64: 32, 32>}, {pipeline_mode = #tpu.pipeline_mode<synchronous>, transform_indices = @transform_7, window_bounds = array<i64: 1, 32>}, {pipeline_mode = #tpu.pipeline_mode<synchronous>, transform_indices = @transform_8, window_bounds = array<i64: 1, 32>}, {pipeline_mode = #tpu.pipeline_mode<synchronous>, transform_indices = @transform_9, window_bounds = array<i64: 1, 32>}, {transform_indices = @transform_10, window_bounds = array<i64: 1, 8, 32>}]} {
    %c0_i32 = arith.constant 0 : i32
    %0 = arith.cmpi eq, %arg1, %c0_i32 : i32
    %1 = arith.extui %0 : i1 to i32
    %c0_i32_0 = arith.constant 0 : i32
    %2 = arith.cmpi ne, %1, %c0_i32_0 : i32
    scf.if %2 {
      %c0_59 = arith.constant 0 : index
      %c0_60 = arith.constant 0 : index
      %c0_61 = arith.constant 0 : index
      %122 = vector.load %arg3[%c0_59, %c0_60, %c0_61] : memref<1x8x32xf32, #tpu.memory_space<vmem>>, vector<1x8x32xf32>
      %123 = vector.shape_cast %122 : vector<1x8x32xf32> to vector<8x32xf32>
      %c0_62 = arith.constant 0 : index
      %c0_63 = arith.constant 0 : index
      %124 = vector.load %arg6[%c0_62, %c0_63] : memref<32x64xbf16, #tpu.memory_space<vmem>>, vector<32x64xbf16>
      %125 = arith.truncf %123 : vector<8x32xf32> to vector<8x32xbf16>
      %cst_64 = arith.constant dense<0.000000e+00> : vector<8x64xf32>
      %126 = tpu.matmul %125, %124, %cst_64 {dimension_numbers = #tpu.dot_dimension_numbers<[1], [0], [0], [1], [0, 0, 1, 1], [], []>} : vector<8x32xbf16>, vector<32x64xbf16>, vector<8x64xf32> -> vector<8x64xf32>
      %c0_65 = arith.constant 0 : index
      %c0_66 = arith.constant 0 : index
      %127 = vector.load %arg7[%c0_65, %c0_66] : memref<1x64xf32, #tpu.memory_space<vmem>>, vector<1x64xf32>
      %128 = vector.broadcast %127 : vector<1x64xf32> to vector<8x64xf32>
      %129 = arith.addf %126, %128 : vector<8x64xf32>
      %c0_67 = arith.constant 0 : index
      %c0_68 = arith.constant 0 : index
      %130 = vector.load %arg13[%c0_67, %c0_68] : memref<8x64xf32, #tpu.memory_space<vmem>>, vector<8x64xf32>
      tpu.vector_store %arg13[%c0_67, %c0_68], %129 {strides = array<i32>} : memref<8x64xf32, #tpu.memory_space<vmem>>, vector<8x64xf32>,
    } else {
    }
    %c0 = arith.constant 0 : index
    %c0_1 = arith.constant 0 : index
    %c0_2 = arith.constant 0 : index
    %3 = vector.load %arg2[%c0, %c0_1, %c0_2] : memref<1x8x32xf32, #tpu.memory_space<vmem>>, vector<1x8x32xf32>
    %4 = vector.shape_cast %3 : vector<1x8x32xf32> to vector<8x32xf32>
    %c0_3 = arith.constant 0 : index
    %c0_4 = arith.constant 0 : index
    %5 = vector.load %arg4[%c0_3, %c0_4] : memref<32x32xbf16, #tpu.memory_space<vmem>>, vector<32x32xbf16>
    %6 = arith.truncf %4 : vector<8x32xf32> to vector<8x32xbf16>
    %cst = arith.constant dense<0.000000e+00> : vector<8x32xf32>
    %7 = tpu.matmul %6, %5, %cst {dimension_numbers = #tpu.dot_dimension_numbers<[1], [0], [0], [1], [0, 0, 1, 1], [], []>} : vector<8x32xbf16>, vector<32x32xbf16>, vector<8x32xf32> -> vector<8x32xf32>
    %c0_5 = arith.constant 0 : index
    %c0_6 = arith.constant 0 : index
    %8 = vector.load %arg5[%c0_5, %c0_6] : memref<1x32xf32, #tpu.memory_space<vmem>>, vector<1x32xf32>
    %9 = vector.broadcast %8 : vector<1x32xf32> to vector<8x32xf32>
    %10 = arith.addf %7, %9 : vector<8x32xf32>
    %11 = vector.extract_strided_slice %10 {offsets = [0, 0], sizes = [8, 8], strides = [1, 1]} : vector<8x32xf32> to vector<8x8xf32>
    %12 = arith.truncf %11 : vector<8x8xf32> to vector<8x8xbf16>
    %c0_7 = arith.constant 0 : index
    %c0_8 = arith.constant 0 : index
    %13 = vector.load %arg13[%c0_7, %c0_8] : memref<8x64xf32, #tpu.memory_space<vmem>>, vector<8x8xf32>
    %14 = arith.truncf %13 : vector<8x8xf32> to vector<8x8xbf16>
    %c0_9 = arith.constant 0 : index
    %c32 = arith.constant 32 : index
    %15 = vector.load %arg13[%c0_9, %c32] : memref<8x64xf32, #tpu.memory_space<vmem>>, vector<8x8xf32>
    %16 = arith.truncf %15 : vector<8x8xf32> to vector<8x8xbf16>
    %cst_10 = arith.constant dense<0.000000e+00> : vector<8x8xf32>
    %17 = tpu.matmul %12, %14, %cst_10 {dimension_numbers = #tpu.dot_dimension_numbers<[1], [1], [0], [0], [0, 0, 1, 0], [], []>} : vector<8x8xbf16>, vector<8x8xbf16>, vector<8x8xf32> -> vector<8x8xf32>
    %cst_11 = arith.constant dense<0xFF800000> : vector<8xf32>
    %18 = vector.multi_reduction <maximumf>, %17, %cst_11 [1] : vector<8x8xf32> to vector<8xf32>
    %19 = vector.shape_cast %18 : vector<8xf32> to vector<8x1xf32>
    %20 = vector.broadcast %19 : vector<8x1xf32> to vector<8x8xf32>
    %21 = arith.subf %17, %20 : vector<8x8xf32>
    %22 = math.exp %21 : vector<8x8xf32>
    %cst_12 = arith.constant dense<0.000000e+00> : vector<8xf32>
    %23 = vector.multi_reduction <add>, %22, %cst_12 [1] : vector<8x8xf32> to vector<8xf32>
    %24 = vector.shape_cast %23 : vector<8xf32> to vector<8x1xf32>
    %25 = vector.broadcast %24 : vector<8x1xf32> to vector<8x8xf32>
    %26 = arith.divf %22, %25 : vector<8x8xf32>
    %27 = arith.truncf %26 : vector<8x8xf32> to vector<8x8xbf16>
    %cst_13 = arith.constant dense<0.000000e+00> : vector<8x8xf32>
    %28 = tpu.matmul %27, %16, %cst_13 {dimension_numbers = #tpu.dot_dimension_numbers<[1], [0], [0], [1], [0, 0, 1, 1], [], []>} : vector<8x8xbf16>, vector<8x8xbf16>, vector<8x8xf32> -> vector<8x8xf32>
    %c0_14 = arith.constant 0 : index
    %c0_15 = arith.constant 0 : index
    %29 = vector.load %arg14[%c0_14, %c0_15] : memref<8x32xf32, #tpu.memory_space<vmem>>, vector<8x8xf32>
    tpu.vector_store %arg14[%c0_14, %c0_15], %28 {strides = array<i32>} : memref<8x32xf32, #tpu.memory_space<vmem>>, vector<8x8xf32>,
    %30 = vector.extract_strided_slice %10 {offsets = [0, 8], sizes = [8, 8], strides = [1, 1]} : vector<8x32xf32> to vector<8x8xf32>
    %31 = arith.truncf %30 : vector<8x8xf32> to vector<8x8xbf16>
    %c0_16 = arith.constant 0 : index
    %c8 = arith.constant 8 : index
    %32 = vector.load %arg13[%c0_16, %c8] : memref<8x64xf32, #tpu.memory_space<vmem>>, vector<8x8xf32>
    %33 = arith.truncf %32 : vector<8x8xf32> to vector<8x8xbf16>
    %c0_17 = arith.constant 0 : index
    %c40 = arith.constant 40 : index
    %34 = vector.load %arg13[%c0_17, %c40] : memref<8x64xf32, #tpu.memory_space<vmem>>, vector<8x8xf32>
    %35 = arith.truncf %34 : vector<8x8xf32> to vector<8x8xbf16>
    %cst_18 = arith.constant dense<0.000000e+00> : vector<8x8xf32>
    %36 = tpu.matmul %31, %33, %cst_18 {dimension_numbers = #tpu.dot_dimension_numbers<[1], [1], [0], [0], [0, 0, 1, 0], [], []>} : vector<8x8xbf16>, vector<8x8xbf16>, vector<8x8xf32> -> vector<8x8xf32>
    %cst_19 = arith.constant dense<0xFF800000> : vector<8xf32>
    %37 = vector.multi_reduction <maximumf>, %36, %cst_19 [1] : vector<8x8xf32> to vector<8xf32>
    %38 = vector.shape_cast %37 : vector<8xf32> to vector<8x1xf32>
    %39 = vector.broadcast %38 : vector<8x1xf32> to vector<8x8xf32>
    %40 = arith.subf %36, %39 : vector<8x8xf32>
    %41 = math.exp %40 : vector<8x8xf32>
    %cst_20 = arith.constant dense<0.000000e+00> : vector<8xf32>
    %42 = vector.multi_reduction <add>, %41, %cst_20 [1] : vector<8x8xf32> to vector<8xf32>
    %43 = vector.shape_cast %42 : vector<8xf32> to vector<8x1xf32>
    %44 = vector.broadcast %43 : vector<8x1xf32> to vector<8x8xf32>
    %45 = arith.divf %41, %44 : vector<8x8xf32>
    %46 = arith.truncf %45 : vector<8x8xf32> to vector<8x8xbf16>
    %cst_21 = arith.constant dense<0.000000e+00> : vector<8x8xf32>
    %47 = tpu.matmul %46, %35, %cst_21 {dimension_numbers = #tpu.dot_dimension_numbers<[1], [0], [0], [1], [0, 0, 1, 1], [], []>} : vector<8x8xbf16>, vector<8x8xbf16>, vector<8x8xf32> -> vector<8x8xf32>
    %c0_22 = arith.constant 0 : index
    %c8_23 = arith.constant 8 : index
    %48 = vector.load %arg14[%c0_22, %c8_23] : memref<8x32xf32, #tpu.memory_space<vmem>>, vector<8x8xf32>
    tpu.vector_store %arg14[%c0_22, %c8_23], %47 {strides = array<i32>} : memref<8x32xf32, #tpu.memory_space<vmem>>, vector<8x8xf32>,
    %49 = vector.extract_strided_slice %10 {offsets = [0, 16], sizes = [8, 8], strides = [1, 1]} : vector<8x32xf32> to vector<8x8xf32>
    %50 = arith.truncf %49 : vector<8x8xf32> to vector<8x8xbf16>
    %c0_24 = arith.constant 0 : index
    %c16 = arith.constant 16 : index
    %51 = vector.load %arg13[%c0_24, %c16] : memref<8x64xf32, #tpu.memory_space<vmem>>, vector<8x8xf32>
    %52 = arith.truncf %51 : vector<8x8xf32> to vector<8x8xbf16>
    %c0_25 = arith.constant 0 : index
    %c48 = arith.constant 48 : index
    %53 = vector.load %arg13[%c0_25, %c48] : memref<8x64xf32, #tpu.memory_space<vmem>>, vector<8x8xf32>
    %54 = arith.truncf %53 : vector<8x8xf32> to vector<8x8xbf16>
    %cst_26 = arith.constant dense<0.000000e+00> : vector<8x8xf32>
    %55 = tpu.matmul %50, %52, %cst_26 {dimension_numbers = #tpu.dot_dimension_numbers<[1], [1], [0], [0], [0, 0, 1, 0], [], []>} : vector<8x8xbf16>, vector<8x8xbf16>, vector<8x8xf32> -> vector<8x8xf32>
    %cst_27 = arith.constant dense<0xFF800000> : vector<8xf32>
    %56 = vector.multi_reduction <maximumf>, %55, %cst_27 [1] : vector<8x8xf32> to vector<8xf32>
    %57 = vector.shape_cast %56 : vector<8xf32> to vector<8x1xf32>
    %58 = vector.broadcast %57 : vector<8x1xf32> to vector<8x8xf32>
    %59 = arith.subf %55, %58 : vector<8x8xf32>
    %60 = math.exp %59 : vector<8x8xf32>
    %cst_28 = arith.constant dense<0.000000e+00> : vector<8xf32>
    %61 = vector.multi_reduction <add>, %60, %cst_28 [1] : vector<8x8xf32> to vector<8xf32>
    %62 = vector.shape_cast %61 : vector<8xf32> to vector<8x1xf32>
    %63 = vector.broadcast %62 : vector<8x1xf32> to vector<8x8xf32>
    %64 = arith.divf %60, %63 : vector<8x8xf32>
    %65 = arith.truncf %64 : vector<8x8xf32> to vector<8x8xbf16>
    %cst_29 = arith.constant dense<0.000000e+00> : vector<8x8xf32>
    %66 = tpu.matmul %65, %54, %cst_29 {dimension_numbers = #tpu.dot_dimension_numbers<[1], [0], [0], [1], [0, 0, 1, 1], [], []>} : vector<8x8xbf16>, vector<8x8xbf16>, vector<8x8xf32> -> vector<8x8xf32>
    %c0_30 = arith.constant 0 : index
    %c16_31 = arith.constant 16 : index
    %67 = vector.load %arg14[%c0_30, %c16_31] : memref<8x32xf32, #tpu.memory_space<vmem>>, vector<8x8xf32>
    tpu.vector_store %arg14[%c0_30, %c16_31], %66 {strides = array<i32>} : memref<8x32xf32, #tpu.memory_space<vmem>>, vector<8x8xf32>,
    %68 = vector.extract_strided_slice %10 {offsets = [0, 24], sizes = [8, 8], strides = [1, 1]} : vector<8x32xf32> to vector<8x8xf32>
    %69 = arith.truncf %68 : vector<8x8xf32> to vector<8x8xbf16>
    %c0_32 = arith.constant 0 : index
    %c24 = arith.constant 24 : index
    %70 = vector.load %arg13[%c0_32, %c24] : memref<8x64xf32, #tpu.memory_space<vmem>>, vector<8x8xf32>
    %71 = arith.truncf %70 : vector<8x8xf32> to vector<8x8xbf16>
    %c0_33 = arith.constant 0 : index
    %c56 = arith.constant 56 : index
    %72 = vector.load %arg13[%c0_33, %c56] : memref<8x64xf32, #tpu.memory_space<vmem>>, vector<8x8xf32>
    %73 = arith.truncf %72 : vector<8x8xf32> to vector<8x8xbf16>
    %cst_34 = arith.constant dense<0.000000e+00> : vector<8x8xf32>
    %74 = tpu.matmul %69, %71, %cst_34 {dimension_numbers = #tpu.dot_dimension_numbers<[1], [1], [0], [0], [0, 0, 1, 0], [], []>} : vector<8x8xbf16>, vector<8x8xbf16>, vector<8x8xf32> -> vector<8x8xf32>
    %cst_35 = arith.constant dense<0xFF800000> : vector<8xf32>
    %75 = vector.multi_reduction <maximumf>, %74, %cst_35 [1] : vector<8x8xf32> to vector<8xf32>
    %76 = vector.shape_cast %75 : vector<8xf32> to vector<8x1xf32>
    %77 = vector.broadcast %76 : vector<8x1xf32> to vector<8x8xf32>
    %78 = arith.subf %74, %77 : vector<8x8xf32>
    %79 = math.exp %78 : vector<8x8xf32>
    %cst_36 = arith.constant dense<0.000000e+00> : vector<8xf32>
    %80 = vector.multi_reduction <add>, %79, %cst_36 [1] : vector<8x8xf32> to vector<8xf32>
    %81 = vector.shape_cast %80 : vector<8xf32> to vector<8x1xf32>
    %82 = vector.broadcast %81 : vector<8x1xf32> to vector<8x8xf32>
    %83 = arith.divf %79, %82 : vector<8x8xf32>
    %84 = arith.truncf %83 : vector<8x8xf32> to vector<8x8xbf16>
    %cst_37 = arith.constant dense<0.000000e+00> : vector<8x8xf32>
    %85 = tpu.matmul %84, %73, %cst_37 {dimension_numbers = #tpu.dot_dimension_numbers<[1], [0], [0], [1], [0, 0, 1, 1], [], []>} : vector<8x8xbf16>, vector<8x8xbf16>, vector<8x8xf32> -> vector<8x8xf32>
    %c0_38 = arith.constant 0 : index
    %c24_39 = arith.constant 24 : index
    %86 = vector.load %arg14[%c0_38, %c24_39] : memref<8x32xf32, #tpu.memory_space<vmem>>, vector<8x8xf32>
    tpu.vector_store %arg14[%c0_38, %c24_39], %85 {strides = array<i32>} : memref<8x32xf32, #tpu.memory_space<vmem>>, vector<8x8xf32>,
    %c0_40 = arith.constant 0 : index
    %c0_41 = arith.constant 0 : index
    %87 = vector.load %arg14[%c0_40, %c0_41] : memref<8x32xf32, #tpu.memory_space<vmem>>, vector<8x32xf32>
    %c0_42 = arith.constant 0 : index
    %c0_43 = arith.constant 0 : index
    %88 = vector.load %arg8[%c0_42, %c0_43] : memref<32x32xbf16, #tpu.memory_space<vmem>>, vector<32x32xbf16>
    %89 = arith.truncf %87 : vector<8x32xf32> to vector<8x32xbf16>
    %cst_44 = arith.constant dense<0.000000e+00> : vector<8x32xf32>
    %90 = tpu.matmul %89, %88, %cst_44 {dimension_numbers = #tpu.dot_dimension_numbers<[1], [0], [0], [1], [0, 0, 1, 1], [], []>} : vector<8x32xbf16>, vector<32x32xbf16>, vector<8x32xf32> -> vector<8x32xf32>
    %c0_45 = arith.constant 0 : index
    %c0_46 = arith.constant 0 : index
    %91 = vector.load %arg9[%c0_45, %c0_46] : memref<1x32xf32, #tpu.memory_space<vmem>>, vector<1x32xf32>
    %92 = vector.broadcast %91 : vector<1x32xf32> to vector<8x32xf32>
    %93 = arith.addf %90, %92 : vector<8x32xf32>
    %94 = arith.addf %4, %93 : vector<8x32xf32>
    %c0_47 = arith.constant 0 : index
    %c0_48 = arith.constant 0 : index
    %95 = vector.load %arg10[%c0_47, %c0_48] : memref<1x32xf32, #tpu.memory_space<vmem>>, vector<1x32xf32>
    %c0_49 = arith.constant 0 : index
    %c0_50 = arith.constant 0 : index
    %96 = vector.load %arg11[%c0_49, %c0_50] : memref<1x32xf32, #tpu.memory_space<vmem>>, vector<1x32xf32>
    %cst_51 = arith.constant dense<0.000000e+00> : vector<8xf32>
    %97 = vector.multi_reduction <add>, %94, %cst_51 [1] : vector<8x32xf32> to vector<8xf32>
    %98 = vector.shape_cast %97 : vector<8xf32> to vector<8x1xf32>
    %cst_52 = arith.constant 3.200000e+01 : f32
    %99 = vector.broadcast %cst_52 : f32 to vector<8x1xf32>
    %100 = arith.divf %98, %99 : vector<8x1xf32>
    %101 = vector.broadcast %100 : vector<8x1xf32> to vector<8x32xf32>
    %102 = arith.subf %94, %101 : vector<8x32xf32>
    %103 = arith.mulf %102, %102 : vector<8x32xf32>
    %cst_53 = arith.constant dense<0.000000e+00> : vector<8xf32>
    %104 = vector.multi_reduction <add>, %103, %cst_53 [1] : vector<8x32xf32> to vector<8xf32>
    %105 = vector.shape_cast %104 : vector<8xf32> to vector<8x1xf32>
    %cst_54 = arith.constant 3.200000e+01 : f32
    %106 = vector.broadcast %cst_54 : f32 to vector<8x1xf32>
    %107 = arith.divf %105, %106 : vector<8x1xf32>
    %108 = vector.broadcast %100 : vector<8x1xf32> to vector<8x32xf32>
    %109 = arith.subf %94, %108 : vector<8x32xf32>
    %cst_55 = arith.constant 9.99999974E-6 : f32
    %110 = vector.broadcast %cst_55 : f32 to vector<8x1xf32>
    %111 = arith.addf %107, %110 : vector<8x1xf32>
    %112 = math.rsqrt %111 : vector<8x1xf32>
    %113 = vector.broadcast %112 : vector<8x1xf32> to vector<8x32xf32>
    %114 = arith.mulf %109, %113 : vector<8x32xf32>
    %115 = vector.broadcast %95 : vector<1x32xf32> to vector<8x32xf32>
    %116 = arith.mulf %114, %115 : vector<8x32xf32>
    %117 = vector.broadcast %96 : vector<1x32xf32> to vector<8x32xf32>
    %118 = arith.addf %116, %117 : vector<8x32xf32>
    %c0_56 = arith.constant 0 : index
    %c0_57 = arith.constant 0 : index
    %c0_58 = arith.constant 0 : index
    %119 = vector.load %arg12[%c0_56, %c0_57, %c0_58] : memref<1x8x32xf32, #tpu.memory_space<vmem>>, vector<1x8x32xf32>
    %120 = vector.shape_cast %119 : vector<1x8x32xf32> to vector<8x32xf32>
    %121 = vector.shape_cast %118 : vector<8x32xf32> to vector<1x8x32xf32>
    tpu.vector_store %arg12[%c0_56, %c0_57, %c0_58], %121 {strides = array<i32>} : memref<1x8x32xf32, #tpu.memory_space<vmem>>, vector<1x8x32xf32>,
    return
  }
  func.func @transform_0(%arg0: i32, %arg1: i32) -> (i32, i32, i32) {
    %c0_i32 = arith.constant 0 : i32
    %c0_i32_0 = arith.constant 0 : i32
    return %arg0, %arg1, %c0_i32 : i32, i32, i32
  }
  func.func @transform_1(%arg0: i32, %arg1: i32) -> (i32, i32, i32) {
    %c0_i32 = arith.constant 0 : i32
    %c0_i32_0 = arith.constant 0 : i32
    %c0_i32_1 = arith.constant 0 : i32
    return %arg0, %c0_i32, %c0_i32_0 : i32, i32, i32
  }
  func.func @transform_2(%arg0: i32, %arg1: i32) -> (i32, i32) {
    %c0_i32 = arith.constant 0 : i32
    %c0_i32_0 = arith.constant 0 : i32
    %c0_i32_1 = arith.constant 0 : i32
    return %c0_i32, %c0_i32_0 : i32, i32
  }
  func.func @transform_3(%arg0: i32, %arg1: i32) -> (i32, i32) {
    %c0_i32 = arith.constant 0 : i32
    %c0_i32_0 = arith.constant 0 : i32
    %c0_i32_1 = arith.constant 0 : i32
    return %c0_i32, %c0_i32_0 : i32, i32
  }
  func.func @transform_4(%arg0: i32, %arg1: i32) -> (i32, i32) {
    %c0_i32 = arith.constant 0 : i32
    %c0_i32_0 = arith.constant 0 : i32
    %c0_i32_1 = arith.constant 0 : i32
    return %c0_i32, %c0_i32_0 : i32, i32
  }
  func.func @transform_5(%arg0: i32, %arg1: i32) -> (i32, i32) {
    %c0_i32 = arith.constant 0 : i32
    %c0_i32_0 = arith.constant 0 : i32
    %c0_i32_1 = arith.constant 0 : i32
    return %c0_i32, %c0_i32_0 : i32, i32
  }
  func.func @transform_6(%arg0: i32, %arg1: i32) -> (i32, i32) {
    %c0_i32 = arith.constant 0 : i32
    %c0_i32_0 = arith.constant 0 : i32
    %c0_i32_1 = arith.constant 0 : i32
    return %c0_i32, %c0_i32_0 : i32, i32
  }
  func.func @transform_7(%arg0: i32, %arg1: i32) -> (i32, i32) {
    %c0_i32 = arith.constant 0 : i32
    %c0_i32_0 = arith.constant 0 : i32
    %c0_i32_1 = arith.constant 0 : i32
    return %c0_i32, %c0_i32_0 : i32, i32
  }
  func.func @transform_8(%arg0: i32, %arg1: i32) -> (i32, i32) {
    %c0_i32 = arith.constant 0 : i32
    %c0_i32_0 = arith.constant 0 : i32
    %c0_i32_1 = arith.constant 0 : i32
    return %c0_i32, %c0_i32_0 : i32, i32
  }
  func.func @transform_9(%arg0: i32, %arg1: i32) -> (i32, i32) {
    %c0_i32 = arith.constant 0 : i32
    %c0_i32_0 = arith.constant 0 : i32
    %c0_i32_1 = arith.constant 0 : i32
    return %c0_i32, %c0_i32_0 : i32, i32
  }
  func.func @transform_10(%arg0: i32, %arg1: i32) -> (i32, i32, i32) {
    %c0_i32 = arith.constant 0 : i32
    %c0_i32_0 = arith.constant 0 : i32
    return %arg0, %arg1, %c0_i32 : i32, i32, i32
  }
}

</mosaic_0001>

<bundles_post_ra>
// kernel: seq2seq_transformer_forward.17
= control target key start
LH: loop header
LB: loop body
LE: loop exit
PB: predicated region body
PF: predicated region fallthrough
CT: control target
= control target key end

     0   :  { %vm18_vm0 = vcmask 261120   ;;  %s118_s0 = inlined_call_operand.vmem [shape: f32[16,32], index: 0, kind: input, shape index: {}]   ;;  %s119_s1 = inlined_call_operand.vmem [shape: f32[1,32], index: 1, kind: input, shape index: {}]   ;;  %s120_s2 = inlined_call_operand.vmem [shape: f32[1,32], index: 2, kind: input, shape index: {}]   ;;  %s121_s3 = inlined_call_operand.vmem [shape: f32[16,32], index: 3, kind: output, shape index: {}]  }
   0x1   :  { %v14_v0 = vld [vmem:[%s118_s0] sm:$0xff]  ;;  %v15_v1 = vld [vmem:[%s118_s0 + $0x8] sm:$0xff] }
   0x2   :  { %v19_v2 = vsel %vm18_vm0, %v14_v0, 0.0  ;;  %v22_v3 = vsel %vm18_vm0, %v15_v1, 0.0  ;;  %v68_v21 = vld [vmem:[%s119_s1] ss:$0 sm:$0xff] }
   0x3   :  { %20 = vadd.xlane.f32.xlu0 %v19_v2  ;;  %v69_v23 = vld [vmem:[%s120_s2] ss:$0 sm:$0xff] }
   0x7   :  { %23 = vadd.xlane.f32.xlu0 %v22_v3 }
  0x8c   :  { %v21_v4 = vpop.xlane.xlu0 %20 }
  0x8d   :  { %v26_v5 = vmul.f32 0.03125, %v21_v4 }
  0x8f   :  { %v28_v6 = vsub.f32 %v14_v0, %v26_v5 }
  0x90   :  { %v24_v7 = vpop.xlane.xlu0 %23 }
  0x91   :  { %v27_v8 = vmul.f32 0.03125, %v24_v7  ;;  %v30_v9 = vmul.f32 %v28_v6, %v28_v6 }
  0x93   :  { %v29_v10 = vsub.f32 %v15_v1, %v27_v8  ;;  %v32_v11 = vsel %vm18_vm0, %v30_v9, 0.0 }
  0x94   :  { %33 = vadd.xlane.f32.xlu1 %v32_v11 }
  0x95   :  { %v31_v12 = vmul.f32 %v29_v10, %v29_v10 }
  0x97   :  { %v35_v13 = vsel %vm18_vm0, %v31_v12, 0.0 }
  0x98   :  { %36 = vadd.xlane.f32.xlu1 %v35_v13 }
 0x11d   :  { %v34_v14 = vpop.xlane.xlu1 %33 }
 0x11e   :  { %v38_v15 = vmul.f32 0.03125, %v34_v14 }
 0x120   :  { %v40_v16 = vadd.f32 1e-05, %v38_v15 }
 0x121   :  { %v37_v17 = vpop.xlane.xlu1 %36 }
 0x122   :  { %70 = vrsqrt.f32 %v40_v16  ;;  %v39_v18 = vmul.f32 0.03125, %v37_v17 }
 0x124   :  { %v41_v19 = vadd.f32 1e-05, %v39_v18 }
 0x126   :  { %72 = vrsqrt.f32 %v41_v19 }
 0x12f   :  { %v71_v20 = vpop.eup %70 }
 0x130   :  { %v44_v22 = vmul.f32 %v71_v20, %v28_v6 }
 0x132   :  { %v52_v24 = vmul.f32 %v68_v21, %v44_v22 }
 0x133   :  { %v73_v25 = vpop.eup %72 }
 0x134   :  { %v60_v26 = vadd.f32 %v69_v23, %v52_v24  ;;  %v45_v27 = vmul.f32 %v73_v25, %v29_v10 }
 0x136   :  { %62 = vst.msk [vmem:[%s121_s3] sm:$0xff] %vm18_vm0, %v60_v26  ;;  %v53_v28 = vmul.f32 %v68_v21, %v45_v27 }
 0x138   :  { %v61_v29 = vadd.f32 %v69_v23, %v53_v28 }
 0x13a   :  { %63 = vst.msk [vmem:[%s121_s3 + $0x8] sm:$0xff] %vm18_vm0, %v61_v29 }

// kernel: seq2seq_transformer_forward.14
= control target key start
LH: loop header
LB: loop body
LE: loop exit
PB: predicated region body
PF: predicated region fallthrough
CT: control target
= control target key end

     0   :  { %v290_v0 = vmov 0.0   ;;  %vm291_vm0 = vmmov 0   ;;  %vm53_vm1 = vcmask 261120   ;;  %vm140_vm2 = vcmask 523264   ;;  %s381_s1 = inlined_call_operand.vmem [shape: bf16[32,64], index: 1, kind: input, shape index: {}]   ;;  %s382_s0 = inlined_call_operand.vmem [shape: f32[16,32], index: 0, kind: input, shape index: {}]   ;;  %s383_s3 = inlined_call_operand.vmem [shape: bf16[64,32], index: 3, kind: input, shape index: {}]   ;;  %s384_s2 = inlined_call_operand.vmem [shape: f32[1,64], index: 2, kind: input, shape index: {}]   ;;  %s385_s4 = inlined_call_operand.vmem [shape: f32[1,32], index: 4, kind: input, shape index: {}]   ;;  %s386_s5 = inlined_call_operand.vmem [shape: f32[1,32], index: 5, kind: input, shape index: {}]   ;;  %s387_s6 = inlined_call_operand.vmem [shape: f32[1,32], index: 6, kind: input, shape index: {}]   ;;  %s388_s7 = inlined_call_operand.vmem [shape: f32[16,32], index: 7, kind: output, shape index: {}]  }
   0x1   :  { %258 = vmatprep.subr.bf16.mxu0 %v290_v0  ;;  %v280_v1 = vld [vmem:[%s381_s1 + $0x8] sm:$0xff]   ;;  %262 = vmatprep.mubr.msk.bf16.mxu0 %vm291_vm0, %v290_v0  ;;  %v281_v2 = vld [vmem:[%s381_s1] sm:$0xff]   ;;  %v282_v5 = vld [vmem:[%s383_s3 + $0x18] sm:$0xff]  }
   0x2   :  { %266 = vmatprep.subr.bf16.mxu1 %v290_v0  ;;  %274 = vmatprep.mubr.msk.bf16.mxu1 %vm291_vm0, %v290_v0  ;;  %v27_v3 = vld [vmem:[%s382_s0] sm:$0xff]  ;;  %v28_v4 = vld [vmem:[%s382_s0 + $0x8] sm:$0xff]  ;;  %v283_v7 = vld [vmem:[%s383_s3 + $0x10] sm:$0xff]  }
   0x3   :  { %259 = vmatpush3.bf16.msra.mxu0 %v280_v1  ;;  %v33_v6 = vpack.c.bf16 %v28_v4, %v27_v3  ;;  %267 = vmatpush3.bf16.msra.mxu1 %v282_v5  ;;  %v284_v8 = vld [vmem:[%s383_s3 + $0x8] sm:$0xff]   ;;  %v285_v9 = vld [vmem:[%s383_s3] sm:$0xff]  }
   0x4   :  { %260 = vmatprep.subr.bf16.mxu0 %v290_v0  ;;  %268 = vmatprep.subr.bf16.mxu1 %v290_v0  ;;  %v238_v10 = vld [vmem:[%s384_s2] ss:$0 sm:$0xff] }
   0x5   :  { %v242_v20 = vld [vmem:[%s385_s4] ss:$0 sm:$0xff] }
   0x6   :  { %v248_v48 = vld [vmem:[%s386_s5] ss:$0 sm:$0xff] }
   0x7   :  { %261 = vmatpush3.bf16.msra.mxu0 %v281_v2  ;;  %269 = vmatpush3.bf16.msra.mxu1 %v283_v7  ;;  %v249_v50 = vld [vmem:[%s387_s6] ss:$0 sm:$0xff] }
   0x8   :  { %270 = vmatprep.subr.bf16.mxu1 %v290_v0 }
   0xa   :  { %263 = vmatmul.mubr.msk.bf16.vlgmr.msra.gmra.mxu0 %vm53_vm1, %v33_v6 }
   0xb   :  { %271 = vmatpush3.bf16.msra.mxu1 %v284_v8 }
   0xc   :  { %272 = vmatprep.subr.bf16.mxu1 %v290_v0 }
   0xf   :  { %273 = vmatpush3.bf16.msra.mxu1 %v285_v9 }
  0xca   :  { %v91_v11 = vpop.f32.mrf.mxu0 }
  0xcb   :  { %v92_v13 = vadd.f32 %v238_v10, %v91_v11 }
  0xcc   :  { %v264_v12 = vpop.f32.mrf.mxu0 }
  0xcd   :  { %v98_v17 = vmax.f32 %v92_v13, 0.0 }
  0xce   :  { %v94_v14 = vpop.f32.mrf.mxu0 }
  0xcf   :  { %v95_v15 = vadd.f32 %v238_v10, %v94_v14 }
  0xd0   :  { %v265_v16 = vpop.f32.mrf.mxu0 }
  0xd1   :  { %v99_v18 = vmax.f32 %v95_v15, 0.0 }
  0xd3   :  { %v108_v19 = vpack.c.bf16 %v99_v18, %v98_v17 }
  0xd5   :  { %275 = vmatmul.mubr.msk.bf16.vlgmr.msra.gmra.mxu1 %vm140_vm2, %v108_v19 }
 0x195   :  { %v178_v21 = vpop.f32.mrf.mxu1 }
 0x196   :  { %v179_v22 = vadd.f32 %v242_v20, %v178_v21 }
 0x197   :  { %v276_v23 = vpop.f32.mrf.mxu1 }
 0x198   :  { %v185_v24 = vadd.f32 %v179_v22, %v27_v3 }
 0x199   :  { %v181_v25 = vpop.f32.mrf.mxu1 }
 0x19a   :  { %v182_v26 = vadd.f32 %v242_v20, %v181_v25  ;;  %v189_v27 = vsel %vm53_vm1, %v185_v24, 0.0 }
 0x19b   :  { %190 = vadd.xlane.f32.xlu0 %v189_v27  ;;  %v277_v28 = vpop.f32.mrf.mxu1 }
 0x19c   :  { %v186_v29 = vadd.f32 %v182_v26, %v28_v4 }
 0x19e   :  { %v192_v30 = vsel %vm53_vm1, %v186_v29, 0.0 }
 0x19f   :  { %193 = vadd.xlane.f32.xlu0 %v192_v30 }
 0x224   :  { %v191_v31 = vpop.xlane.xlu0 %190 }
 0x225   :  { %v196_v32 = vmul.f32 0.03125, %v191_v31 }
 0x227   :  { %v198_v33 = vsub.f32 %v185_v24, %v196_v32 }
 0x228   :  { %v194_v34 = vpop.xlane.xlu0 %193 }
 0x229   :  { %v197_v35 = vmul.f32 0.03125, %v194_v34  ;;  %v200_v36 = vmul.f32 %v198_v33, %v198_v33 }
 0x22b   :  { %v199_v37 = vsub.f32 %v186_v29, %v197_v35  ;;  %v202_v38 = vsel %vm53_vm1, %v200_v36, 0.0 }
 0x22c   :  { %203 = vadd.xlane.f32.xlu1 %v202_v38 }
 0x22d   :  { %v201_v39 = vmul.f32 %v199_v37, %v199_v37 }
 0x22f   :  { %v205_v40 = vsel %vm53_vm1, %v201_v39, 0.0 }
 0x230   :  { %206 = vadd.xlane.f32.xlu1 %v205_v40 }
 0x2b5   :  { %v204_v41 = vpop.xlane.xlu1 %203 }
 0x2b6   :  { %v208_v42 = vmul.f32 0.03125, %v204_v41 }
 0x2b8   :  { %v210_v43 = vadd.f32 1e-05, %v208_v42 }
 0x2b9   :  { %v207_v44 = vpop.xlane.xlu1 %206 }
 0x2ba   :  { %286 = vrsqrt.f32 %v210_v43  ;;  %v209_v45 = vmul.f32 0.03125, %v207_v44 }
 0x2bc   :  { %v211_v46 = vadd.f32 1e-05, %v209_v45 }
 0x2be   :  { %288 = vrsqrt.f32 %v211_v46 }
 0x2c7   :  { %v287_v47 = vpop.eup %286 }
 0x2c8   :  { %v214_v49 = vmul.f32 %v287_v47, %v198_v33 }
 0x2ca   :  { %v222_v51 = vmul.f32 %v248_v48, %v214_v49 }
 0x2cb   :  { %v289_v52 = vpop.eup %288 }
 0x2cc   :  { %v230_v53 = vadd.f32 %v249_v50, %v222_v51  ;;  %v215_v54 = vmul.f32 %v289_v52, %v199_v37 }
 0x2ce   :  { %232 = vst.msk [vmem:[%s388_s7] sm:$0xff] %vm53_vm1, %v230_v53  ;;  %v223_v55 = vmul.f32 %v248_v48, %v215_v54 }
 0x2d0   :  { %v231_v56 = vadd.f32 %v249_v50, %v223_v55 }
 0x2d2   :  { %233 = vst.msk [vmem:[%s388_s7 + $0x8] sm:$0xff] %vm53_vm1, %v231_v56 }

// kernel: seq2seq_transformer_forward.13
= control target key start
LH: loop header
LB: loop body
LE: loop exit
PB: predicated region body
PF: predicated region fallthrough
CT: control target
= control target key end

     0   :  { %s1342_s27 = smov 0   ;;  %s1344_s28 = smov 0   ;;  %s1491_s0 = inlined_call_operand.vmem [shape: f32[2,8,32], index: 0, kind: input, shape index: {}]   ;;  %s1492_s1 = inlined_call_operand.vmem [shape: f32[2,1,8], index: 1, kind: input, shape index: {}]   ;;  %s1493_s2 = inlined_call_operand.vmem [shape: bf16[32,96], index: 2, kind: input, shape index: {}]   ;;  %s1494_s3 = inlined_call_operand.vmem [shape: f32[1,96], index: 3, kind: input, shape index: {}]   ;;  %s1495_s4 = inlined_call_operand.vmem [shape: bf16[32,32], index: 4, kind: input, shape index: {}]   ;;  %s1496_s5 = inlined_call_operand.vmem [shape: f32[1,32], index: 5, kind: input, shape index: {}]   ;;  %s1497_s6 = inlined_call_operand.vmem [shape: f32[1,32], index: 6, kind: input, shape index: {}]   ;;  %s1498_s7 = inlined_call_operand.vmem [shape: f32[1,32], index: 7, kind: input, shape index: {}]   ;;  %s1499_s8 = inlined_call_operand.vmem [shape: f32[2,8,32], index: 8, kind: output, shape index: {}]  }
   0x1   :  { %s1346_s29 = smov 0  }
   0x2 LB: > { %s30_s30 = sadd.s32 1, %s1275_s28  ;;  %p1085_p0 = scmp.ge.s32.totalorder %s1279_s29, 1  ;;  %s1279_s29 = sphi %s1346_s29, %s18_s29   ;;  %s1275_s28 = sphi %s1344_s28, %s1501_s28   ;;  %s1271_s27 = sphi %s1342_s27, %s1500_s27  }
   0x3   : > { %p32_p1 = scmp.ge.s32.totalorder %s30_s30, 2  ;;  %p283_p2 = scmp.lt.s32.totalorder %s1279_s29, 3 }
   0x5   : > { %s1503_s30 = smov (%p32_p1, %s30_s30), 0  ;;  %p284_p3 = pnand %p1085_p0, %p283_p2 }
   0x6   : > { %p321_p4 = scmp.lt.s32.totalorder (!%p284_p3), %s1271_s27, 1  ;;  %s1283_s19 = smov (!%p284_p3), 96  }
   0x7   : > { %287 = sbr.rel (%p284_p3) target bundleno = 1743 (0x6cf), region = 52  ;;  %s1284_s20 = smov (!%p284_p3), 120  }
   0x8   : > { %s1285_s21 = smov (!%p284_p3), 88   ;;  %s1286_s22 = smov (!%p284_p3), 80  }
   0x9   : > { %s1287_s23 = smov (!%p284_p3), 112   ;;  %s1288_s24 = smov (!%p284_p3), 72  }
   0xa   : > { %s1289_s25 = smov (!%p284_p3), 104   ;;  %s1290_s11 = smov (!%p284_p3), 56  }
   0xb   : > { %s1291_s12 = smov (!%p284_p3), 64   ;;  %s1292_s14 = smov (!%p284_p3), 40  }
   0xc   : > { %v1235_v0 = vld [vmem:[%s1493_s2 + $0x8] sm:$0xff]   ;;  %v1281_v1 = vmov 0.0   ;;  %v1236_v2 = vld [vmem:[%s1493_s2] sm:$0xff]   ;;  %vm1282_vm0 = vmmov 0   ;;  %s1505_s27 = smov (!%p321_p4, %s1271_s27), 1  ;;  %vm365_vm1 = vcmask 261120  }
   0xd   : > { %1131 = vmatprep.subr.bf16.mxu0 %v1281_v1  ;;  %1139 = vmatprep.subr.bf16.mxu1 %v1281_v1  ;;  %s1086_s13 = sshll.u32 %s1505_s27, 3  ;;  %v1088_v5 = vld [vmem:[%s1494_s3] ss:$0 sm:$0xff]  ;;  %vm409_vm2 = vcmask 785408   ;;  %vm429_vm3 = vcmask 64512   ;;  %s327_s10 = scalar_lea.vmem %s1492_s1, %s1505_s27  ;;  %vm493_vm4 = vcmask 1043456  }
   0xe   : > { %1132 = vmatpush3.bf16.msra.mxu0 %v1235_v0  ;;  %1135 = vmatprep.mubr.msk.bf16.mxu0 %vm1282_vm0, %v1281_v1  ;;  %s324_s16 = scalar_lea.vmem %s1491_s0, %s1086_s13  ;;  %v1092_v24 = vld [vmem:[%s327_s10] ss:$0 sm:$0xff]  ;;  %s1293_s15 = smov 48   ;;  %vm656_vm5 = vcmask 130112   ;;  %vm775_vm6 = vcmask 195712   ;;  %vm894_vm7 = vcmask 261312  }
   0xf   : > { %1133 = vmatprep.subr.bf16.mxu0 %v1281_v1  ;;  %1141 = vmatprep.mubr.msk.bf16.mxu1 %vm1282_vm0, %v1281_v1  ;;  %v1382_v3 = vld [vmem:[%s324_s16] sm:$0xff]  ;;  %s1294_s16 = smov 8  }
  0x10   : > { %v345_v4 = vpack.c.bf16 %v1382_v3, %v1382_v3 }
  0x12   : > { %1134 = vmatpush3.bf16.msra.mxu0 %v1236_v2 }
  0x13   : > { %1145 = vmatprep.subr.bf16.mxu0 %v1281_v1 }
  0x15   : > { %1136 = vmatmul.mubr.msk.bf16.vlgmr.msra.gmra.mxu0 %vm365_vm1, %v345_v4 }
  0x16   : > { %1147 = vmatprep.mubr.msk.bf16.mxu0 %vm1282_vm0, %v1281_v1 }
  0xd5   : > { %v403_v6 = vpop.f32.mrf.mxu0 }
  0xd6   : > { %v404_v7 = vadd.f32 %v1088_v5, %v403_v6 }
  0xd7   : > { %v1137_v8 = vpop.f32.mrf.mxu0 }
  0xd8   : > { %410 = vst.msk [vmem:[#allocation2] sm:$0xff] %vm409_vm2, %v404_v7 }
  0xd9   : > { %v406_v9 = vpop.f32.mrf.mxu0 }
  0xdb   : > { %v1138_v10 = vpop.f32.mrf.mxu0 }
  0xdf   : > { %v418_v11 = vld [vmem:[#allocation2] sm:$0xff] }
  0xe0   : > { %v1392_v12 = vpack.c.bf16 %v418_v11, %v418_v11 }
  0xe2   : > { %427 = vrot.lane.b32.xlu0 %v1392_v12, %s1283_s19  ;;  %541 = vrot.lane.b32.xlu1 %v1392_v12, %s1284_s20 }
  0xe6   : > { %544 = vrot.lane.b32.xlu0 %v1392_v12, %s1285_s21  ;;  %663 = vrot.lane.b32.xlu1 %v1392_v12, %s1286_s22  ;;  %s1295_s21 = smov 16   ;;  %s1296_s22 = smov 24  }
  0xea   : > { %660 = vrot.lane.b32.xlu0 %v1392_v12, %s1287_s23  ;;  %782 = vrot.lane.b32.xlu1 %v1392_v12, %s1288_s24 }
  0xee   : > { %779 = vrot.lane.b32.xlu0 %v1392_v12, %s1289_s25 }
 0x154   : > { %v428_v13 = vpop.permute.xlu0 %427  ;;  %v542_v16 = vpop.permute.xlu1 %541 }
 0x155   : > { %v434_v14 = vsel %vm429_vm3, %v428_v13, 0 }
 0x156   : > { %1140 = vmatpush3.bf16.xpose.msra.mxu1 %v434_v14 }
 0x157   : > { %1151 = vmatprep.subr.bf16.mxu1 %v1281_v1 }
 0x158   : > { %v545_v15 = vpop.permute.xlu0 %544  ;;  %v664_v18 = vpop.permute.xlu1 %663 }
 0x159   : > { %v550_v17 = vsel %vm429_vm3, %v545_v15, 0  ;;  %v669_v19 = vsel %vm429_vm3, %v664_v18, 0 }
 0x15c   : > { %v783_v20 = vpop.permute.xlu1 %782  ;;  %v661_v21 = vpop.permute.xlu0 %660 }
 0x15d   : > { %1142 = vmatmul.mubr.msk.bf16.vlgmr.msra.gmra.mxu1 %vm429_vm3, %v1392_v12  ;;  %v788_v22 = vsel %vm429_vm3, %v783_v20, 0 }
 0x15e   : > { %1152 = vmatpush3.bf16.xpose.msra.mxu1 %v550_v17  ;;  %1153 = vmatprep.mubr.msk.bf16.mxu1 %vm1282_vm0, %v1281_v1 }
 0x15f   : > { %1163 = vmatprep.subr.bf16.mxu1 %v1281_v1 }
 0x160   : > { %v780_v23 = vpop.permute.xlu0 %779 }
 0x165   : > { %1154 = vmatmul.mubr.msk.bf16.vlgmr.msra.gmra.mxu1 %vm429_vm3, %v542_v16 }
 0x166   : > { %1164 = vmatpush3.bf16.xpose.msra.mxu1 %v669_v19  ;;  %1165 = vmatprep.mubr.msk.bf16.mxu1 %vm1282_vm0, %v1281_v1 }
 0x167   : > { %1175 = vmatprep.subr.bf16.mxu1 %v1281_v1 }
 0x16d   : > { %1166 = vmatmul.mubr.msk.bf16.vlgmr.msra.gmra.mxu1 %vm429_vm3, %v661_v21 }
 0x16e   : > { %1176 = vmatpush3.bf16.xpose.msra.mxu1 %v788_v22  ;;  %1177 = vmatprep.mubr.msk.bf16.mxu1 %vm1282_vm0, %v1281_v1 }
 0x16f   : > { %1187 = vmatprep.subr.bf16.mxu1 %v1281_v1 }
 0x175   : > { %1178 = vmatmul.mubr.msk.bf16.vlgmr.msra.gmra.mxu1 %vm429_vm3, %v780_v23 }
 0x176   : > { %1191 = vmatprep.mubr.msk.bf16.mxu1 %vm1282_vm0, %v1281_v1 }
 0x21d   : > { %v470_v25 = vpop.f32.mrf.mxu1 }
 0x21e   : > { %v471_v26 = vadd.f32 %v1092_v24, %v470_v25 }
 0x21f   : > { %v1143_v27 = vpop.f32.mrf.mxu1 }
 0x220   : > { %v476_v28 = vsel %vm429_vm3, %v471_v26, -inf }
 0x221   : > { %477 = vmax.xlane.f32.xlu1 %v476_v28  ;;  %v473_v29 = vpop.f32.mrf.mxu1 }
 0x223   : > { %v1144_v30 = vpop.f32.mrf.mxu1 }
 0x225   : > { %v586_v31 = vpop.f32.mrf.mxu1 }
 0x226   : > { %v587_v32 = vadd.f32 %v1092_v24, %v586_v31 }
 0x227   : > { %v1155_v33 = vpop.f32.mrf.mxu1 }
 0x228   : > { %v592_v34 = vsel %vm429_vm3, %v587_v32, -inf }
 0x229   : > { %593 = vmax.xlane.f32.xlu0 %v592_v34  ;;  %v589_v35 = vpop.f32.mrf.mxu1 }
 0x22b   : > { %v1156_v36 = vpop.f32.mrf.mxu1 }
 0x22d   : > { %v705_v37 = vpop.f32.mrf.mxu1 }
 0x22e   : > { %v706_v38 = vadd.f32 %v1092_v24, %v705_v37 }
 0x22f   : > { %v1167_v39 = vpop.f32.mrf.mxu1 }
 0x230   : > { %v711_v40 = vsel %vm429_vm3, %v706_v38, -inf  ;;  %v1237_v39 = vld [vmem:[%s1495_s4 + $0x8] sm:$0xff]  }
 0x231   : > { %712 = vmax.xlane.f32.xlu0 %v711_v40  ;;  %v708_v41 = vpop.f32.mrf.mxu1  ;;  %1188 = vmatpush3.bf16.msra.mxu1 %v1237_v39 }
 0x232   : > { %v1238_v41 = vld [vmem:[%s1495_s4] sm:$0xff]   ;;  %1189 = vmatprep.subr.bf16.mxu1 %v1281_v1 }
 0x233   : > { %v1168_v42 = vpop.f32.mrf.mxu1 }
 0x235   : > { %v824_v43 = vpop.f32.mrf.mxu1  ;;  %1190 = vmatpush3.bf16.msra.mxu1 %v1238_v41 }
 0x236   : > { %v825_v44 = vadd.f32 %v1092_v24, %v824_v43 }
 0x237   : > { %v1179_v45 = vpop.f32.mrf.mxu1 }
 0x238   : > { %v830_v46 = vsel %vm429_vm3, %v825_v44, -inf }
 0x239   : > { %831 = vmax.xlane.f32.xlu1 %v830_v46  ;;  %v827_v47 = vpop.f32.mrf.mxu1 }
 0x23b   : > { %v1180_v48 = vpop.f32.mrf.mxu1 }
 0x2aa   : > { %v478_v49 = vpop.xlane.xlu1 %477 }
 0x2ab   : > { %v479_v50 = vsub.f32 %v471_v26, %v478_v49 }
 0x2ad   : > { %v480_v51 = vmul.f32 1.442695, %v479_v50 }
 0x2af   : > { %1239 = vpow2.f32 %v480_v51 }
 0x2b2   : > { %v594_v52 = vpop.xlane.xlu0 %593 }
 0x2b3   : > { %v595_v53 = vsub.f32 %v587_v32, %v594_v52 }
 0x2b5   : > { %v596_v54 = vmul.f32 1.442695, %v595_v53  ;;  %v1101_v53 = vld [vmem:[%s1496_s5] ss:$0 sm:$0xff] }
 0x2b7   : > { %1241 = vpow2.f32 %v596_v54 }
 0x2ba   : > { %v713_v55 = vpop.xlane.xlu0 %712 }
 0x2bb   : > { %v714_v56 = vsub.f32 %v706_v38, %v713_v55 }
 0x2bc   : > { %v1240_v57 = vpop.eup %1239 }
 0x2bd   : > { %v715_v58 = vmul.f32 1.442695, %v714_v56  ;;  %v482_v59 = vsel %vm429_vm3, %v1240_v57, 0.0 }
 0x2be   : > { %483 = vadd.xlane.f32.xlu0 %v482_v59 }
 0x2bf   : > { %1243 = vpow2.f32 %v715_v58 }
 0x2c2   : > { %v832_v0 = vpop.xlane.xlu1 %831 }
 0x2c3   : > { %v833_v2 = vsub.f32 %v825_v44, %v832_v0 }
 0x2c4   : > { %v1242_v60 = vpop.eup %1241 }
 0x2c5   : > { %v598_v61 = vsel %vm429_vm3, %v1242_v60, 0.0  ;;  %v834_v4 = vmul.f32 1.442695, %v833_v2 }
 0x2c6   : > { %599 = vadd.xlane.f32.xlu1 %v598_v61 }
 0x2c7   : > { %1245 = vpow2.f32 %v834_v4 }
 0x2cc   : > { %v1244_v62 = vpop.eup %1243 }
 0x2cd   : > { %v717_v63 = vsel %vm429_vm3, %v1244_v62, 0.0 }
 0x2ce   : > { %718 = vadd.xlane.f32.xlu0 %v717_v63 }
 0x2d4   : > { %v1246_v5 = vpop.eup %1245 }
 0x2d5   : > { %v836_v6 = vsel %vm429_vm3, %v1246_v5, 0.0 }
 0x2d7   : > { %604 = vrot.lane.b32.xlu1 %v1392_v12, %s1290_s11 }
 0x2e4   : > { %488 = vrot.lane.b32.xlu0 %v1392_v12, %s1291_s12 }
 0x2e8   : > { %842 = vrot.lane.b32.xlu0 %v1392_v12, %s1292_s14  ;;  %s334_s14 = scalar_lea.vmem %s1499_s8, %s1086_s13 }
 0x2fb   : > { %837 = vadd.xlane.f32.xlu1 %v836_v6 }
 0x30c   : > { %723 = vrot.lane.b32.xlu1 %v1392_v12, %s1293_s15 }
 0x347   : > { %v484_v7 = vpop.xlane.xlu0 %483 }
 0x348   : > { %1247 = vrcp.f32 %v484_v7 }
 0x34f   : > { %v600_v8 = vpop.xlane.xlu1 %599 }
 0x350   : > { %1249 = vrcp.f32 %v600_v8 }
 0x353   : > { %v605_v15 = vpop.permute.xlu1 %604 }
 0x354   : > { %v610_v18 = vsel %vm493_vm4, %v605_v15, 0 }
 0x355   : > { %v1248_v9 = vpop.eup %1247 }
 0x356   : > { %v486_v11 = vmul.f32 %v1248_v9, %v1240_v57  ;;  %v1106_v9 = vld [vmem:[%s1498_s7] ss:$0 sm:$0xff] }
 0x357   : > { %v719_v10 = vpop.xlane.xlu0 %718 }
 0x358   : > { %v487_v16 = vpack.c.bf16 %v486_v11, %v486_v11  ;;  %1251 = vrcp.f32 %v719_v10 }
 0x35b   : > { %v489_v13 = vpop.permute.xlu0 %488 }
 0x35c   : > { %v495_v14 = vsel %vm493_vm4, %v489_v13, 0 }
 0x35d   : > { %1146 = vmatpush3.bf16.msra.mxu0 %v495_v14  ;;  %v1250_v17 = vpop.eup %1249 }
 0x35e   : > { %1157 = vmatprep.subr.bf16.mxu0 %v1281_v1  ;;  %v602_v12 = vmul.f32 %v1250_v17, %v1242_v60 }
 0x35f   : > { %v843_v25 = vpop.permute.xlu0 %842 }
 0x360   : > { %1148 = vmatmul.mubr.msk.bf16.vlgmr.msra.gmra.mxu0 %vm429_vm3, %v487_v16  ;;  %v603_v19 = vpack.c.bf16 %v602_v12, %v602_v12  ;;  %v848_v27 = vsel %vm493_vm4, %v843_v25, 0 }
 0x361   : > { %1158 = vmatpush3.bf16.msra.mxu0 %v610_v18  ;;  %1159 = vmatprep.mubr.msk.bf16.mxu0 %vm1282_vm0, %v1281_v1 }
 0x362   : > { %1169 = vmatprep.subr.bf16.mxu0 %v1281_v1 }
 0x365   : > { %v1252_v20 = vpop.eup %1251 }
 0x366   : > { %v721_v22 = vmul.f32 %v1252_v20, %v1244_v62 }
 0x368   : > { %1160 = vmatmul.mubr.msk.bf16.vlgmr.msra.gmra.mxu0 %vm429_vm3, %v603_v19  ;;  %v722_v26 = vpack.c.bf16 %v721_v22, %v721_v22 }
 0x369   : > { %1171 = vmatprep.mubr.msk.bf16.mxu0 %vm1282_vm0, %v1281_v1 }
 0x384   : > { %v838_v21 = vpop.xlane.xlu1 %837 }
 0x385   : > { %1253 = vrcp.f32 %v838_v21 }
 0x388   : > { %v724_v23 = vpop.permute.xlu1 %723 }
 0x389   : > { %v729_v24 = vsel %vm493_vm4, %v724_v23, 0 }
 0x38a   : > { %1170 = vmatpush3.bf16.msra.mxu0 %v729_v24 }
 0x38b   : > { %1181 = vmatprep.subr.bf16.mxu0 %v1281_v1 }
 0x38d   : > { %1172 = vmatmul.mubr.msk.bf16.vlgmr.msra.gmra.mxu0 %vm429_vm3, %v722_v26 }
 0x38e   : > { %1182 = vmatpush3.bf16.msra.mxu0 %v848_v27  ;;  %1183 = vmatprep.mubr.msk.bf16.mxu0 %vm1282_vm0, %v1281_v1 }
 0x392   : > { %v1254_v28 = vpop.eup %1253 }
 0x393   : > { %v840_v29 = vmul.f32 %v1254_v28, %v1246_v5 }
 0x395   : > { %v841_v30 = vpack.c.bf16 %v840_v29, %v840_v29 }
 0x397   : > { %1184 = vmatmul.mubr.msk.bf16.vlgmr.msra.gmra.mxu0 %vm429_vm3, %v841_v30 }
 0x420   : > { %v531_v31 = vpop.f32.mrf.mxu0 }
 0x421   : > { %537 = vst.msk [vmem:[#allocation3] sm:$0xff] %vm429_vm3, %v531_v31 }
 0x422   : > { %v1149_v32 = vpop.f32.mrf.mxu0 }
 0x424   : > { %v534_v33 = vpop.f32.mrf.mxu0 }
 0x426   : > { %v1150_v34 = vpop.f32.mrf.mxu0 }
 0x428   : > { %v646_v35 = vpop.f32.mrf.mxu0 }
 0x429   : > { %653 = vrot.lane.b32.xlu1 %v646_v35, %s1294_s16 }
 0x42a   : > { %v1161_v36 = vpop.f32.mrf.mxu0 }
 0x42c   : > { %v649_v37 = vpop.f32.mrf.mxu0 }
 0x42e   : > { %v1162_v38 = vpop.f32.mrf.mxu0 }
 0x44d   : > { %v765_v40 = vpop.f32.mrf.mxu0 }
 0x44e   : > { %772 = vrot.lane.b32.xlu0 %v765_v40, %s1295_s21 }
 0x44f   : > { %v1173_v42 = vpop.f32.mrf.mxu0 }
 0x451   : > { %v768_v43 = vpop.f32.mrf.mxu0 }
 0x453   : > { %v1174_v44 = vpop.f32.mrf.mxu0 }
 0x457   : > { %v884_v45 = vpop.f32.mrf.mxu0 }
 0x458   : > { %891 = vrot.lane.b32.xlu1 %v884_v45, %s1296_s22 }
 0x459   : > { %v1185_v46 = vpop.f32.mrf.mxu0 }
 0x45b   : > { %v887_v47 = vpop.f32.mrf.mxu0 }
 0x45d   : > { %v1186_v48 = vpop.f32.mrf.mxu0 }
 0x49b   : > { %v654_v49 = vpop.permute.xlu1 %653 }
 0x49c   : > { %657 = vst.msk [vmem:[#allocation3] sm:$0xff] %vm656_vm5, %v654_v49 }
 0x4c0   : > { %v773_v50 = vpop.permute.xlu0 %772 }
 0x4c1   : > { %776 = vst.msk [vmem:[#allocation3] sm:$0xff] %vm775_vm6, %v773_v50 }
 0x4ca   : > { %v892_v51 = vpop.permute.xlu1 %891 }
 0x4cb   : > { %895 = vst.msk [vmem:[#allocation3] sm:$0xff] %vm894_vm7, %v892_v51 }
 0x4d2   : > { %v896_v1 = vld [vmem:[#allocation3] sm:$0xff] }
 0x4d3   : > { %v901_v52 = vpack.c.bf16 %v896_v1, %v896_v1 }
 0x4d5   : > { %1192 = vmatmul.mubr.msk.bf16.vlgmr.msra.gmra.mxu1 %vm365_vm1, %v901_v52 }
 0x595   : > { %v959_v54 = vpop.f32.mrf.mxu1 }
 0x596   : > { %v960_v55 = vadd.f32 %v1101_v53, %v959_v54 }
 0x597   : > { %v1193_v56 = vpop.f32.mrf.mxu1 }
 0x598   : > { %v965_v57 = vadd.f32 %v960_v55, %v1382_v3  ;;  %v1105_v3 = vld [vmem:[%s1497_s6] ss:$0 sm:$0xff] }
 0x599   : > { %v962_v58 = vpop.f32.mrf.mxu1 }
 0x59a   : > { %v968_v59 = vsel %vm365_vm1, %v965_v57, 0.0 }
 0x59b   : > { %969 = vadd.xlane.f32.xlu0 %v968_v59  ;;  %v1194_v60 = vpop.f32.mrf.mxu1 }
 0x624   : > { %v970_v61 = vpop.xlane.xlu0 %969 }
 0x625   : > { %v972_v62 = vmul.f32 0.03125, %v970_v61 }
 0x627   : > { %v973_v63 = vsub.f32 %v965_v57, %v972_v62 }
 0x629   : > { %v974_v0 = vmul.f32 %v973_v63, %v973_v63 }
 0x62b   : > { %v975_v2 = vsel %vm365_vm1, %v974_v0, 0.0 }
 0x62c   : > { %976 = vadd.xlane.f32.xlu1 %v975_v2 }
 0x6b5   : > { %v977_v4 = vpop.xlane.xlu1 %976 }
 0x6b6   : > { %v978_v5 = vmul.f32 0.03125, %v977_v4 }
 0x6b8   : > { %v979_v6 = vadd.f32 1e-05, %v978_v5 }
 0x6ba   : > { %1255 = vrsqrt.f32 %v979_v6 }
 0x6c7   : > { %v1256_v7 = vpop.eup %1255 }
 0x6c8   : > { %v981_v8 = vmul.f32 %v1256_v7, %v973_v63 }
 0x6ca   : > { %v988_v10 = vmul.f32 %v1105_v3, %v981_v8 }
 0x6cc   : > { %v995_v11 = vadd.f32 %v1106_v9, %v988_v10 }
 0x6ce   : > { %996 = vst.msk [vmem:[%s334_s14] sm:$0xff] %vm365_vm1, %v995_v11 }
 0x6cf PF: > { %s18_s29 = sadd.s32 1, %s1279_s29   ;;  %s1500_s27 = smov %s1275_s28 }
 0x6d0   : > { %p15_p5 = scmp.ge.s32.totalorder %s18_s29, 4   ;;  %s1501_s28 = smov %s1503_s30 }
 0x6d2   :  { %17 = sbr.rel (!%p15_p5) target bundleno = 2 (0x2), region = 91 }

// kernel: seq2seq_transformer_forward.18
= control target key start
LH: loop header
LB: loop body
LE: loop exit
PB: predicated region body
PF: predicated region fallthrough
CT: control target
= control target key end

     0   :  { %s1410_s30 = smov 0   ;;  %s1412_s10 = smov 0   ;;  %s1562_s0 = inlined_call_operand.vmem [shape: f32[2,8,32], index: 0, kind: input, shape index: {}]   ;;  %s1563_s1 = inlined_call_operand.vmem [shape: f32[2,1,8], index: 1, kind: input, shape index: {}]   ;;  %s1564_s2 = inlined_call_operand.vmem [shape: f32[8,8], index: 2, kind: input, shape index: {}]   ;;  %s1565_s3 = inlined_call_operand.vmem [shape: bf16[32,96], index: 3, kind: input, shape index: {}]   ;;  %s1566_s4 = inlined_call_operand.vmem [shape: f32[1,96], index: 4, kind: input, shape index: {}]   ;;  %s1567_s5 = inlined_call_operand.vmem [shape: bf16[32,32], index: 5, kind: input, shape index: {}]   ;;  %s1568_s6 = inlined_call_operand.vmem [shape: f32[1,32], index: 6, kind: input, shape index: {}]   ;;  %s1569_s7 = inlined_call_operand.vmem [shape: f32[1,32], index: 7, kind: input, shape index: {}]   ;;  %s1570_s8 = inlined_call_operand.vmem [shape: f32[1,32], index: 8, kind: input, shape index: {}]   ;;  %s1571_s9 = inlined_call_operand.vmem [shape: f32[2,8,32], index: 9, kind: output, shape index: {}]  }
   0x1   :  { %s1414_s11 = smov 0  }
   0x2 LB: > { %s31_s12 = sadd.s32 1, %s1338_s10  ;;  %p1148_p0 = scmp.ge.s32.totalorder %s1342_s11, 1  ;;  %s1342_s11 = sphi %s1414_s11, %s19_s11   ;;  %s1338_s10 = sphi %s1412_s10, %s1573_s10   ;;  %s1334_s30 = sphi %s1410_s30, %s1572_s30  }
   0x3   : > { %p33_p1 = scmp.ge.s32.totalorder %s31_s12, 2  ;;  %p317_p2 = scmp.lt.s32.totalorder %s1342_s11, 3 }
   0x5   : > { %s1575_s12 = smov (%p33_p1, %s31_s12), 0  ;;  %p318_p3 = pnand %p1148_p0, %p317_p2 }
   0x6   : > { %p361_p4 = scmp.lt.s32.totalorder (!%p318_p3), %s1334_s30, 1  ;;  %s1346_s23 = smov (!%p318_p3), 96  }
   0x7   : > { %321 = sbr.rel (%p318_p3) target bundleno = 1743 (0x6cf), region = 56  ;;  %s1347_s24 = smov (!%p318_p3), 120  }
   0x8   : > { %s1348_s25 = smov (!%p318_p3), 88   ;;  %s1349_s26 = smov (!%p318_p3), 80  }
   0x9   : > { %s1350_s27 = smov (!%p318_p3), 112   ;;  %s1351_s28 = smov (!%p318_p3), 72  }
   0xa   : > { %s1352_s29 = smov (!%p318_p3), 104   ;;  %s1353_s19 = smov (!%p318_p3), 56  }
   0xb   : > { %s1355_s21 = smov (!%p318_p3), 40   ;;  %s1356_s22 = smov (!%p318_p3), 48  }
   0xc   : > { %v1298_v0 = vld [vmem:[%s1565_s3 + $0x8] sm:$0xff]   ;;  %v1344_v1 = vmov 0.0   ;;  %v1299_v2 = vld [vmem:[%s1565_s3] sm:$0xff]   ;;  %vm1345_vm0 = vmmov 0   ;;  %s1577_s30 = smov (!%p361_p4, %s1334_s30), 1  ;;  %vm409_vm1 = vcmask 261120  }
   0xd   : > { %1194 = vmatprep.subr.bf16.mxu0 %v1344_v1  ;;  %1202 = vmatprep.subr.bf16.mxu1 %v1344_v1  ;;  %s1149_s17 = sshll.u32 %s1577_s30, 3  ;;  %v1151_v5 = vld [vmem:[%s1566_s4] ss:$0 sm:$0xff]  ;;  %vm453_vm2 = vcmask 785408   ;;  %vm475_vm3 = vcmask 64512   ;;  %s367_s15 = scalar_lea.vmem %s1563_s1, %s1577_s30  ;;  %vm539_vm4 = vcmask 1043456  }
   0xe   : > { %1195 = vmatpush3.bf16.msra.mxu0 %v1298_v0  ;;  %1198 = vmatprep.mubr.msk.bf16.mxu0 %vm1345_vm0, %v1344_v1  ;;  %s364_s20 = scalar_lea.vmem %s1562_s0, %s1149_s17  ;;  %v1155_v24 = vld [vmem:[%s367_s15] ss:$0 sm:$0xff]  ;;  %vm702_vm5 = vcmask 130112   ;;  %vm821_vm6 = vcmask 195712   ;;  %vm940_vm7 = vcmask 261312  }
   0xf   : > { %1196 = vmatprep.subr.bf16.mxu0 %v1344_v1  ;;  %1204 = vmatprep.mubr.msk.bf16.mxu1 %vm1345_vm0, %v1344_v1  ;;  %v1450_v3 = vld [vmem:[%s364_s20] sm:$0xff]  ;;  %s1354_s20 = smov 64  }
  0x10   : > { %v389_v4 = vpack.c.bf16 %v1450_v3, %v1450_v3  ;;  %v461_v25 = vld [vmem:[%s1564_s2] sm:$0xff] }
  0x11   : > { %v468_v26 = vadd.f32 %v1155_v24, %v461_v25 }
  0x12   : > { %1197 = vmatpush3.bf16.msra.mxu0 %v1299_v2 }
  0x13   : > { %1208 = vmatprep.subr.bf16.mxu0 %v1344_v1 }
  0x15   : > { %1199 = vmatmul.mubr.msk.bf16.vlgmr.msra.gmra.mxu0 %vm409_vm1, %v389_v4 }
  0x16   : > { %1210 = vmatprep.mubr.msk.bf16.mxu0 %vm1345_vm0, %v1344_v1 }
  0xd5   : > { %v447_v6 = vpop.f32.mrf.mxu0 }
  0xd6   : > { %v448_v7 = vadd.f32 %v1151_v5, %v447_v6 }
  0xd7   : > { %v1200_v8 = vpop.f32.mrf.mxu0 }
  0xd8   : > { %454 = vst.msk [vmem:[#allocation2] sm:$0xff] %vm453_vm2, %v448_v7 }
  0xd9   : > { %v450_v9 = vpop.f32.mrf.mxu0 }
  0xdb   : > { %v1201_v10 = vpop.f32.mrf.mxu0 }
  0xdf   : > { %v470_v11 = vld [vmem:[#allocation2] sm:$0xff] }
  0xe0   : > { %v1460_v12 = vpack.c.bf16 %v470_v11, %v470_v11 }
  0xe2   : > { %473 = vrot.lane.b32.xlu0 %v1460_v12, %s1346_s23  ;;  %587 = vrot.lane.b32.xlu1 %v1460_v12, %s1347_s24  ;;  %s1357_s23 = smov 8  }
  0xe6   : > { %590 = vrot.lane.b32.xlu0 %v1460_v12, %s1348_s25  ;;  %709 = vrot.lane.b32.xlu1 %v1460_v12, %s1349_s26 }
  0xea   : > { %706 = vrot.lane.b32.xlu0 %v1460_v12, %s1350_s27  ;;  %828 = vrot.lane.b32.xlu1 %v1460_v12, %s1351_s28  ;;  %s1358_s28 = smov 16  }
  0xee   : > { %825 = vrot.lane.b32.xlu0 %v1460_v12, %s1352_s29  ;;  %s1359_s29 = smov 24  }
 0x154   : > { %v474_v13 = vpop.permute.xlu0 %473  ;;  %v588_v16 = vpop.permute.xlu1 %587 }
 0x155   : > { %v480_v14 = vsel %vm475_vm3, %v474_v13, 0 }
 0x156   : > { %1203 = vmatpush3.bf16.xpose.msra.mxu1 %v480_v14 }
 0x157   : > { %1214 = vmatprep.subr.bf16.mxu1 %v1344_v1 }
 0x158   : > { %v591_v15 = vpop.permute.xlu0 %590  ;;  %v710_v18 = vpop.permute.xlu1 %709 }
 0x159   : > { %v596_v17 = vsel %vm475_vm3, %v591_v15, 0  ;;  %v715_v19 = vsel %vm475_vm3, %v710_v18, 0 }
 0x15c   : > { %v829_v20 = vpop.permute.xlu1 %828  ;;  %v707_v21 = vpop.permute.xlu0 %706 }
 0x15d   : > { %1205 = vmatmul.mubr.msk.bf16.vlgmr.msra.gmra.mxu1 %vm475_vm3, %v1460_v12  ;;  %v834_v22 = vsel %vm475_vm3, %v829_v20, 0 }
 0x15e   : > { %1215 = vmatpush3.bf16.xpose.msra.mxu1 %v596_v17  ;;  %1216 = vmatprep.mubr.msk.bf16.mxu1 %vm1345_vm0, %v1344_v1 }
 0x15f   : > { %1226 = vmatprep.subr.bf16.mxu1 %v1344_v1 }
 0x160   : > { %v826_v23 = vpop.permute.xlu0 %825 }
 0x165   : > { %1217 = vmatmul.mubr.msk.bf16.vlgmr.msra.gmra.mxu1 %vm475_vm3, %v588_v16 }
 0x166   : > { %1227 = vmatpush3.bf16.xpose.msra.mxu1 %v715_v19  ;;  %1228 = vmatprep.mubr.msk.bf16.mxu1 %vm1345_vm0, %v1344_v1 }
 0x167   : > { %1238 = vmatprep.subr.bf16.mxu1 %v1344_v1 }
 0x16d   : > { %1229 = vmatmul.mubr.msk.bf16.vlgmr.msra.gmra.mxu1 %vm475_vm3, %v707_v21 }
 0x16e   : > { %1239 = vmatpush3.bf16.xpose.msra.mxu1 %v834_v22  ;;  %1240 = vmatprep.mubr.msk.bf16.mxu1 %vm1345_vm0, %v1344_v1 }
 0x16f   : > { %1250 = vmatprep.subr.bf16.mxu1 %v1344_v1 }
 0x175   : > { %1241 = vmatmul.mubr.msk.bf16.vlgmr.msra.gmra.mxu1 %vm475_vm3, %v826_v23 }
 0x176   : > { %1254 = vmatprep.mubr.msk.bf16.mxu1 %vm1345_vm0, %v1344_v1 }
 0x21d   : > { %v516_v27 = vpop.f32.mrf.mxu1 }
 0x21e   : > { %v517_v28 = vadd.f32 %v516_v27, %v468_v26 }
 0x21f   : > { %v1206_v29 = vpop.f32.mrf.mxu1 }
 0x220   : > { %v522_v30 = vsel %vm475_vm3, %v517_v28, -inf }
 0x221   : > { %523 = vmax.xlane.f32.xlu1 %v522_v30  ;;  %v519_v31 = vpop.f32.mrf.mxu1 }
 0x223   : > { %v1207_v32 = vpop.f32.mrf.mxu1 }
 0x225   : > { %v632_v33 = vpop.f32.mrf.mxu1 }
 0x226   : > { %v633_v34 = vadd.f32 %v632_v33, %v468_v26 }
 0x227   : > { %v1218_v35 = vpop.f32.mrf.mxu1 }
 0x228   : > { %v638_v36 = vsel %vm475_vm3, %v633_v34, -inf }
 0x229   : > { %639 = vmax.xlane.f32.xlu0 %v638_v36  ;;  %v635_v37 = vpop.f32.mrf.mxu1 }
 0x22b   : > { %v1219_v38 = vpop.f32.mrf.mxu1 }
 0x22d   : > { %v751_v39 = vpop.f32.mrf.mxu1 }
 0x22e   : > { %v752_v40 = vadd.f32 %v751_v39, %v468_v26 }
 0x22f   : > { %v1230_v41 = vpop.f32.mrf.mxu1 }
 0x230   : > { %v757_v42 = vsel %vm475_vm3, %v752_v40, -inf  ;;  %v1300_v41 = vld [vmem:[%s1567_s5 + $0x8] sm:$0xff]  }
 0x231   : > { %758 = vmax.xlane.f32.xlu0 %v757_v42  ;;  %v754_v43 = vpop.f32.mrf.mxu1  ;;  %1251 = vmatpush3.bf16.msra.mxu1 %v1300_v41 }
 0x232   : > { %v1301_v43 = vld [vmem:[%s1567_s5] sm:$0xff]   ;;  %1252 = vmatprep.subr.bf16.mxu1 %v1344_v1 }
 0x233   : > { %v1231_v44 = vpop.f32.mrf.mxu1 }
 0x235   : > { %v870_v45 = vpop.f32.mrf.mxu1  ;;  %1253 = vmatpush3.bf16.msra.mxu1 %v1301_v43 }
 0x236   : > { %v871_v46 = vadd.f32 %v870_v45, %v468_v26 }
 0x237   : > { %v1242_v47 = vpop.f32.mrf.mxu1 }
 0x238   : > { %v876_v48 = vsel %vm475_vm3, %v871_v46, -inf }
 0x239   : > { %877 = vmax.xlane.f32.xlu1 %v876_v48  ;;  %v873_v49 = vpop.f32.mrf.mxu1 }
 0x23b   : > { %v1243_v50 = vpop.f32.mrf.mxu1 }
 0x2aa   : > { %v524_v51 = vpop.xlane.xlu1 %523 }
 0x2ab   : > { %v525_v52 = vsub.f32 %v517_v28, %v524_v51 }
 0x2ad   : > { %v526_v53 = vmul.f32 1.442695, %v525_v52 }
 0x2af   : > { %1302 = vpow2.f32 %v526_v53 }
 0x2b2   : > { %v640_v54 = vpop.xlane.xlu0 %639 }
 0x2b3   : > { %v641_v55 = vsub.f32 %v633_v34, %v640_v54 }
 0x2b5   : > { %v642_v56 = vmul.f32 1.442695, %v641_v55  ;;  %v1164_v55 = vld [vmem:[%s1568_s6] ss:$0 sm:$0xff] }
 0x2b7   : > { %1304 = vpow2.f32 %v642_v56 }
 0x2ba   : > { %v759_v57 = vpop.xlane.xlu0 %758 }
 0x2bb   : > { %v760_v58 = vsub.f32 %v752_v40, %v759_v57 }
 0x2bc   : > { %v1303_v59 = vpop.eup %1302 }
 0x2bd   : > { %v761_v60 = vmul.f32 1.442695, %v760_v58  ;;  %v528_v61 = vsel %vm475_vm3, %v1303_v59, 0.0 }
 0x2be   : > { %529 = vadd.xlane.f32.xlu0 %v528_v61 }
 0x2bf   : > { %1306 = vpow2.f32 %v761_v60 }
 0x2c2   : > { %v878_v4 = vpop.xlane.xlu1 %877 }
 0x2c3   : > { %v879_v5 = vsub.f32 %v871_v46, %v878_v4 }
 0x2c4   : > { %v1305_v62 = vpop.eup %1304 }
 0x2c5   : > { %v644_v63 = vsel %vm475_vm3, %v1305_v62, 0.0  ;;  %v880_v6 = vmul.f32 1.442695, %v879_v5 }
 0x2c6   : > { %645 = vadd.xlane.f32.xlu1 %v644_v63 }
 0x2c7   : > { %1308 = vpow2.f32 %v880_v6 }
 0x2cc   : > { %v1307_v0 = vpop.eup %1306 }
 0x2cd   : > { %v763_v2 = vsel %vm475_vm3, %v1307_v0, 0.0 }
 0x2ce   : > { %764 = vadd.xlane.f32.xlu0 %v763_v2 }
 0x2d4   : > { %v1309_v7 = vpop.eup %1308 }
 0x2d5   : > { %v882_v8 = vsel %vm475_vm3, %v1309_v7, 0.0 }
 0x2d7   : > { %650 = vrot.lane.b32.xlu1 %v1460_v12, %s1353_s19 }
 0x2e4   : > { %534 = vrot.lane.b32.xlu0 %v1460_v12, %s1354_s20 }
 0x2e8   : > { %888 = vrot.lane.b32.xlu0 %v1460_v12, %s1355_s21 }
 0x2fb   : > { %883 = vadd.xlane.f32.xlu1 %v882_v8 }
 0x30c   : > { %769 = vrot.lane.b32.xlu1 %v1460_v12, %s1356_s22  ;;  %s378_s22 = scalar_lea.vmem %s1571_s9, %s1149_s17 }
 0x347   : > { %v530_v9 = vpop.xlane.xlu0 %529 }
 0x348   : > { %1310 = vrcp.f32 %v530_v9 }
 0x34f   : > { %v646_v10 = vpop.xlane.xlu1 %645 }
 0x350   : > { %1312 = vrcp.f32 %v646_v10 }
 0x353   : > { %v651_v17 = vpop.permute.xlu1 %650 }
 0x354   : > { %v656_v20 = vsel %vm539_vm4, %v651_v17, 0 }
 0x355   : > { %v1311_v11 = vpop.eup %1310 }
 0x356   : > { %v532_v14 = vmul.f32 %v1311_v11, %v1303_v59  ;;  %v1169_v11 = vld [vmem:[%s1570_s8] ss:$0 sm:$0xff] }
 0x357   : > { %v765_v13 = vpop.xlane.xlu0 %764 }
 0x358   : > { %v533_v18 = vpack.c.bf16 %v532_v14, %v532_v14  ;;  %1314 = vrcp.f32 %v765_v13 }
 0x35b   : > { %v535_v15 = vpop.permute.xlu0 %534 }
 0x35c   : > { %v541_v16 = vsel %vm539_vm4, %v535_v15, 0 }
 0x35d   : > { %1209 = vmatpush3.bf16.msra.mxu0 %v541_v16  ;;  %v1313_v19 = vpop.eup %1312 }
 0x35e   : > { %1220 = vmatprep.subr.bf16.mxu0 %v1344_v1  ;;  %v648_v12 = vmul.f32 %v1313_v19, %v1305_v62 }
 0x35f   : > { %v889_v27 = vpop.permute.xlu0 %888 }
 0x360   : > { %1211 = vmatmul.mubr.msk.bf16.vlgmr.msra.gmra.mxu0 %vm475_vm3, %v533_v18  ;;  %v649_v21 = vpack.c.bf16 %v648_v12, %v648_v12  ;;  %v894_v29 = vsel %vm539_vm4, %v889_v27, 0 }
 0x361   : > { %1221 = vmatpush3.bf16.msra.mxu0 %v656_v20  ;;  %1222 = vmatprep.mubr.msk.bf16.mxu0 %vm1345_vm0, %v1344_v1 }
 0x362   : > { %1232 = vmatprep.subr.bf16.mxu0 %v1344_v1 }
 0x365   : > { %v1315_v22 = vpop.eup %1314 }
 0x366   : > { %v767_v24 = vmul.f32 %v1315_v22, %v1307_v0 }
 0x368   : > { %1223 = vmatmul.mubr.msk.bf16.vlgmr.msra.gmra.mxu0 %vm475_vm3, %v649_v21  ;;  %v768_v28 = vpack.c.bf16 %v767_v24, %v767_v24 }
 0x369   : > { %1234 = vmatprep.mubr.msk.bf16.mxu0 %vm1345_vm0, %v1344_v1 }
 0x384   : > { %v884_v23 = vpop.xlane.xlu1 %883 }
 0x385   : > { %1316 = vrcp.f32 %v884_v23 }
 0x388   : > { %v770_v25 = vpop.permute.xlu1 %769 }
 0x389   : > { %v775_v26 = vsel %vm539_vm4, %v770_v25, 0 }
 0x38a   : > { %1233 = vmatpush3.bf16.msra.mxu0 %v775_v26 }
 0x38b   : > { %1244 = vmatprep.subr.bf16.mxu0 %v1344_v1 }
 0x38d   : > { %1235 = vmatmul.mubr.msk.bf16.vlgmr.msra.gmra.mxu0 %vm475_vm3, %v768_v28 }
 0x38e   : > { %1245 = vmatpush3.bf16.msra.mxu0 %v894_v29  ;;  %1246 = vmatprep.mubr.msk.bf16.mxu0 %vm1345_vm0, %v1344_v1 }
 0x392   : > { %v1317_v30 = vpop.eup %1316 }
 0x393   : > { %v886_v31 = vmul.f32 %v1317_v30, %v1309_v7 }
 0x395   : > { %v887_v32 = vpack.c.bf16 %v886_v31, %v886_v31 }
 0x397   : > { %1247 = vmatmul.mubr.msk.bf16.vlgmr.msra.gmra.mxu0 %vm475_vm3, %v887_v32 }
 0x420   : > { %v577_v33 = vpop.f32.mrf.mxu0 }
 0x421   : > { %583 = vst.msk [vmem:[#allocation3] sm:$0xff] %vm475_vm3, %v577_v33 }
 0x422   : > { %v1212_v34 = vpop.f32.mrf.mxu0 }
 0x424   : > { %v580_v35 = vpop.f32.mrf.mxu0 }
 0x426   : > { %v1213_v36 = vpop.f32.mrf.mxu0 }
 0x428   : > { %v692_v37 = vpop.f32.mrf.mxu0 }
 0x429   : > { %699 = vrot.lane.b32.xlu1 %v692_v37, %s1357_s23 }
 0x42a   : > { %v1224_v38 = vpop.f32.mrf.mxu0 }
 0x42c   : > { %v695_v39 = vpop.f32.mrf.mxu0 }
 0x42e   : > { %v1225_v40 = vpop.f32.mrf.mxu0 }
 0x44d   : > { %v811_v42 = vpop.f32.mrf.mxu0 }
 0x44e   : > { %818 = vrot.lane.b32.xlu0 %v811_v42, %s1358_s28 }
 0x44f   : > { %v1236_v44 = vpop.f32.mrf.mxu0 }
 0x451   : > { %v814_v45 = vpop.f32.mrf.mxu0 }
 0x453   : > { %v1237_v46 = vpop.f32.mrf.mxu0 }
 0x457   : > { %v930_v47 = vpop.f32.mrf.mxu0 }
 0x458   : > { %937 = vrot.lane.b32.xlu1 %v930_v47, %s1359_s29 }
 0x459   : > { %v1248_v48 = vpop.f32.mrf.mxu0 }
 0x45b   : > { %v933_v49 = vpop.f32.mrf.mxu0 }
 0x45d   : > { %v1249_v50 = vpop.f32.mrf.mxu0 }
 0x49b   : > { %v700_v51 = vpop.permute.xlu1 %699 }
 0x49c   : > { %703 = vst.msk [vmem:[#allocation3] sm:$0xff] %vm702_vm5, %v700_v51 }
 0x4c0   : > { %v819_v52 = vpop.permute.xlu0 %818 }
 0x4c1   : > { %822 = vst.msk [vmem:[#allocation3] sm:$0xff] %vm821_vm6, %v819_v52 }
 0x4ca   : > { %v938_v53 = vpop.permute.xlu1 %937 }
 0x4cb   : > { %941 = vst.msk [vmem:[#allocation3] sm:$0xff] %vm940_vm7, %v938_v53 }
 0x4d2   : > { %v942_v1 = vld [vmem:[#allocation3] sm:$0xff] }
 0x4d3   : > { %v947_v54 = vpack.c.bf16 %v942_v1, %v942_v1 }
 0x4d5   : > { %1255 = vmatmul.mubr.msk.bf16.vlgmr.msra.gmra.mxu1 %vm409_vm1, %v947_v54 }
 0x595   : > { %v1005_v56 = vpop.f32.mrf.mxu1 }
 0x596   : > { %v1006_v57 = vadd.f32 %v1164_v55, %v1005_v56 }
 0x597   : > { %v1256_v58 = vpop.f32.mrf.mxu1 }
 0x598   : > { %v1011_v59 = vadd.f32 %v1006_v57, %v1450_v3  ;;  %v1168_v3 = vld [vmem:[%s1569_s7] ss:$0 sm:$0xff] }
 0x599   : > { %v1008_v60 = vpop.f32.mrf.mxu1 }
 0x59a   : > { %v1014_v61 = vsel %vm409_vm1, %v1011_v59, 0.0 }
 0x59b   : > { %1015 = vadd.xlane.f32.xlu0 %v1014_v61  ;;  %v1257_v62 = vpop.f32.mrf.mxu1 }
 0x624   : > { %v1016_v63 = vpop.xlane.xlu0 %1015 }
 0x625   : > { %v1018_v0 = vmul.f32 0.03125, %v1016_v63 }
 0x627   : > { %v1019_v2 = vsub.f32 %v1011_v59, %v1018_v0 }
 0x629   : > { %v1020_v4 = vmul.f32 %v1019_v2, %v1019_v2 }
 0x62b   : > { %v1021_v5 = vsel %vm409_vm1, %v1020_v4, 0.0 }
 0x62c   : > { %1022 = vadd.xlane.f32.xlu1 %v1021_v5 }
 0x6b5   : > { %v1023_v6 = vpop.xlane.xlu1 %1022 }
 0x6b6   : > { %v1024_v7 = vmul.f32 0.03125, %v1023_v6 }
 0x6b8   : > { %v1025_v8 = vadd.f32 1e-05, %v1024_v7 }
 0x6ba   : > { %1318 = vrsqrt.f32 %v1025_v8 }
 0x6c7   : > { %v1319_v9 = vpop.eup %1318 }
 0x6c8   : > { %v1027_v10 = vmul.f32 %v1319_v9, %v1019_v2 }
 0x6ca   : > { %v1034_v13 = vmul.f32 %v1168_v3, %v1027_v10 }
 0x6cc   : > { %v1041_v14 = vadd.f32 %v1169_v11, %v1034_v13 }
 0x6ce   : > { %1042 = vst.msk [vmem:[%s378_s22] sm:$0xff] %vm409_vm1, %v1041_v14 }
 0x6cf PF: > { %s19_s11 = sadd.s32 1, %s1342_s11   ;;  %s1572_s30 = smov %s1338_s10 }
 0x6d0   : > { %p16_p5 = scmp.ge.s32.totalorder %s19_s11, 4   ;;  %s1573_s10 = smov %s1575_s12 }
 0x6d2   :  { %18 = sbr.rel (!%p16_p5) target bundleno = 2 (0x2), region = 98 }

// kernel: seq2seq_transformer_forward.25
= control target key start
LH: loop header
LB: loop body
LE: loop exit
PB: predicated region body
PF: predicated region fallthrough
CT: control target
= control target key end

     0   :  { %v150_v1 = vmov 0.0   ;;  %vm151_vm0 = vmmov 0   ;;  %s193_s0 = inlined_call_operand.vmem [shape: f32[16,32], index: 0, kind: input, shape index: {}]   ;;  %s194_s1 = inlined_call_operand.vmem [shape: bf16[32,64], index: 1, kind: input, shape index: {}]   ;;  %s195_s2 = inlined_call_operand.vmem [shape: f32[1,64], index: 2, kind: input, shape index: {}]   ;;  %s196_s3 = inlined_call_operand.hbm [shape: f32[16,64], index: 3, kind: output, shape index: {}]  }
   0x1   :  { %v126_v0 = vld [vmem:[%s194_s1 + $0x8] sm:$0xff]   ;;  %113 = vmatprep.subr.bf16.mxu0 %v150_v1  ;;  %v127_v2 = vld [vmem:[%s194_s1] sm:$0xff]   ;;  %117 = vmatprep.mubr.msk.bf16.mxu0 %vm151_vm0, %v150_v1 }
   0x2   :  { %114 = vmatpush3.bf16.msra.mxu0 %v126_v0  ;;  %v16_v3 = vld [vmem:[%s193_s0] sm:$0xff]  ;;  %v17_v4 = vld [vmem:[%s193_s0 + $0x8] sm:$0xff] }
   0x3   :  { %115 = vmatprep.subr.bf16.mxu0 %v150_v1 }
   0x4   :  { %8 = vsyncpa [#allocation3], 0  ;;  %v22_v5 = vpack.c.bf16 %v17_v4, %v16_v3  ;;  %vm42_vm1 = vcmask 261120   ;;  %v106_v6 = vld [vmem:[%s195_s2] ss:$0 sm:$0xff]  ;;  %vm87_vm2 = vcmask 523264  }
   0x5   :  { %s152_s1 = smov [#allocation2]  }
   0x6   :  { %116 = vmatpush3.bf16.msra.mxu0 %v127_v2  ;;  %s95_s22 = sshll.u32 %s152_s1, 4  ;;  %s96_s22 = int_to_ptr.vmem [resolvable:$true] %s95_s22 }
   0x7   :  { %s128_s0 = scalar_lea.vmem %s96_s22, 256  ;;  %p133_p1 = scmp.lt.s32.totalorder %s96_s22, %s96_s22 }
   0x8   :  { %p129_p0 = scmp.ne.s32.totalorder %s96_s22, %s128_s0  ;;  %p134_p2 = scmp.lt.s32.totalorder %s128_s0, %s128_s0 }
   0x9   :  { %118 = vmatmul.mubr.msk.bf16.vlgmr.msra.gmra.mxu0 %vm42_vm1, %v22_v5 }
   0xa   :  { %p135_p3 = por %p134_p2, %p133_p1 }
   0xc   :  { %p136_p4 = pnand %p135_p3, %p129_p0 }
  0xc9   :  { %v80_v7 = vpop.f32.mrf.mxu0 }
  0xca   :  { %v81_v8 = vadd.f32 %v106_v6, %v80_v7 }
  0xcb   :  { %v119_v9 = vpop.f32.mrf.mxu0 }
  0xcc   :  { %88 = vst.msk [vmem:[#allocation2] sm:$0xff] %vm87_vm2, %v81_v8 }
  0xcd   :  { %v83_v10 = vpop.f32.mrf.mxu0 }
  0xce   :  { %v84_v11 = vadd.f32 %v106_v6, %v83_v10 }
  0xcf   :  { %v120_v12 = vpop.f32.mrf.mxu0 }
  0xd0   :  { %89 = vst.msk [vmem:[#allocation2 + $0x8] sm:$0xff] %vm87_vm2, %v84_v11 }
  0xd1   :  { %139 = shalt.err (!%p136_p4)
}
  0xd2   :  { %s153_s2 = smov 128   ;;  %s154_s23 = smov 8  }
  0xd3   :  { %101 = dma.vmem_to_hbm [thread:$0]  %s96_s22, 256, %s196_s3, [#allocation3], %s153_s2, %s153_s2, %s154_s23  }
  0xd4   :  { %148 = dma.done.wait [#allocation3], 256  }
  0xd5   :  { %149 = vsyncadd [#allocation3], 4294967040 }
  0xd6   :  { %105 = vsyncpa [#allocation3], 1 }

// kernel: seq2seq_transformer_forward.19
= control target key start
LH: loop header
LB: loop body
LE: loop exit
PB: predicated region body
PF: predicated region fallthrough
CT: control target
= control target key end

     0   :  { %s1485_s13 = smov 0   ;;  %s1487_s14 = smov 0   ;;  %s1641_s0 = inlined_call_operand.vmem [shape: f32[2,8,32], index: 0, kind: input, shape index: {}]   ;;  %s1642_s1 = inlined_call_operand.vmem [shape: f32[2,8,32], index: 1, kind: input, shape index: {}]   ;;  %s1643_s2 = inlined_call_operand.vmem [shape: bf16[32,32], index: 2, kind: input, shape index: {}]   ;;  %s1644_s3 = inlined_call_operand.vmem [shape: f32[1,32], index: 3, kind: input, shape index: {}]   ;;  %s1645_s4 = inlined_call_operand.vmem [shape: bf16[32,64], index: 4, kind: input, shape index: {}]   ;;  %s1646_s5 = inlined_call_operand.vmem [shape: f32[1,64], index: 5, kind: input, shape index: {}]   ;;  %s1647_s6 = inlined_call_operand.vmem [shape: bf16[32,32], index: 6, kind: input, shape index: {}]   ;;  %s1648_s7 = inlined_call_operand.vmem [shape: f32[1,32], index: 7, kind: input, shape index: {}]   ;;  %s1649_s8 = inlined_call_operand.vmem [shape: f32[1,32], index: 8, kind: input, shape index: {}]   ;;  %s1650_s9 = inlined_call_operand.vmem [shape: f32[1,32], index: 9, kind: input, shape index: {}]   ;;  %s1651_s10 = inlined_call_operand.vmem [shape: f32[2,8,32], index: 10, kind: output, shape index: {}]  }
   0x1   :  { %s1489_s15 = smov 0  }
   0x2 LB: > { %s32_s16 = sadd.s32 1, %s1412_s14  ;;  %p1209_p0 = scmp.ge.s32.totalorder %s1416_s15, 1  ;;  %s1416_s15 = sphi %s1489_s15, %s20_s15   ;;  %s1412_s14 = sphi %s1487_s14, %s1653_s14   ;;  %s1408_s13 = sphi %s1485_s13, %s1652_s13  }
   0x3   : > { %p34_p1 = scmp.ge.s32.totalorder %s32_s16, 2  ;;  %p339_p2 = scmp.lt.s32.totalorder %s1416_s15, 3 }
   0x5   : > { %s1655_s16 = smov (%p34_p1, %s32_s16), 0  ;;  %p340_p3 = pnand %p1209_p0, %p339_p2 }
   0x6   : > { %p385_p4 = scmp.lt.s32.totalorder (!%p340_p3), %s1408_s13, 1  ;;  %s1420_s19 = smov (!%p340_p3), 112  }
   0x7   : > { %343 = sbr.rel (%p340_p3) target bundleno = 1702 (0x6a6), region = 60  ;;  %s1421_s20 = smov (!%p340_p3), 120  }
   0x8   : > { %s1422_s21 = smov (!%p340_p3), 104   ;;  %s1423_s22 = smov (!%p340_p3), 96  }
   0x9   : > { %s1424_s23 = smov (!%p340_p3), 80   ;;  %s1425_s24 = smov (!%p340_p3), 72  }
   0xa   : > { %s1426_s26 = smov (!%p340_p3), 88   ;;  %s1427_s27 = smov (!%p340_p3), 8  }
   0xb   : > { %s1428_s12 = smov (!%p340_p3), 16  }
   0xc   : > { %v1370_v0 = vld [vmem:[%s1645_s4 + $0x8] sm:$0xff]   ;;  %v1418_v1 = vmov 0.0   ;;  %v1371_v2 = vld [vmem:[%s1645_s4] sm:$0xff]   ;;  %vm1419_vm0 = vmmov 0   ;;  %s1657_s13 = smov (!%p385_p4, %s1408_s13), 1  ;;  %vm433_vm1 = vcmask 261120  }
   0xd   : > { %1262 = vmatprep.subr.bf16.mxu0 %v1418_v1  ;;  %1270 = vmatprep.subr.bf16.mxu1 %v1418_v1  ;;  %v1372_v3 = vld [vmem:[%s1643_s2 + $0x8] sm:$0xff]   ;;  %v1373_v4 = vld [vmem:[%s1643_s2] sm:$0xff]   ;;  %s1522_s25 = sshll.u32 %s1657_s13, 3  ;;  %vm477_vm2 = vcmask 523264   ;;  %vm551_vm3 = vcmask 64512   ;;  %vm616_vm4 = vcmask 1043456  }
   0xe   : > { %1263 = vmatpush3.bf16.msra.mxu0 %v1370_v0  ;;  %1266 = vmatprep.mubr.msk.bf16.mxu0 %vm1419_vm0, %v1418_v1  ;;  %s395_s28 = scalar_lea.vmem %s1642_s1, %s1522_s25  ;;  %s391_s11 = scalar_lea.vmem %s1641_s0, %s1522_s25  ;;  %v1213_v9 = vld [vmem:[%s1646_s5] ss:$0 sm:$0xff]  ;;  %vm779_vm5 = vcmask 130112   ;;  %vm898_vm6 = vcmask 195712   ;;  %vm1017_vm7 = vcmask 261312  }
   0xf   : > { %1264 = vmatprep.subr.bf16.mxu0 %v1418_v1  ;;  %1274 = vmatprep.mubr.msk.bf16.mxu1 %vm1419_vm0, %v1418_v1  ;;  %v408_v5 = vld [vmem:[%s395_s28] sm:$0xff]  ;;  %s1429_s13 = smov 24  }
  0x10   : > { %1271 = vmatpush3.bf16.msra.mxu1 %v1372_v3  ;;  %v413_v6 = vpack.c.bf16 %v408_v5, %v408_v5  ;;  %v1534_v7 = vld [vmem:[%s391_s11] sm:$0xff] }
  0x11   : > { %1272 = vmatprep.subr.bf16.mxu1 %v1418_v1  ;;  %v484_v8 = vpack.c.bf16 %v1534_v7, %v1534_v7  ;;  %v1217_v18 = vld [vmem:[%s1644_s3] ss:$0 sm:$0xff] }
  0x12   : > { %1265 = vmatpush3.bf16.msra.mxu0 %v1371_v2 }
  0x13   : > { %1278 = vmatprep.subr.bf16.mxu0 %v1418_v1 }
  0x14   : > { %1273 = vmatpush3.bf16.msra.mxu1 %v1373_v4 }
  0x15   : > { %1284 = vmatprep.subr.bf16.mxu1 %v1418_v1  ;;  %1267 = vmatmul.mubr.msk.bf16.vlgmr.msra.gmra.mxu0 %vm433_vm1, %v413_v6 }
  0x16   : > { %1280 = vmatprep.mubr.msk.bf16.mxu0 %vm1419_vm0, %v1418_v1 }
  0x17   : > { %1275 = vmatmul.mubr.msk.bf16.vlgmr.msra.gmra.mxu1 %vm433_vm1, %v484_v8 }
  0x18   : > { %1286 = vmatprep.mubr.msk.bf16.mxu1 %vm1419_vm0, %v1418_v1 }
  0xd5   : > { %v471_v10 = vpop.f32.mrf.mxu0 }
  0xd6   : > { %v472_v11 = vadd.f32 %v1213_v9, %v471_v10 }
  0xd7   : > { %v542_v12 = vpop.f32.mrf.mxu1  ;;  %v1268_v13 = vpop.f32.mrf.mxu0 }
  0xd8   : > { %478 = vst.msk [vmem:[#allocation2] sm:$0xff] %vm477_vm2, %v472_v11  ;;  %v543_v20 = vadd.f32 %v1217_v18, %v542_v12 }
  0xd9   : > { %v1276_v14 = vpop.f32.mrf.mxu1  ;;  %v474_v15 = vpop.f32.mrf.mxu0 }
  0xda   : > { %v548_v23 = vpack.c.bf16 %v543_v20, %v543_v20 }
  0xdb   : > { %v545_v16 = vpop.f32.mrf.mxu1  ;;  %v1269_v17 = vpop.f32.mrf.mxu0 }
  0xdd   : > { %v1277_v19 = vpop.f32.mrf.mxu1 }
  0xdf   : > { %v781_v21 = vld [vmem:[#allocation2] sm:$0xff] }
  0xe0   : > { %v1551_v22 = vpack.c.bf16 %v781_v21, %v781_v21 }
  0xe2   : > { %786 = vrot.lane.b32.xlu1 %v1551_v22, %s1420_s19  ;;  %667 = vrot.lane.b32.xlu0 %v1551_v22, %s1421_s20  ;;  %v556_v24 = vsel %vm551_vm3, %v1551_v22, 0 }
  0xe3   : > { %1279 = vmatpush3.bf16.xpose.msra.mxu0 %v556_v24 }
  0xe4   : > { %1290 = vmatprep.subr.bf16.mxu0 %v1418_v1 }
  0xe6   : > { %783 = vrot.lane.b32.xlu1 %v548_v23, %s1420_s19  ;;  %664 = vrot.lane.b32.xlu0 %v548_v23, %s1421_s20 }
  0xea   : > { %902 = vrot.lane.b32.xlu1 %v548_v23, %s1422_s21  ;;  %905 = vrot.lane.b32.xlu0 %v1551_v22, %s1422_s21 }
  0xeb   : > { %1281 = vmatmul.mubr.msk.bf16.vlgmr.msra.gmra.mxu0 %vm551_vm3, %v548_v23 }
  0xec   : > { %1292 = vmatprep.mubr.msk.bf16.mxu0 %vm1419_vm0, %v1418_v1 }
 0x154   : > { %v668_v25 = vpop.permute.xlu0 %667  ;;  %v787_v27 = vpop.permute.xlu1 %786 }
 0x155   : > { %v673_v26 = vsel %vm551_vm3, %v668_v25, 0  ;;  %v792_v29 = vsel %vm551_vm3, %v787_v27, 0 }
 0x156   : > { %1291 = vmatpush3.bf16.xpose.msra.mxu0 %v673_v26 }
 0x157   : > { %1302 = vmatprep.subr.bf16.mxu0 %v1418_v1 }
 0x158   : > { %v665_v28 = vpop.permute.xlu0 %664  ;;  %v784_v31 = vpop.permute.xlu1 %783 }
 0x15c   : > { %v906_v30 = vpop.permute.xlu0 %905  ;;  %v903_v33 = vpop.permute.xlu1 %902 }
 0x15d   : > { %1293 = vmatmul.mubr.msk.bf16.vlgmr.msra.gmra.mxu0 %vm551_vm3, %v665_v28  ;;  %v911_v32 = vsel %vm551_vm3, %v906_v30, 0 }
 0x15e   : > { %1303 = vmatpush3.bf16.xpose.msra.mxu0 %v792_v29  ;;  %1304 = vmatprep.mubr.msk.bf16.mxu0 %vm1419_vm0, %v1418_v1 }
 0x15f   : > { %1314 = vmatprep.subr.bf16.mxu0 %v1418_v1 }
 0x165   : > { %1305 = vmatmul.mubr.msk.bf16.vlgmr.msra.gmra.mxu0 %vm551_vm3, %v784_v31 }
 0x166   : > { %1315 = vmatpush3.bf16.xpose.msra.mxu0 %v911_v32  ;;  %1316 = vmatprep.mubr.msk.bf16.mxu0 %vm1419_vm0, %v1418_v1 }
 0x167   : > { %1326 = vmatprep.subr.bf16.mxu0 %v1418_v1 }
 0x16d   : > { %1317 = vmatmul.mubr.msk.bf16.vlgmr.msra.gmra.mxu0 %vm551_vm3, %v903_v33 }
 0x16e   : > { %1330 = vmatprep.mubr.msk.bf16.mxu0 %vm1419_vm0, %v1418_v1 }
 0x1ab   : > { %v592_v34 = vpop.f32.mrf.mxu0 }
 0x1ac   : > { %v598_v35 = vsel %vm551_vm3, %v592_v34, -inf }
 0x1ad   : > { %599 = vmax.xlane.f32.xlu0 %v598_v35  ;;  %v1282_v36 = vpop.f32.mrf.mxu0 }
 0x1af   : > { %v595_v37 = vpop.f32.mrf.mxu0 }
 0x1b1   : > { %v1283_v38 = vpop.f32.mrf.mxu0 }
 0x21d   : > { %v709_v39 = vpop.f32.mrf.mxu0 }
 0x21e   : > { %v715_v40 = vsel %vm551_vm3, %v709_v39, -inf }
 0x21f   : > { %716 = vmax.xlane.f32.xlu1 %v715_v40  ;;  %v1294_v41 = vpop.f32.mrf.mxu0 }
 0x221   : > { %v712_v42 = vpop.f32.mrf.mxu0 }
 0x223   : > { %v1295_v43 = vpop.f32.mrf.mxu0 }
 0x224   : > { %v1374_v43 = vld [vmem:[%s1647_s6 + $0x8] sm:$0xff]  }
 0x225   : > { %v828_v44 = vpop.f32.mrf.mxu0  ;;  %1327 = vmatpush3.bf16.msra.mxu0 %v1374_v43 }
 0x226   : > { %v834_v45 = vsel %vm551_vm3, %v828_v44, -inf  ;;  %1328 = vmatprep.subr.bf16.mxu0 %v1418_v1 }
 0x227   : > { %835 = vmax.xlane.f32.xlu0 %v834_v45  ;;  %v1306_v46 = vpop.f32.mrf.mxu0  ;;  %v1375_v45 = vld [vmem:[%s1647_s6] sm:$0xff]  }
 0x229   : > { %v831_v47 = vpop.f32.mrf.mxu0  ;;  %1329 = vmatpush3.bf16.msra.mxu0 %v1375_v45 }
 0x22b   : > { %v1307_v48 = vpop.f32.mrf.mxu0 }
 0x22d   : > { %v947_v49 = vpop.f32.mrf.mxu0 }
 0x22e   : > { %v953_v50 = vsel %vm551_vm3, %v947_v49, -inf }
 0x22f   : > { %954 = vmax.xlane.f32.xlu0 %v953_v50  ;;  %v1318_v51 = vpop.f32.mrf.mxu0 }
 0x231   : > { %v950_v52 = vpop.f32.mrf.mxu0 }
 0x233   : > { %v1319_v53 = vpop.f32.mrf.mxu0 }
 0x236   : > { %v600_v54 = vpop.xlane.xlu0 %599 }
 0x237   : > { %v601_v55 = vsub.f32 %v592_v34, %v600_v54 }
 0x239   : > { %v602_v56 = vmul.f32 1.442695, %v601_v55 }
 0x23b   : > { %1376 = vpow2.f32 %v602_v56 }
 0x248   : > { %v1377_v57 = vpop.eup %1376 }
 0x249   : > { %v604_v58 = vsel %vm551_vm3, %v1377_v57, 0.0 }
 0x24a   : > { %605 = vadd.xlane.f32.xlu1 %v604_v58  ;;  %v1229_v58 = vld [vmem:[%s1648_s7] ss:$0 sm:$0xff] }
 0x25b   : > { %611 = vrot.lane.b32.xlu1 %v1551_v22, %s1423_s22 }
 0x2a8   : > { %v717_v59 = vpop.xlane.xlu1 %716 }
 0x2a9   : > { %v718_v60 = vsub.f32 %v709_v39, %v717_v59 }
 0x2ab   : > { %v719_v61 = vmul.f32 1.442695, %v718_v60 }
 0x2ad   : > { %1378 = vpow2.f32 %v719_v61 }
 0x2b0   : > { %v836_v62 = vpop.xlane.xlu0 %835 }
 0x2b1   : > { %v837_v63 = vsub.f32 %v828_v44, %v836_v62 }
 0x2b3   : > { %v838_v0 = vmul.f32 1.442695, %v837_v63 }
 0x2b5   : > { %1380 = vpow2.f32 %v838_v0 }
 0x2b8   : > { %v955_v2 = vpop.xlane.xlu0 %954 }
 0x2b9   : > { %v956_v3 = vsub.f32 %v947_v49, %v955_v2 }
 0x2ba   : > { %v1379_v4 = vpop.eup %1378 }
 0x2bb   : > { %v957_v5 = vmul.f32 1.442695, %v956_v3  ;;  %v721_v6 = vsel %vm551_vm3, %v1379_v4, 0.0 }
 0x2bc   : > { %722 = vadd.xlane.f32.xlu0 %v721_v6 }
 0x2bd   : > { %1382 = vpow2.f32 %v957_v5 }
 0x2c2   : > { %v1381_v8 = vpop.eup %1380 }
 0x2c3   : > { %v840_v9 = vsel %vm551_vm3, %v1381_v8, 0.0 }
 0x2c4   : > { %841 = vadd.xlane.f32.xlu1 %v840_v9 }
 0x2ca   : > { %v1383_v10 = vpop.eup %1382 }
 0x2cb   : > { %v959_v11 = vsel %vm551_vm3, %v1383_v10, 0.0 }
 0x2cc   : > { %960 = vadd.xlane.f32.xlu0 %v959_v11 }
 0x2d3   : > { %v606_v12 = vpop.xlane.xlu1 %605 }
 0x2d4   : > { %1384 = vrcp.f32 %v606_v12 }
 0x2d5   : > { %846 = vrot.lane.b32.xlu1 %v1551_v22, %s1424_s23 }
 0x2d7   : > { %v612_v13 = vpop.permute.xlu1 %611 }
 0x2d8   : > { %v618_v14 = vsel %vm616_vm4, %v612_v13, 0 }
 0x2d9   : > { %1285 = vmatpush3.bf16.msra.mxu1 %v618_v14  ;;  %965 = vrot.lane.b32.xlu1 %v1551_v22, %s1425_s24  ;;  %v1234_v14 = vld [vmem:[%s1650_s9] ss:$0 sm:$0xff] }
 0x2da   : > { %1296 = vmatprep.subr.bf16.mxu1 %v1418_v1 }
 0x2e1   : > { %v1385_v15 = vpop.eup %1384 }
 0x2e2   : > { %727 = vrot.lane.b32.xlu0 %v1551_v22, %s1426_s26  ;;  %v608_v16 = vmul.f32 %v1385_v15, %v1377_v57  ;;  %s402_s26 = scalar_lea.vmem %s1651_s10, %s1522_s25 }
 0x2e4   : > { %v609_v17 = vpack.c.bf16 %v608_v16, %v608_v16 }
 0x2e6   : > { %1287 = vmatmul.mubr.msk.bf16.vlgmr.msra.gmra.mxu1 %vm551_vm3, %v609_v17 }
 0x2e7   : > { %1298 = vmatprep.mubr.msk.bf16.mxu1 %vm1419_vm0, %v1418_v1 }
 0x345   : > { %v723_v18 = vpop.xlane.xlu0 %722 }
 0x346   : > { %1386 = vrcp.f32 %v723_v18 }
 0x34d   : > { %v842_v19 = vpop.xlane.xlu1 %841 }
 0x34e   : > { %1388 = vrcp.f32 %v842_v19 }
 0x351   : > { %v847_v26 = vpop.permute.xlu1 %846 }
 0x352   : > { %v852_v28 = vsel %vm616_vm4, %v847_v26, 0 }
 0x353   : > { %v1387_v20 = vpop.eup %1386 }
 0x354   : > { %v725_v23 = vmul.f32 %v1387_v20, %v1379_v4 }
 0x355   : > { %v961_v21 = vpop.xlane.xlu0 %960  ;;  %v966_v30 = vpop.permute.xlu1 %965 }
 0x356   : > { %1390 = vrcp.f32 %v961_v21  ;;  %v726_v22 = vpack.c.bf16 %v725_v23, %v725_v23  ;;  %v971_v33 = vsel %vm616_vm4, %v966_v30, 0 }
 0x359   : > { %v728_v24 = vpop.permute.xlu0 %727 }
 0x35a   : > { %v733_v25 = vsel %vm616_vm4, %v728_v24, 0 }
 0x35b   : > { %1297 = vmatpush3.bf16.msra.mxu1 %v733_v25  ;;  %v1389_v27 = vpop.eup %1388 }
 0x35c   : > { %1308 = vmatprep.subr.bf16.mxu1 %v1418_v1  ;;  %v844_v29 = vmul.f32 %v1389_v27, %v1381_v8 }
 0x35e   : > { %1299 = vmatmul.mubr.msk.bf16.vlgmr.msra.gmra.mxu1 %vm551_vm3, %v726_v22  ;;  %v845_v31 = vpack.c.bf16 %v844_v29, %v844_v29 }
 0x35f   : > { %1309 = vmatpush3.bf16.msra.mxu1 %v852_v28  ;;  %1310 = vmatprep.mubr.msk.bf16.mxu1 %vm1419_vm0, %v1418_v1 }
 0x360   : > { %1320 = vmatprep.subr.bf16.mxu1 %v1418_v1 }
 0x363   : > { %v1391_v32 = vpop.eup %1390 }
 0x364   : > { %v963_v34 = vmul.f32 %v1391_v32, %v1383_v10 }
 0x366   : > { %1311 = vmatmul.mubr.msk.bf16.vlgmr.msra.gmra.mxu1 %vm551_vm3, %v845_v31  ;;  %v964_v35 = vpack.c.bf16 %v963_v34, %v963_v34 }
 0x367   : > { %1321 = vmatpush3.bf16.msra.mxu1 %v971_v33  ;;  %1322 = vmatprep.mubr.msk.bf16.mxu1 %vm1419_vm0, %v1418_v1 }
 0x36e   : > { %1323 = vmatmul.mubr.msk.bf16.vlgmr.msra.gmra.mxu1 %vm551_vm3, %v964_v35 }
 0x3a6   : > { %v654_v36 = vpop.f32.mrf.mxu1 }
 0x3a7   : > { %660 = vst.msk [vmem:[#allocation3] sm:$0xff] %vm551_vm3, %v654_v36 }
 0x3a8   : > { %v1288_v37 = vpop.f32.mrf.mxu1 }
 0x3aa   : > { %v657_v38 = vpop.f32.mrf.mxu1 }
 0x3ac   : > { %v1289_v39 = vpop.f32.mrf.mxu1 }
 0x41e   : > { %v769_v40 = vpop.f32.mrf.mxu1 }
 0x41f   : > { %776 = vrot.lane.b32.xlu0 %v769_v40, %s1427_s27 }
 0x420   : > { %v1300_v41 = vpop.f32.mrf.mxu1 }
 0x422   : > { %v772_v42 = vpop.f32.mrf.mxu1 }
 0x424   : > { %v1301_v44 = vpop.f32.mrf.mxu1 }
 0x426   : > { %v888_v46 = vpop.f32.mrf.mxu1 }
 0x427   : > { %895 = vrot.lane.b32.xlu1 %v888_v46, %s1428_s12 }
 0x428   : > { %v1312_v47 = vpop.f32.mrf.mxu1 }
 0x42a   : > { %v891_v48 = vpop.f32.mrf.mxu1 }
 0x42c   : > { %v1313_v49 = vpop.f32.mrf.mxu1 }
 0x42e   : > { %v1007_v50 = vpop.f32.mrf.mxu1 }
 0x42f   : > { %1014 = vrot.lane.b32.xlu0 %v1007_v50, %s1429_s13 }
 0x430   : > { %v1324_v51 = vpop.f32.mrf.mxu1 }
 0x432   : > { %v1010_v52 = vpop.f32.mrf.mxu1 }
 0x434   : > { %v1325_v53 = vpop.f32.mrf.mxu1 }
 0x491   : > { %v777_v54 = vpop.permute.xlu0 %776 }
 0x492   : > { %780 = vst.msk [vmem:[#allocation3] sm:$0xff] %vm779_vm5, %v777_v54 }
 0x499   : > { %v896_v55 = vpop.permute.xlu1 %895 }
 0x49a   : > { %899 = vst.msk [vmem:[#allocation3] sm:$0xff] %vm898_vm6, %v896_v55 }
 0x4a1   : > { %v1015_v1 = vpop.permute.xlu0 %1014 }
 0x4a2   : > { %1018 = vst.msk [vmem:[#allocation3] sm:$0xff] %vm1017_vm7, %v1015_v1 }
 0x4a9   : > { %v1019_v56 = vld [vmem:[#allocation3] sm:$0xff] }
 0x4aa   : > { %v1024_v57 = vpack.c.bf16 %v1019_v56, %v1019_v56 }
 0x4ac   : > { %1331 = vmatmul.mubr.msk.bf16.vlgmr.msra.gmra.mxu0 %vm433_vm1, %v1024_v57 }
 0x56c   : > { %v1081_v59 = vpop.f32.mrf.mxu0 }
 0x56d   : > { %v1082_v60 = vadd.f32 %v1229_v58, %v1081_v59 }
 0x56e   : > { %v1332_v61 = vpop.f32.mrf.mxu0 }
 0x56f   : > { %v1087_v62 = vadd.f32 %v1082_v60, %v1534_v7  ;;  %v1233_v7 = vld [vmem:[%s1649_s8] ss:$0 sm:$0xff] }
 0x570   : > { %v1084_v63 = vpop.f32.mrf.mxu0 }
 0x571   : > { %v1090_v0 = vsel %vm433_vm1, %v1087_v62, 0.0 }
 0x572   : > { %1091 = vadd.xlane.f32.xlu1 %v1090_v0  ;;  %v1333_v2 = vpop.f32.mrf.mxu0 }
 0x5fb   : > { %v1092_v3 = vpop.xlane.xlu1 %1091 }
 0x5fc   : > { %v1094_v4 = vmul.f32 0.03125, %v1092_v3 }
 0x5fe   : > { %v1095_v5 = vsub.f32 %v1087_v62, %v1094_v4 }
 0x600   : > { %v1096_v6 = vmul.f32 %v1095_v5, %v1095_v5 }
 0x602   : > { %v1097_v8 = vsel %vm433_vm1, %v1096_v6, 0.0 }
 0x603   : > { %1098 = vadd.xlane.f32.xlu0 %v1097_v8 }
 0x68c   : > { %v1099_v9 = vpop.xlane.xlu0 %1098 }
 0x68d   : > { %v1100_v10 = vmul.f32 0.03125, %v1099_v9 }
 0x68f   : > { %v1101_v11 = vadd.f32 1e-05, %v1100_v10 }
 0x691   : > { %1392 = vrsqrt.f32 %v1101_v11 }
 0x69e   : > { %v1393_v12 = vpop.eup %1392 }
 0x69f   : > { %v1103_v13 = vmul.f32 %v1393_v12, %v1095_v5 }
 0x6a1   : > { %v1110_v15 = vmul.f32 %v1233_v7, %v1103_v13 }
 0x6a3   : > { %v1117_v16 = vadd.f32 %v1234_v14, %v1110_v15 }
 0x6a5   : > { %1118 = vst.msk [vmem:[%s402_s26] sm:$0xff] %vm433_vm1, %v1117_v16 }
 0x6a6 PF: > { %s20_s15 = sadd.s32 1, %s1416_s15   ;;  %s1652_s13 = smov %s1412_s14 }
 0x6a7   : > { %p17_p5 = scmp.ge.s32.totalorder %s20_s15, 4   ;;  %s1653_s14 = smov %s1655_s16 }
 0x6a9   :  { %19 = sbr.rel (!%p17_p5) target bundleno = 2 (0x2), region = 97 }

</bundles_post_ra>
